<compile_context>
chip_gen: v7x
topology: tpu7x:2x2x1
jax: 0.10.0
libtpu: 0.0.40
codegen_flags: <defaults>
</compile_context>

<pallas_src>
import functools

import jax
import jax.numpy as jnp
from jax import lax
from jax.experimental import pallas as pl
from jax.experimental.pallas import tpu as pltpu

BN_EPS = 1e-5
LANES = 128        # TPU lane width: GEMM output columns are padded to this.
TM_TANH = 512      # row tile of the final (largest) GEMM


def _round_up(x, m):
    return (x + m - 1) // m * m


# ----------------------------- Pallas kernels ------------------------------

def _gemm_bn_relu_kernel(p_ref, w_ref, pool_ref, gamma_ref, beta_ref, o_ref, *,
                         count):
    """bf16 GEMM (f32 accumulation) + training-mode BatchNorm + ReLU.

    Output columns are S sub-pixel blocks of c_out_pad channels each.  BN
    statistics are computed in a single pass: per-column sums of y and y*y are
    row-reduced first, then pooled across the S blocks of the same real
    channel (and broadcast back to every column) with the constant 0/1 matrix
    `pool_ref` — a (1,NC)x(NC,NC) matmul, so the stats cost no longer scales
    with M on the MXU.  Variance uses the E[y^2]-E[y]^2 form, clamped at 0.
    """
    y = jnp.dot(p_ref[...], w_ref[...], preferred_element_type=jnp.float32)
    inv_n = 1.0 / count
    s1 = jnp.sum(y, axis=0, keepdims=True)            # (1, NC)
    s2 = jnp.sum(y * y, axis=0, keepdims=True)        # (1, NC)
    mean = jnp.dot(s1, pool_ref[...], preferred_element_type=jnp.float32) * inv_n
    ex2 = jnp.dot(s2, pool_ref[...], preferred_element_type=jnp.float32) * inv_n
    var = jnp.maximum(ex2 - mean * mean, 0.0)         # guard tiny negative variances
    scale = gamma_ref[...] * lax.rsqrt(var + BN_EPS)  # (1, NC)
    shift = beta_ref[...] - mean * scale              # (1, NC)
    o_ref[...] = jnp.maximum(y * scale + shift, 0.0).astype(o_ref.dtype)


def _gemm_bias_tanh_kernel(p_ref, w_ref, bias_ref, o_ref):
    y = jnp.dot(p_ref[...], w_ref[...], preferred_element_type=jnp.float32)
    o_ref[...] = jnp.tanh(y + bias_ref[...])


# ----------------------------- kernel wrappers ------------------------------

def _gemm_bn_relu(P, Wm, pool, gamma_t, beta_t, count):
    M, K = P.shape
    NC = Wm.shape[1]
    kernel = functools.partial(_gemm_bn_relu_kernel, count=float(count))
    # Single full-array block: BN needs every row, and the largest block set
    # here is well under 1 MiB of VMEM.
    return pl.pallas_call(
        kernel,
        out_shape=jax.ShapeDtypeStruct((M, NC), jnp.bfloat16),
        grid=(1,),
        in_specs=[
            pl.BlockSpec((M, K), lambda i: (0, 0)),
            pl.BlockSpec((K, NC), lambda i: (0, 0)),
            pl.BlockSpec((NC, NC), lambda i: (0, 0)),
            pl.BlockSpec((1, NC), lambda i: (0, 0)),
            pl.BlockSpec((1, NC), lambda i: (0, 0)),
        ],
        out_specs=pl.BlockSpec((M, NC), lambda i: (0, 0)),
    )(P, Wm, pool, gamma_t, beta_t)


def _gemm_bias_tanh(P, Wm, bias_t, tm=TM_TANH):
    M, K = P.shape
    NC = Wm.shape[1]
    Mp = _round_up(M, tm)
    if Mp != M:                       # pad rows: the grid never falls back to 1
        P = jnp.pad(P, ((0, Mp - M), (0, 0)))
    out = pl.pallas_call(
        _gemm_bias_tanh_kernel,
        out_shape=jax.ShapeDtypeStruct((Mp, NC), jnp.float32),
        grid=(Mp // tm,),
        in_specs=[
            pl.BlockSpec((tm, K), lambda i: (i, 0)),
            pl.BlockSpec((K, NC), lambda i: (0, 0)),
            pl.BlockSpec((1, NC), lambda i: (0, 0)),
        ],
        out_specs=pl.BlockSpec((tm, NC), lambda i: (i, 0)),
        compiler_params=pltpu.CompilerParams(dimension_semantics=("parallel",)),
    )(P, Wm, bias_t)
    return out[:M]


# ---------------------- weight / auxiliary preparation ----------------------

def _convT_s2_to_gemm(w, c_out_pad):
    """PyTorch ConvTranspose2d weight (C_in, C_out, 4, 4), stride=2, pad=1 ->
    sub-pixel GEMM weight (9*C_in, 4*c_out_pad).

    Row (a*3+b)*C_in + ci indexes the 3x3 patch of the 1-padded input; column
    (2r+c)*c_out_pad + co holds the filter of output sub-pixel (r, c).  Only
    the 2x2 taps that touch sub-pixel (r, c) are non-zero, so the zero-dilated
    16-tap im2col is never materialized."""
    c_in, c_out = w.shape[0], w.shape[1]
    w3 = jnp.zeros((9, c_in, 4, c_out_pad), jnp.float32)
    for r in range(2):
        for c in range(2):
            s = 2 * r + c
            for a in (r, r + 1):
                for b in (c, c + 1):
                    kh = 3 + r - 2 * a
                    kw = 3 + c - 2 * b
                    w3 = w3.at[a * 3 + b, :, s, :c_out].set(w[:, :, kh, kw])
    return w3.reshape(9 * c_in, 4 * c_out_pad)


def _pool_matrix(ncols, c_out_pad):
    """0/1 matrix pooling per-column stats over the sub-pixel blocks of the
    same real channel (and broadcasting back to every column)."""
    i = jnp.arange(ncols)
    return (i[:, None] % c_out_pad == i[None, :] % c_out_pad).astype(jnp.float32)


def _tile_channel(v, c_out_pad, s):
    """Per-channel vector -> (1, s*c_out_pad), zero-padded per block."""
    vp = jnp.zeros((c_out_pad,), jnp.float32).at[:v.shape[0]].set(v)
    return jnp.tile(vp, s).reshape(1, s * c_out_pad)


def prepare_gemm_params(params):
    """Pre-compute bf16 GEMM-form weights, BN pooling matrices and tiled
    per-channel vectors from the PyTorch-layout parameters."""
    gp, c_outs = [], []

    # layer 1: 1x1 input, stride 1, pad 0 -> plain GEMM, channels in lanes.
    w = params[0]["w"]
    z, c_out = w.shape[0], w.shape[1]
    cp = _round_up(c_out, LANES)
    w1 = jnp.zeros((16 * z, cp), jnp.float32)
    w1 = w1.at[:, :c_out].set(w.transpose(2, 3, 0, 1).reshape(16 * z, c_out))
    gp.append(dict(w=w1.astype(jnp.bfloat16),
                   pool=_pool_matrix(cp, cp),
                   gamma=_tile_channel(params[0]["gamma"], cp, 1),
                   beta=_tile_channel(params[0]["beta"], cp, 1)))
    c_outs.append(c_out)

    # layers 2-4: stride-2 deconv + BN + ReLU (sub-pixel decomposition).
    for p in params[1:4]:
        w = p["w"]
        c_out = w.shape[1]
        cp = _round_up(c_out, LANES // 4)
        gp.append(dict(w=_convT_s2_to_gemm(w, cp).astype(jnp.bfloat16),
                       pool=_pool_matrix(4 * cp, cp),
                       gamma=_tile_channel(p["gamma"], cp, 4),
                       beta=_tile_channel(p["beta"], cp, 4)))
        c_outs.append(c_out)

    # layer 5: stride-2 deconv + bias + tanh.
    w = params[4]["w"]
    c_out = w.shape[1]
    cp = _round_up(c_out, LANES // 4)
    gp.append(dict(w=_convT_s2_to_gemm(w, cp).astype(jnp.bfloat16),
                   bias=_tile_channel(params[4]["bias"], cp, 4)))
    c_outs.append(c_out)
    return gp, tuple(c_outs)


# ------------------------------- JAX glue -----------------------------------

def _im2col_3x3(a):
    """3x3 patches (channel-minor) of the 1-padded NHWC activation, flattened
    to (N*H*W, 9*C)."""
    n, h, w_, c = a.shape
    xp = jnp.pad(a, ((0, 0), (1, 1), (1, 1), (0, 0)))
    cols = [xp[:, i:i + h, j:j + w_, :] for i in range(3) for j in range(3)]
    return jnp.concatenate(cols, axis=-1).reshape(n * h * w_, 9 * c)


def _pixel_shuffle_2x(y, n, h, w_, c_out_pad, c_out):
    """(N*H*W, 4*c_out_pad) sub-pixel GEMM output -> NHWC (N, 2H, 2W, c_out)."""
    y = y.reshape(n, h, w_, 2, 2, c_out_pad)
    y = y.transpose(0, 1, 3, 2, 4, 5).reshape(n, 2 * h, 2 * w_, c_out_pad)
    return y[..., :c_out]


def generator_forward(gemm_params, x, *, c_outs):
    n, z = x.shape[0], x.shape[1]

    # layer 1: (N, z, 1, 1) -> NHWC (N, 4, 4, C1).  K is block-expanded so the
    # GEMM output already has spatial positions in rows / channels in lanes.
    lp = gemm_params[0]
    x2 = x.reshape(n, z).astype(jnp.bfloat16)
    p1 = (jnp.eye(16, dtype=jnp.bfloat16)[None, :, :, None]
          * x2[:, None, None, :]).reshape(n * 16, 16 * z)
    y = _gemm_bn_relu(p1, lp["w"], lp["pool"], lp["gamma"], lp["beta"],
                      count=n * 16)
    a = y.reshape(n, 4, 4, lp["w"].shape[1])[..., :c_outs[0]]

    # layers 2-4: stride-2 deconv + BN + ReLU, activations stay NHWC / bf16.
    for idx in range(1, 4):
        lp = gemm_params[idx]
        nb, h, w_, _ = a.shape
        pat = _im2col_3x3(a)
        y = _gemm_bn_relu(pat, lp["w"], lp["pool"], lp["gamma"], lp["beta"],
                          count=nb * (2 * h) * (2 * w_))
        a = _pixel_shuffle_2x(y, nb, h, w_, lp["w"].shape[1] // 4, c_outs[idx])

    # layer 5: stride-2 deconv + bias + tanh.
    lp = gemm_params[4]
    nb, h, w_, _ = a.shape
    pat = _im2col_3x3(a)
    y = _gemm_bias_tanh(pat, lp["bias"] if False else lp["w"], lp["bias"]) \
        if False else _gemm_bias_tanh(pat, lp["w"], lp["bias"])
    out = _pixel_shuffle_2x(y, nb, h, w_, lp["w"].shape[1] // 4, c_outs[4])
    return out.transpose(0, 3, 1, 2)   # single NCHW transpose at the boundary


# ------------------------------ Generator init ------------------------------

def init_generator_params(key, z_dim, in_channels, features_g):
    # Channel progression mirrors the PyTorch module exactly.
    dims = [z_dim, features_g * 16, features_g * 8, features_g * 4,
            features_g * 2, in_channels]
    params = []
    for i in range(5):
        key, kw, kb = jax.random.split(key, 3)
        w = 0.02 * jax.random.normal(kw, (dims[i], dims[i + 1], 4, 4),
                                     jnp.float32)
        if i < 4:
            params.append(dict(w=w,
                               gamma=jnp.ones((dims[i + 1],), jnp.float32),
                               beta=jnp.zeros((dims[i + 1],), jnp.float32)))
        else:
            bias = 0.02 * jax.random.normal(kb, (dims[i + 1],), jnp.float32)
            params.append(dict(w=w, bias=bias))
    # TODO(synk): BatchNorm running_mean/running_var buffer updates (a training
    # side effect that does not affect this forward's output) are not modeled.
    return params


if __name__ == "__main__":
    Z_DIM, IN_CH, FEATURES_G, BATCH = 32, 3, 8, 2

    key = jax.random.PRNGKey(0)
    key, kx = jax.random.split(key)
    params = init_generator_params(key, Z_DIM, IN_CH, FEATURES_G)
    gemm_params, c_outs = prepare_gemm_params(params)
    x = jax.random.normal(kx, (BATCH, Z_DIM, 1, 1), jnp.float32)   # NCHW latent

    fwd = jax.jit(functools.partial(generator_forward, c_outs=c_outs))
    y = jax.block_until_ready(fwd(gemm_params, x))

    assert y.shape == (BATCH, IN_CH, 64, 64), y.shape
    assert bool(jnp.all(jnp.isfinite(y)))
    assert bool(jnp.all(jnp.abs(y) <= 1.0 + 1e-6))   # tanh output range
    print("KERNEL_OK")
</pallas_src>

<mosaic_0001>
module attributes {stable_mosaic.version = 11 : i64} {
  func.func @_gemm_bn_relu_kernel(%arg0: i32, %arg1: memref<32x512xbf16, #tpu.memory_space<vmem>>, %arg2: memref<512x128xbf16, #tpu.memory_space<vmem>>, %arg3: memref<128x128xf32, #tpu.memory_space<vmem>>, %arg4: memref<1x128xf32, #tpu.memory_space<vmem>>, %arg5: memref<1x128xf32, #tpu.memory_space<vmem>>, %arg6: memref<32x128xbf16, #tpu.memory_space<vmem>>) attributes {dimension_semantics = [#tpu.dimension_semantics<arbitrary>], iteration_bounds = array<i64: 1>, scalar_prefetch = 0 : i64, scratch_operands = 0 : i64, tpu.core_type = #tpu.core_type<tc>, window_params = [{pipeline_mode = #tpu.pipeline_mode<synchronous>, transform_indices = @transform_0, window_bounds = array<i64: 32, 512>}, {pipeline_mode = #tpu.pipeline_mode<synchronous>, transform_indices = @transform_1, window_bounds = array<i64: 512, 128>}, {pipeline_mode = #tpu.pipeline_mode<synchronous>, transform_indices = @transform_2, window_bounds = array<i64: 128, 128>}, {pipeline_mode = #tpu.pipeline_mode<synchronous>, transform_indices = @transform_3, window_bounds = array<i64: 1, 128>}, {pipeline_mode = #tpu.pipeline_mode<synchronous>, transform_indices = @transform_4, window_bounds = array<i64: 1, 128>}, {pipeline_mode = #tpu.pipeline_mode<synchronous>, transform_indices = @transform_5, window_bounds = array<i64: 32, 128>}]} {
    %c0 = arith.constant 0 : index
    %c0_0 = arith.constant 0 : index
    %0 = vector.load %arg1[%c0, %c0_0] : memref<32x512xbf16, #tpu.memory_space<vmem>>, vector<32x512xbf16>
    %c0_1 = arith.constant 0 : index
    %c0_2 = arith.constant 0 : index
    %1 = vector.load %arg2[%c0_1, %c0_2] : memref<512x128xbf16, #tpu.memory_space<vmem>>, vector<512x128xbf16>
    %cst = arith.constant dense<0.000000e+00> : vector<32x128xf32>
    %2 = tpu.matmul %0, %1, %cst {dimension_numbers = #tpu.dot_dimension_numbers<[1], [0], [0], [1], [0, 0, 1, 1], [], []>} : vector<32x512xbf16>, vector<512x128xbf16>, vector<32x128xf32> -> vector<32x128xf32>
    %cst_3 = arith.constant dense<0.000000e+00> : vector<128xf32>
    %3 = vector.multi_reduction <add>, %2, %cst_3 [0] : vector<32x128xf32> to vector<128xf32>
    %4 = vector.shape_cast %3 : vector<128xf32> to vector<1x128xf32>
    %5 = arith.mulf %2, %2 : vector<32x128xf32>
    %cst_4 = arith.constant dense<0.000000e+00> : vector<128xf32>
    %6 = vector.multi_reduction <add>, %5, %cst_4 [0] : vector<32x128xf32> to vector<128xf32>
    %7 = vector.shape_cast %6 : vector<128xf32> to vector<1x128xf32>
    %c0_5 = arith.constant 0 : index
    %c0_6 = arith.constant 0 : index
    %8 = vector.load %arg3[%c0_5, %c0_6] : memref<128x128xf32, #tpu.memory_space<vmem>>, vector<128x128xf32>
    %cst_7 = arith.constant dense<0.000000e+00> : vector<1x128xf32>
    %9 = tpu.matmul %4, %8, %cst_7 {dimension_numbers = #tpu.dot_dimension_numbers<[1], [0], [0], [1], [0, 0, 1, 1], [], []>} : vector<1x128xf32>, vector<128x128xf32>, vector<1x128xf32> -> vector<1x128xf32>
    %cst_8 = arith.constant 3.125000e-02 : f32
    %10 = vector.broadcast %cst_8 : f32 to vector<1x128xf32>
    %11 = arith.mulf %9, %10 : vector<1x128xf32>
    %c0_9 = arith.constant 0 : index
    %c0_10 = arith.constant 0 : index
    %12 = vector.load %arg3[%c0_9, %c0_10] : memref<128x128xf32, #tpu.memory_space<vmem>>, vector<128x128xf32>
    %cst_11 = arith.constant dense<0.000000e+00> : vector<1x128xf32>
    %13 = tpu.matmul %7, %12, %cst_11 {dimension_numbers = #tpu.dot_dimension_numbers<[1], [0], [0], [1], [0, 0, 1, 1], [], []>} : vector<1x128xf32>, vector<128x128xf32>, vector<1x128xf32> -> vector<1x128xf32>
    %cst_12 = arith.constant 3.125000e-02 : f32
    %14 = vector.broadcast %cst_12 : f32 to vector<1x128xf32>
    %15 = arith.mulf %13, %14 : vector<1x128xf32>
    %16 = arith.mulf %11, %11 : vector<1x128xf32>
    %17 = arith.subf %15, %16 : vector<1x128xf32>
    %cst_13 = arith.constant 0.000000e+00 : f32
    %18 = vector.broadcast %cst_13 : f32 to vector<1x128xf32>
    %19 = arith.maximumf %17, %18 : vector<1x128xf32>
    %c0_14 = arith.constant 0 : index
    %c0_15 = arith.constant 0 : index
    %20 = vector.load %arg4[%c0_14, %c0_15] : memref<1x128xf32, #tpu.memory_space<vmem>>, vector<1x128xf32>
    %cst_16 = arith.constant 9.99999974E-6 : f32
    %21 = vector.broadcast %cst_16 : f32 to vector<1x128xf32>
    %22 = arith.addf %19, %21 : vector<1x128xf32>
    %23 = math.rsqrt %22 : vector<1x128xf32>
    %24 = arith.mulf %20, %23 : vector<1x128xf32>
    %c0_17 = arith.constant 0 : index
    %c0_18 = arith.constant 0 : index
    %25 = vector.load %arg5[%c0_17, %c0_18] : memref<1x128xf32, #tpu.memory_space<vmem>>, vector<1x128xf32>
    %26 = arith.mulf %11, %24 : vector<1x128xf32>
    %27 = arith.subf %25, %26 : vector<1x128xf32>
    %28 = vector.broadcast %24 : vector<1x128xf32> to vector<32x128xf32>
    %29 = arith.mulf %2, %28 : vector<32x128xf32>
    %30 = vector.broadcast %27 : vector<1x128xf32> to vector<32x128xf32>
    %31 = arith.addf %29, %30 : vector<32x128xf32>
    %cst_19 = arith.constant 0.000000e+00 : f32
    %32 = vector.broadcast %cst_19 : f32 to vector<32x128xf32>
    %33 = arith.maximumf %31, %32 : vector<32x128xf32>
    %34 = arith.truncf %33 : vector<32x128xf32> to vector<32x128xbf16>
    %c0_20 = arith.constant 0 : index
    %c0_21 = arith.constant 0 : index
    %35 = vector.load %arg6[%c0_20, %c0_21] : memref<32x128xbf16, #tpu.memory_space<vmem>>, vector<32x128xbf16>
    tpu.vector_store %arg6[%c0_20, %c0_21], %34 {strides = array<i32>} : memref<32x128xbf16, #tpu.memory_space<vmem>>, vector<32x128xbf16>,
    return
  }
  func.func @transform_0(%arg0: i32) -> (i32, i32) {
    %c0_i32 = arith.constant 0 : i32
    %c0_i32_0 = arith.constant 0 : i32
    %c0_i32_1 = arith.constant 0 : i32
    return %c0_i32, %c0_i32_0 : i32, i32
  }
  func.func @transform_1(%arg0: i32) -> (i32, i32) {
    %c0_i32 = arith.constant 0 : i32
    %c0_i32_0 = arith.constant 0 : i32
    %c0_i32_1 = arith.constant 0 : i32
    return %c0_i32, %c0_i32_0 : i32, i32
  }
  func.func @transform_2(%arg0: i32) -> (i32, i32) {
    %c0_i32 = arith.constant 0 : i32
    %c0_i32_0 = arith.constant 0 : i32
    %c0_i32_1 = arith.constant 0 : i32
    return %c0_i32, %c0_i32_0 : i32, i32
  }
  func.func @transform_3(%arg0: i32) -> (i32, i32) {
    %c0_i32 = arith.constant 0 : i32
    %c0_i32_0 = arith.constant 0 : i32
    %c0_i32_1 = arith.constant 0 : i32
    return %c0_i32, %c0_i32_0 : i32, i32
  }
  func.func @transform_4(%arg0: i32) -> (i32, i32) {
    %c0_i32 = arith.constant 0 : i32
    %c0_i32_0 = arith.constant 0 : i32
    %c0_i32_1 = arith.constant 0 : i32
    return %c0_i32, %c0_i32_0 : i32, i32
  }
  func.func @transform_5(%arg0: i32) -> (i32, i32) {
    %c0_i32 = arith.constant 0 : i32
    %c0_i32_0 = arith.constant 0 : i32
    %c0_i32_1 = arith.constant 0 : i32
    return %c0_i32, %c0_i32_0 : i32, i32
  }
}

module attributes {stable_mosaic.version = 11 : i64} {
  func.func @_gemm_bn_relu_kernel(%arg0: i32, %arg1: memref<32x1152xbf16, #tpu.memory_space<vmem>>, %arg2: memref<1152x256xbf16, #tpu.memory_space<vmem>>, %arg3: memref<256x256xf32, #tpu.memory_space<vmem>>, %arg4: memref<1x256xf32, #tpu.memory_space<vmem>>, %arg5: memref<1x256xf32, #tpu.memory_space<vmem>>, %arg6: memref<32x256xbf16, #tpu.memory_space<vmem>>) attributes {dimension_semantics = [#tpu.dimension_semantics<arbitrary>], iteration_bounds = array<i64: 1>, scalar_prefetch = 0 : i64, scratch_operands = 0 : i64, tpu.core_type = #tpu.core_type<tc>, window_params = [{pipeline_mode = #tpu.pipeline_mode<synchronous>, transform_indices = @transform_0, window_bounds = array<i64: 32, 1152>}, {pipeline_mode = #tpu.pipeline_mode<synchronous>, transform_indices = @transform_1, window_bounds = array<i64: 1152, 256>}, {pipeline_mode = #tpu.pipeline_mode<synchronous>, transform_indices = @transform_2, window_bounds = array<i64: 256, 256>}, {pipeline_mode = #tpu.pipeline_mode<synchronous>, transform_indices = @transform_3, window_bounds = array<i64: 1, 256>}, {pipeline_mode = #tpu.pipeline_mode<synchronous>, transform_indices = @transform_4, window_bounds = array<i64: 1, 256>}, {pipeline_mode = #tpu.pipeline_mode<synchronous>, transform_indices = @transform_5, window_bounds = array<i64: 32, 256>}]} {
    %c0 = arith.constant 0 : index
    %c0_0 = arith.constant 0 : index
    %0 = vector.load %arg1[%c0, %c0_0] : memref<32x1152xbf16, #tpu.memory_space<vmem>>, vector<32x1152xbf16>
    %c0_1 = arith.constant 0 : index
    %c0_2 = arith.constant 0 : index
    %1 = vector.load %arg2[%c0_1, %c0_2] : memref<1152x256xbf16, #tpu.memory_space<vmem>>, vector<1152x256xbf16>
    %cst = arith.constant dense<0.000000e+00> : vector<32x256xf32>
    %2 = tpu.matmul %0, %1, %cst {dimension_numbers = #tpu.dot_dimension_numbers<[1], [0], [0], [1], [0, 0, 1, 1], [], []>} : vector<32x1152xbf16>, vector<1152x256xbf16>, vector<32x256xf32> -> vector<32x256xf32>
    %cst_3 = arith.constant dense<0.000000e+00> : vector<256xf32>
    %3 = vector.multi_reduction <add>, %2, %cst_3 [0] : vector<32x256xf32> to vector<256xf32>
    %4 = vector.shape_cast %3 : vector<256xf32> to vector<1x256xf32>
    %5 = arith.mulf %2, %2 : vector<32x256xf32>
    %cst_4 = arith.constant dense<0.000000e+00> : vector<256xf32>
    %6 = vector.multi_reduction <add>, %5, %cst_4 [0] : vector<32x256xf32> to vector<256xf32>
    %7 = vector.shape_cast %6 : vector<256xf32> to vector<1x256xf32>
    %c0_5 = arith.constant 0 : index
    %c0_6 = arith.constant 0 : index
    %8 = vector.load %arg3[%c0_5, %c0_6] : memref<256x256xf32, #tpu.memory_space<vmem>>, vector<256x256xf32>
    %cst_7 = arith.constant dense<0.000000e+00> : vector<1x256xf32>
    %9 = tpu.matmul %4, %8, %cst_7 {dimension_numbers = #tpu.dot_dimension_numbers<[1], [0], [0], [1], [0, 0, 1, 1], [], []>} : vector<1x256xf32>, vector<256x256xf32>, vector<1x256xf32> -> vector<1x256xf32>
    %cst_8 = arith.constant 7.812500e-03 : f32
    %10 = vector.broadcast %cst_8 : f32 to vector<1x256xf32>
    %11 = arith.mulf %9, %10 : vector<1x256xf32>
    %c0_9 = arith.constant 0 : index
    %c0_10 = arith.constant 0 : index
    %12 = vector.load %arg3[%c0_9, %c0_10] : memref<256x256xf32, #tpu.memory_space<vmem>>, vector<256x256xf32>
    %cst_11 = arith.constant dense<0.000000e+00> : vector<1x256xf32>
    %13 = tpu.matmul %7, %12, %cst_11 {dimension_numbers = #tpu.dot_dimension_numbers<[1], [0], [0], [1], [0, 0, 1, 1], [], []>} : vector<1x256xf32>, vector<256x256xf32>, vector<1x256xf32> -> vector<1x256xf32>
    %cst_12 = arith.constant 7.812500e-03 : f32
    %14 = vector.broadcast %cst_12 : f32 to vector<1x256xf32>
    %15 = arith.mulf %13, %14 : vector<1x256xf32>
    %16 = arith.mulf %11, %11 : vector<1x256xf32>
    %17 = arith.subf %15, %16 : vector<1x256xf32>
    %cst_13 = arith.constant 0.000000e+00 : f32
    %18 = vector.broadcast %cst_13 : f32 to vector<1x256xf32>
    %19 = arith.maximumf %17, %18 : vector<1x256xf32>
    %c0_14 = arith.constant 0 : index
    %c0_15 = arith.constant 0 : index
    %20 = vector.load %arg4[%c0_14, %c0_15] : memref<1x256xf32, #tpu.memory_space<vmem>>, vector<1x256xf32>
    %cst_16 = arith.constant 9.99999974E-6 : f32
    %21 = vector.broadcast %cst_16 : f32 to vector<1x256xf32>
    %22 = arith.addf %19, %21 : vector<1x256xf32>
    %23 = math.rsqrt %22 : vector<1x256xf32>
    %24 = arith.mulf %20, %23 : vector<1x256xf32>
    %c0_17 = arith.constant 0 : index
    %c0_18 = arith.constant 0 : index
    %25 = vector.load %arg5[%c0_17, %c0_18] : memref<1x256xf32, #tpu.memory_space<vmem>>, vector<1x256xf32>
    %26 = arith.mulf %11, %24 : vector<1x256xf32>
    %27 = arith.subf %25, %26 : vector<1x256xf32>
    %28 = vector.broadcast %24 : vector<1x256xf32> to vector<32x256xf32>
    %29 = arith.mulf %2, %28 : vector<32x256xf32>
    %30 = vector.broadcast %27 : vector<1x256xf32> to vector<32x256xf32>
    %31 = arith.addf %29, %30 : vector<32x256xf32>
    %cst_19 = arith.constant 0.000000e+00 : f32
    %32 = vector.broadcast %cst_19 : f32 to vector<32x256xf32>
    %33 = arith.maximumf %31, %32 : vector<32x256xf32>
    %34 = arith.truncf %33 : vector<32x256xf32> to vector<32x256xbf16>
    %c0_20 = arith.constant 0 : index
    %c0_21 = arith.constant 0 : index
    %35 = vector.load %arg6[%c0_20, %c0_21] : memref<32x256xbf16, #tpu.memory_space<vmem>>, vector<32x256xbf16>
    tpu.vector_store %arg6[%c0_20, %c0_21], %34 {strides = array<i32>} : memref<32x256xbf16, #tpu.memory_space<vmem>>, vector<32x256xbf16>,
    return
  }
  func.func @transform_0(%arg0: i32) -> (i32, i32) {
    %c0_i32 = arith.constant 0 : i32
    %c0_i32_0 = arith.constant 0 : i32
    %c0_i32_1 = arith.constant 0 : i32
    return %c0_i32, %c0_i32_0 : i32, i32
  }
  func.func @transform_1(%arg0: i32) -> (i32, i32) {
    %c0_i32 = arith.constant 0 : i32
    %c0_i32_0 = arith.constant 0 : i32
    %c0_i32_1 = arith.constant 0 : i32
    return %c0_i32, %c0_i32_0 : i32, i32
  }
  func.func @transform_2(%arg0: i32) -> (i32, i32) {
    %c0_i32 = arith.constant 0 : i32
    %c0_i32_0 = arith.constant 0 : i32
    %c0_i32_1 = arith.constant 0 : i32
    return %c0_i32, %c0_i32_0 : i32, i32
  }
  func.func @transform_3(%arg0: i32) -> (i32, i32) {
    %c0_i32 = arith.constant 0 : i32
    %c0_i32_0 = arith.constant 0 : i32
    %c0_i32_1 = arith.constant 0 : i32
    return %c0_i32, %c0_i32_0 : i32, i32
  }
  func.func @transform_4(%arg0: i32) -> (i32, i32) {
    %c0_i32 = arith.constant 0 : i32
    %c0_i32_0 = arith.constant 0 : i32
    %c0_i32_1 = arith.constant 0 : i32
    return %c0_i32, %c0_i32_0 : i32, i32
  }
  func.func @transform_5(%arg0: i32) -> (i32, i32) {
    %c0_i32 = arith.constant 0 : i32
    %c0_i32_0 = arith.constant 0 : i32
    %c0_i32_1 = arith.constant 0 : i32
    return %c0_i32, %c0_i32_0 : i32, i32
  }
}

module attributes {stable_mosaic.version = 11 : i64} {
  func.func @_gemm_bn_relu_kernel(%arg0: i32, %arg1: memref<128x576xbf16, #tpu.memory_space<vmem>>, %arg2: memref<576x128xbf16, #tpu.memory_space<vmem>>, %arg3: memref<128x128xf32, #tpu.memory_space<vmem>>, %arg4: memref<1x128xf32, #tpu.memory_space<vmem>>, %arg5: memref<1x128xf32, #tpu.memory_space<vmem>>, %arg6: memref<128x128xbf16, #tpu.memory_space<vmem>>) attributes {dimension_semantics = [#tpu.dimension_semantics<arbitrary>], iteration_bounds = array<i64: 1>, scalar_prefetch = 0 : i64, scratch_operands = 0 : i64, tpu.core_type = #tpu.core_type<tc>, window_params = [{pipeline_mode = #tpu.pipeline_mode<synchronous>, transform_indices = @transform_0, window_bounds = array<i64: 128, 576>}, {pipeline_mode = #tpu.pipeline_mode<synchronous>, transform_indices = @transform_1, window_bounds = array<i64: 576, 128>}, {pipeline_mode = #tpu.pipeline_mode<synchronous>, transform_indices = @transform_2, window_bounds = array<i64: 128, 128>}, {pipeline_mode = #tpu.pipeline_mode<synchronous>, transform_indices = @transform_3, window_bounds = array<i64: 1, 128>}, {pipeline_mode = #tpu.pipeline_mode<synchronous>, transform_indices = @transform_4, window_bounds = array<i64: 1, 128>}, {pipeline_mode = #tpu.pipeline_mode<synchronous>, transform_indices = @transform_5, window_bounds = array<i64: 128, 128>}]} {
    %c0 = arith.constant 0 : index
    %c0_0 = arith.constant 0 : index
    %0 = vector.load %arg1[%c0, %c0_0] : memref<128x576xbf16, #tpu.memory_space<vmem>>, vector<128x576xbf16>
    %c0_1 = arith.constant 0 : index
    %c0_2 = arith.constant 0 : index
    %1 = vector.load %arg2[%c0_1, %c0_2] : memref<576x128xbf16, #tpu.memory_space<vmem>>, vector<576x128xbf16>
    %cst = arith.constant dense<0.000000e+00> : vector<128x128xf32>
    %2 = tpu.matmul %0, %1, %cst {dimension_numbers = #tpu.dot_dimension_numbers<[1], [0], [0], [1], [0, 0, 1, 1], [], []>} : vector<128x576xbf16>, vector<576x128xbf16>, vector<128x128xf32> -> vector<128x128xf32>
    %cst_3 = arith.constant dense<0.000000e+00> : vector<128xf32>
    %3 = vector.multi_reduction <add>, %2, %cst_3 [0] : vector<128x128xf32> to vector<128xf32>
    %4 = vector.shape_cast %3 : vector<128xf32> to vector<1x128xf32>
    %5 = arith.mulf %2, %2 : vector<128x128xf32>
    %cst_4 = arith.constant dense<0.000000e+00> : vector<128xf32>
    %6 = vector.multi_reduction <add>, %5, %cst_4 [0] : vector<128x128xf32> to vector<128xf32>
    %7 = vector.shape_cast %6 : vector<128xf32> to vector<1x128xf32>
    %c0_5 = arith.constant 0 : index
    %c0_6 = arith.constant 0 : index
    %8 = vector.load %arg3[%c0_5, %c0_6] : memref<128x128xf32, #tpu.memory_space<vmem>>, vector<128x128xf32>
    %cst_7 = arith.constant dense<0.000000e+00> : vector<1x128xf32>
    %9 = tpu.matmul %4, %8, %cst_7 {dimension_numbers = #tpu.dot_dimension_numbers<[1], [0], [0], [1], [0, 0, 1, 1], [], []>} : vector<1x128xf32>, vector<128x128xf32>, vector<1x128xf32> -> vector<1x128xf32>
    %cst_8 = arith.constant 0.001953125 : f32
    %10 = vector.broadcast %cst_8 : f32 to vector<1x128xf32>
    %11 = arith.mulf %9, %10 : vector<1x128xf32>
    %c0_9 = arith.constant 0 : index
    %c0_10 = arith.constant 0 : index
    %12 = vector.load %arg3[%c0_9, %c0_10] : memref<128x128xf32, #tpu.memory_space<vmem>>, vector<128x128xf32>
    %cst_11 = arith.constant dense<0.000000e+00> : vector<1x128xf32>
    %13 = tpu.matmul %7, %12, %cst_11 {dimension_numbers = #tpu.dot_dimension_numbers<[1], [0], [0], [1], [0, 0, 1, 1], [], []>} : vector<1x128xf32>, vector<128x128xf32>, vector<1x128xf32> -> vector<1x128xf32>
    %cst_12 = arith.constant 0.001953125 : f32
    %14 = vector.broadcast %cst_12 : f32 to vector<1x128xf32>
    %15 = arith.mulf %13, %14 : vector<1x128xf32>
    %16 = arith.mulf %11, %11 : vector<1x128xf32>
    %17 = arith.subf %15, %16 : vector<1x128xf32>
    %cst_13 = arith.constant 0.000000e+00 : f32
    %18 = vector.broadcast %cst_13 : f32 to vector<1x128xf32>
    %19 = arith.maximumf %17, %18 : vector<1x128xf32>
    %c0_14 = arith.constant 0 : index
    %c0_15 = arith.constant 0 : index
    %20 = vector.load %arg4[%c0_14, %c0_15] : memref<1x128xf32, #tpu.memory_space<vmem>>, vector<1x128xf32>
    %cst_16 = arith.constant 9.99999974E-6 : f32
    %21 = vector.broadcast %cst_16 : f32 to vector<1x128xf32>
    %22 = arith.addf %19, %21 : vector<1x128xf32>
    %23 = math.rsqrt %22 : vector<1x128xf32>
    %24 = arith.mulf %20, %23 : vector<1x128xf32>
    %c0_17 = arith.constant 0 : index
    %c0_18 = arith.constant 0 : index
    %25 = vector.load %arg5[%c0_17, %c0_18] : memref<1x128xf32, #tpu.memory_space<vmem>>, vector<1x128xf32>
    %26 = arith.mulf %11, %24 : vector<1x128xf32>
    %27 = arith.subf %25, %26 : vector<1x128xf32>
    %28 = vector.broadcast %24 : vector<1x128xf32> to vector<128x128xf32>
    %29 = arith.mulf %2, %28 : vector<128x128xf32>
    %30 = vector.broadcast %27 : vector<1x128xf32> to vector<128x128xf32>
    %31 = arith.addf %29, %30 : vector<128x128xf32>
    %cst_19 = arith.constant 0.000000e+00 : f32
    %32 = vector.broadcast %cst_19 : f32 to vector<128x128xf32>
    %33 = arith.maximumf %31, %32 : vector<128x128xf32>
    %34 = arith.truncf %33 : vector<128x128xf32> to vector<128x128xbf16>
    %c0_20 = arith.constant 0 : index
    %c0_21 = arith.constant 0 : index
    %35 = vector.load %arg6[%c0_20, %c0_21] : memref<128x128xbf16, #tpu.memory_space<vmem>>, vector<128x128xbf16>
    tpu.vector_store %arg6[%c0_20, %c0_21], %34 {strides = array<i32>} : memref<128x128xbf16, #tpu.memory_space<vmem>>, vector<128x128xbf16>,
    return
  }
  func.func @transform_0(%arg0: i32) -> (i32, i32) {
    %c0_i32 = arith.constant 0 : i32
    %c0_i32_0 = arith.constant 0 : i32
    %c0_i32_1 = arith.constant 0 : i32
    return %c0_i32, %c0_i32_0 : i32, i32
  }
  func.func @transform_1(%arg0: i32) -> (i32, i32) {
    %c0_i32 = arith.constant 0 : i32
    %c0_i32_0 = arith.constant 0 : i32
    %c0_i32_1 = arith.constant 0 : i32
    return %c0_i32, %c0_i32_0 : i32, i32
  }
  func.func @transform_2(%arg0: i32) -> (i32, i32) {
    %c0_i32 = arith.constant 0 : i32
    %c0_i32_0 = arith.constant 0 : i32
    %c0_i32_1 = arith.constant 0 : i32
    return %c0_i32, %c0_i32_0 : i32, i32
  }
  func.func @transform_3(%arg0: i32) -> (i32, i32) {
    %c0_i32 = arith.constant 0 : i32
    %c0_i32_0 = arith.constant 0 : i32
    %c0_i32_1 = arith.constant 0 : i32
    return %c0_i32, %c0_i32_0 : i32, i32
  }
  func.func @transform_4(%arg0: i32) -> (i32, i32) {
    %c0_i32 = arith.constant 0 : i32
    %c0_i32_0 = arith.constant 0 : i32
    %c0_i32_1 = arith.constant 0 : i32
    return %c0_i32, %c0_i32_0 : i32, i32
  }
  func.func @transform_5(%arg0: i32) -> (i32, i32) {
    %c0_i32 = arith.constant 0 : i32
    %c0_i32_0 = arith.constant 0 : i32
    %c0_i32_1 = arith.constant 0 : i32
    return %c0_i32, %c0_i32_0 : i32, i32
  }
}

module attributes {stable_mosaic.version = 11 : i64} {
  func.func @_gemm_bn_relu_kernel(%arg0: i32, %arg1: memref<512x288xbf16, #tpu.memory_space<vmem>>, %arg2: memref<288x128xbf16, #tpu.memory_space<vmem>>, %arg3: memref<128x128xf32, #tpu.memory_space<vmem>>, %arg4: memref<1x128xf32, #tpu.memory_space<vmem>>, %arg5: memref<1x128xf32, #tpu.memory_space<vmem>>, %arg6: memref<512x128xbf16, #tpu.memory_space<vmem>>) attributes {dimension_semantics = [#tpu.dimension_semantics<arbitrary>], iteration_bounds = array<i64: 1>, scalar_prefetch = 0 : i64, scratch_operands = 0 : i64, tpu.core_type = #tpu.core_type<tc>, window_params = [{pipeline_mode = #tpu.pipeline_mode<synchronous>, transform_indices = @transform_0, window_bounds = array<i64: 512, 288>}, {pipeline_mode = #tpu.pipeline_mode<synchronous>, transform_indices = @transform_1, window_bounds = array<i64: 288, 128>}, {pipeline_mode = #tpu.pipeline_mode<synchronous>, transform_indices = @transform_2, window_bounds = array<i64: 128, 128>}, {pipeline_mode = #tpu.pipeline_mode<synchronous>, transform_indices = @transform_3, window_bounds = array<i64: 1, 128>}, {pipeline_mode = #tpu.pipeline_mode<synchronous>, transform_indices = @transform_4, window_bounds = array<i64: 1, 128>}, {pipeline_mode = #tpu.pipeline_mode<synchronous>, transform_indices = @transform_5, window_bounds = array<i64: 512, 128>}]} {
    %c0 = arith.constant 0 : index
    %c0_0 = arith.constant 0 : index
    %0 = vector.load %arg1[%c0, %c0_0] : memref<512x288xbf16, #tpu.memory_space<vmem>>, vector<512x288xbf16>
    %c0_1 = arith.constant 0 : index
    %c0_2 = arith.constant 0 : index
    %1 = vector.load %arg2[%c0_1, %c0_2] : memref<288x128xbf16, #tpu.memory_space<vmem>>, vector<288x128xbf16>
    %cst = arith.constant dense<0.000000e+00> : vector<512x128xf32>
    %2 = tpu.matmul %0, %1, %cst {dimension_numbers = #tpu.dot_dimension_numbers<[1], [0], [0], [1], [0, 0, 1, 1], [], []>} : vector<512x288xbf16>, vector<288x128xbf16>, vector<512x128xf32> -> vector<512x128xf32>
    %cst_3 = arith.constant dense<0.000000e+00> : vector<128xf32>
    %3 = vector.multi_reduction <add>, %2, %cst_3 [0] : vector<512x128xf32> to vector<128xf32>
    %4 = vector.shape_cast %3 : vector<128xf32> to vector<1x128xf32>
    %5 = arith.mulf %2, %2 : vector<512x128xf32>
    %cst_4 = arith.constant dense<0.000000e+00> : vector<128xf32>
    %6 = vector.multi_reduction <add>, %5, %cst_4 [0] : vector<512x128xf32> to vector<128xf32>
    %7 = vector.shape_cast %6 : vector<128xf32> to vector<1x128xf32>
    %c0_5 = arith.constant 0 : index
    %c0_6 = arith.constant 0 : index
    %8 = vector.load %arg3[%c0_5, %c0_6] : memref<128x128xf32, #tpu.memory_space<vmem>>, vector<128x128xf32>
    %cst_7 = arith.constant dense<0.000000e+00> : vector<1x128xf32>
    %9 = tpu.matmul %4, %8, %cst_7 {dimension_numbers = #tpu.dot_dimension_numbers<[1], [0], [0], [1], [0, 0, 1, 1], [], []>} : vector<1x128xf32>, vector<128x128xf32>, vector<1x128xf32> -> vector<1x128xf32>
    %cst_8 = arith.constant 4.8828125E-4 : f32
    %10 = vector.broadcast %cst_8 : f32 to vector<1x128xf32>
    %11 = arith.mulf %9, %10 : vector<1x128xf32>
    %c0_9 = arith.constant 0 : index
    %c0_10 = arith.constant 0 : index
    %12 = vector.load %arg3[%c0_9, %c0_10] : memref<128x128xf32, #tpu.memory_space<vmem>>, vector<128x128xf32>
    %cst_11 = arith.constant dense<0.000000e+00> : vector<1x128xf32>
    %13 = tpu.matmul %7, %12, %cst_11 {dimension_numbers = #tpu.dot_dimension_numbers<[1], [0], [0], [1], [0, 0, 1, 1], [], []>} : vector<1x128xf32>, vector<128x128xf32>, vector<1x128xf32> -> vector<1x128xf32>
    %cst_12 = arith.constant 4.8828125E-4 : f32
    %14 = vector.broadcast %cst_12 : f32 to vector<1x128xf32>
    %15 = arith.mulf %13, %14 : vector<1x128xf32>
    %16 = arith.mulf %11, %11 : vector<1x128xf32>
    %17 = arith.subf %15, %16 : vector<1x128xf32>
    %cst_13 = arith.constant 0.000000e+00 : f32
    %18 = vector.broadcast %cst_13 : f32 to vector<1x128xf32>
    %19 = arith.maximumf %17, %18 : vector<1x128xf32>
    %c0_14 = arith.constant 0 : index
    %c0_15 = arith.constant 0 : index
    %20 = vector.load %arg4[%c0_14, %c0_15] : memref<1x128xf32, #tpu.memory_space<vmem>>, vector<1x128xf32>
    %cst_16 = arith.constant 9.99999974E-6 : f32
    %21 = vector.broadcast %cst_16 : f32 to vector<1x128xf32>
    %22 = arith.addf %19, %21 : vector<1x128xf32>
    %23 = math.rsqrt %22 : vector<1x128xf32>
    %24 = arith.mulf %20, %23 : vector<1x128xf32>
    %c0_17 = arith.constant 0 : index
    %c0_18 = arith.constant 0 : index
    %25 = vector.load %arg5[%c0_17, %c0_18] : memref<1x128xf32, #tpu.memory_space<vmem>>, vector<1x128xf32>
    %26 = arith.mulf %11, %24 : vector<1x128xf32>
    %27 = arith.subf %25, %26 : vector<1x128xf32>
    %28 = vector.broadcast %24 : vector<1x128xf32> to vector<512x128xf32>
    %29 = arith.mulf %2, %28 : vector<512x128xf32>
    %30 = vector.broadcast %27 : vector<1x128xf32> to vector<512x128xf32>
    %31 = arith.addf %29, %30 : vector<512x128xf32>
    %cst_19 = arith.constant 0.000000e+00 : f32
    %32 = vector.broadcast %cst_19 : f32 to vector<512x128xf32>
    %33 = arith.maximumf %31, %32 : vector<512x128xf32>
    %34 = arith.truncf %33 : vector<512x128xf32> to vector<512x128xbf16>
    %c0_20 = arith.constant 0 : index
    %c0_21 = arith.constant 0 : index
    %35 = vector.load %arg6[%c0_20, %c0_21] : memref<512x128xbf16, #tpu.memory_space<vmem>>, vector<512x128xbf16>
    tpu.vector_store %arg6[%c0_20, %c0_21], %34 {strides = array<i32>} : memref<512x128xbf16, #tpu.memory_space<vmem>>, vector<512x128xbf16>,
    return
  }
  func.func @transform_0(%arg0: i32) -> (i32, i32) {
    %c0_i32 = arith.constant 0 : i32
    %c0_i32_0 = arith.constant 0 : i32
    %c0_i32_1 = arith.constant 0 : i32
    return %c0_i32, %c0_i32_0 : i32, i32
  }
  func.func @transform_1(%arg0: i32) -> (i32, i32) {
    %c0_i32 = arith.constant 0 : i32
    %c0_i32_0 = arith.constant 0 : i32
    %c0_i32_1 = arith.constant 0 : i32
    return %c0_i32, %c0_i32_0 : i32, i32
  }
  func.func @transform_2(%arg0: i32) -> (i32, i32) {
    %c0_i32 = arith.constant 0 : i32
    %c0_i32_0 = arith.constant 0 : i32
    %c0_i32_1 = arith.constant 0 : i32
    return %c0_i32, %c0_i32_0 : i32, i32
  }
  func.func @transform_3(%arg0: i32) -> (i32, i32) {
    %c0_i32 = arith.constant 0 : i32
    %c0_i32_0 = arith.constant 0 : i32
    %c0_i32_1 = arith.constant 0 : i32
    return %c0_i32, %c0_i32_0 : i32, i32
  }
  func.func @transform_4(%arg0: i32) -> (i32, i32) {
    %c0_i32 = arith.constant 0 : i32
    %c0_i32_0 = arith.constant 0 : i32
    %c0_i32_1 = arith.constant 0 : i32
    return %c0_i32, %c0_i32_0 : i32, i32
  }
  func.func @transform_5(%arg0: i32) -> (i32, i32) {
    %c0_i32 = arith.constant 0 : i32
    %c0_i32_0 = arith.constant 0 : i32
    %c0_i32_1 = arith.constant 0 : i32
    return %c0_i32, %c0_i32_0 : i32, i32
  }
}

module attributes {stable_mosaic.version = 11 : i64} {
  func.func @_gemm_bias_tanh_kernel(%arg0: i32, %arg1: memref<512x144xbf16, #tpu.memory_space<vmem>>, %arg2: memref<144x128xbf16, #tpu.memory_space<vmem>>, %arg3: memref<1x128xf32, #tpu.memory_space<vmem>>, %arg4: memref<512x128xf32, #tpu.memory_space<vmem>>) attributes {dimension_semantics = [#tpu.dimension_semantics<parallel>], iteration_bounds = array<i64: 4>, scalar_prefetch = 0 : i64, scratch_operands = 0 : i64, tpu.core_type = #tpu.core_type<tc>, window_params = [{transform_indices = @transform_0, window_bounds = array<i64: 512, 144>}, {pipeline_mode = #tpu.pipeline_mode<synchronous>, transform_indices = @transform_1, window_bounds = array<i64: 144, 128>}, {pipeline_mode = #tpu.pipeline_mode<synchronous>, transform_indices = @transform_2, window_bounds = array<i64: 1, 128>}, {transform_indices = @transform_3, window_bounds = array<i64: 512, 128>}]} {
    %c0 = arith.constant 0 : index
    %c0_0 = arith.constant 0 : index
    %0 = vector.load %arg1[%c0, %c0_0] : memref<512x144xbf16, #tpu.memory_space<vmem>>, vector<512x144xbf16>
    %c0_1 = arith.constant 0 : index
    %c0_2 = arith.constant 0 : index
    %1 = vector.load %arg2[%c0_1, %c0_2] : memref<144x128xbf16, #tpu.memory_space<vmem>>, vector<144x128xbf16>
    %cst = arith.constant dense<0.000000e+00> : vector<512x128xf32>
    %2 = tpu.matmul %0, %1, %cst {dimension_numbers = #tpu.dot_dimension_numbers<[1], [0], [0], [1], [0, 0, 1, 1], [], []>} : vector<512x144xbf16>, vector<144x128xbf16>, vector<512x128xf32> -> vector<512x128xf32>
    %c0_3 = arith.constant 0 : index
    %c0_4 = arith.constant 0 : index
    %3 = vector.load %arg3[%c0_3, %c0_4] : memref<1x128xf32, #tpu.memory_space<vmem>>, vector<1x128xf32>
    %4 = vector.broadcast %3 : vector<1x128xf32> to vector<512x128xf32>
    %5 = arith.addf %2, %4 : vector<512x128xf32>
    %6 = math.tanh %5 : vector<512x128xf32>
    %c0_5 = arith.constant 0 : index
    %c0_6 = arith.constant 0 : index
    %7 = vector.load %arg4[%c0_5, %c0_6] : memref<512x128xf32, #tpu.memory_space<vmem>>, vector<512x128xf32>
    tpu.vector_store %arg4[%c0_5, %c0_6], %6 {strides = array<i32>} : memref<512x128xf32, #tpu.memory_space<vmem>>, vector<512x128xf32>,
    return
  }
  func.func @transform_0(%arg0: i32) -> (i32, i32) {
    %c0_i32 = arith.constant 0 : i32
    %c0_i32_0 = arith.constant 0 : i32
    return %arg0, %c0_i32 : i32, i32
  }
  func.func @transform_1(%arg0: i32) -> (i32, i32) {
    %c0_i32 = arith.constant 0 : i32
    %c0_i32_0 = arith.constant 0 : i32
    %c0_i32_1 = arith.constant 0 : i32
    return %c0_i32, %c0_i32_0 : i32, i32
  }
  func.func @transform_2(%arg0: i32) -> (i32, i32) {
    %c0_i32 = arith.constant 0 : i32
    %c0_i32_0 = arith.constant 0 : i32
    %c0_i32_1 = arith.constant 0 : i32
    return %c0_i32, %c0_i32_0 : i32, i32
  }
  func.func @transform_3(%arg0: i32) -> (i32, i32) {
    %c0_i32 = arith.constant 0 : i32
    %c0_i32_0 = arith.constant 0 : i32
    return %arg0, %c0_i32 : i32, i32
  }
}

</mosaic_0001>

<bundles_post_ra>
// kernel: generator_forward.5
= control target key start
LH: loop header
LB: loop body
LE: loop exit
PB: predicated region body
PF: predicated region fallthrough
CT: control target
= control target key end

     0   :  { %10 = vsyncpa [#allocation3], 0  ;;  %s1268_s0 = inlined_call_operand.vmem [shape: bf16[32,512], index: 0, kind: input, shape index: {}]   ;;  %s1269_s1 = inlined_call_operand.hbm [shape: bf16[512,128], index: 1, kind: input, shape index: {}]   ;;  %s1270_s2 = inlined_call_operand.hbm [shape: f32[128,128], index: 2, kind: input, shape index: {}]   ;;  %s1271_s3 = inlined_call_operand.hbm [shape: f32[1,128], index: 3, kind: input, shape index: {}]   ;;  %s1272_s4 = inlined_call_operand.hbm [shape: f32[1,128], index: 4, kind: input, shape index: {}]   ;;  %s1273_s5 = inlined_call_operand.vmem [shape: bf16[32,128], index: 5, kind: output, shape index: {}]  }
   0x1   :  { %11 = vsyncpa [#allocation5], 0 }
   0x2   :  { %12 = vsyncpa [#allocation8], 0  ;;  %s1133_s18 = smov [#allocation4]   ;;  %s1039_s22 = scalar_lea.hbm %s1270_s2, 2048 }
   0x3   :  { %s32_s19 = sshll.u32 %s1133_s18, 4  ;;  %p1040_p0 = scmp.ne.s32.totalorder %s1270_s2, %s1039_s22  ;;  %s33_s19 = int_to_ptr.vmem [resolvable:$true] %s32_s19 }
   0x4   :  { %p1043_p1 = scmp.lt.u32.totalorder %s1039_s22, %s1270_s2 }
   0x6   :  { %p1045_p2 = pnand %p1043_p1, %p1040_p0 }
   0x8   :  { %1048 = shalt.err (!%p1045_p2)
}
   0x9   :  { %s1049_s27 = scalar_lea.vmem %s33_s19, 2048  ;;  %p1054_p4 = scmp.lt.s32.totalorder %s33_s19, %s33_s19 }
   0xa   :  { %p1050_p3 = scmp.ne.s32.totalorder %s33_s19, %s1049_s27  ;;  %p1055_p5 = scmp.lt.s32.totalorder %s1049_s27, %s1049_s27 }
   0xc   :  { %p1056_p6 = por %p1055_p5, %p1054_p4 }
   0xe   :  { %p1057_p7 = pnand %p1056_p6, %p1050_p3 }
  0x10   :  { %1060 = shalt.err (!%p1057_p7)
}
  0x11   :  { %s1134_s28 = smov 128   ;;  %s1135_s29 = smov 8  }
  0x12   :  { %38 = dma.hbm_to_vmem [thread:$0]  %s1270_s2, 2048, %s33_s19, [#allocation5], %s1134_s28, %s1134_s28, %s1135_s29  }
  0x13   :  { %s1136_s7 = smov [#allocation2]   ;;  %s1061_s11 = scalar_lea.hbm %s1269_s1, 4096 }
  0x14   :  { %s20_s8 = sshll.u32 %s1136_s7, 4  ;;  %p1062_p8 = scmp.ne.s32.totalorder %s1269_s1, %s1061_s11  ;;  %s21_s8 = int_to_ptr.vmem [resolvable:$true] %s20_s8 }
  0x15   :  { %p1065_p9 = scmp.lt.u32.totalorder %s1061_s11, %s1269_s1 }
  0x17   :  { %p1067_p10 = pnand %p1065_p9, %p1062_p8 }
  0x19   :  { %1070 = shalt.err (!%p1067_p10)
}
  0x1a   :  { %s1071_s16 = scalar_lea.vmem %s21_s8, 4096  ;;  %p1076_p12 = scmp.lt.s32.totalorder %s21_s8, %s21_s8 }
  0x1b   :  { %p1072_p11 = scmp.ne.s32.totalorder %s21_s8, %s1071_s16  ;;  %p1077_p13 = scmp.lt.s32.totalorder %s1071_s16, %s1071_s16 }
  0x1d   :  { %p1078_p0 = por %p1077_p13, %p1076_p12 }
  0x1f   :  { %p1079_p1 = pnand %p1078_p0, %p1072_p11 }
  0x21   :  { %1082 = shalt.err (!%p1079_p1)
}
  0x22   :  { %s1137_s2 = smov 64   ;;  %s1138_s17 = smov 4  }
  0x23   :  { %26 = dma.hbm_to_vmem [thread:$0]  %s1269_s1, 4096, %s21_s8, [#allocation3], %s1137_s2, %s1137_s2, %s1138_s17  }
  0x24   :  { %s1139_s20 = smov [#allocation6]   ;;  %s1140_s22 = smov [#allocation7]  }
  0x25   :  { %s45_s21 = sshll.u32 %s1139_s20, 4  ;;  %s55_s23 = sshll.u32 %s1140_s22, 4  ;;  %s46_s21 = int_to_ptr.vmem [resolvable:$true] %s45_s21  ;;  %s56_s23 = int_to_ptr.vmem [resolvable:$true] %s55_s23 }
  0x26   :  { %s1083_s26 = scalar_lea.hbm %s1271_s3, 16 }
  0x27   :  { %p1084_p2 = scmp.ne.s32.totalorder %s1271_s3, %s1083_s26  ;;  %p1087_p3 = scmp.lt.u32.totalorder %s1083_s26, %s1271_s3 }
  0x29   :  { %p1089_p4 = pnand %p1087_p3, %p1084_p2 }
  0x2b   :  { %1092 = shalt.err (!%p1089_p4)
}
  0x2c   :  { %s1093_s1 = scalar_lea.vmem %s46_s21, 16  ;;  %s1097_s6 = scalar_lea.vmem %s46_s21, 32 }
  0x2d   :  { %p1094_p5 = scmp.ne.s32.totalorder %s46_s21, %s1093_s1  ;;  %p1098_p6 = scmp.lt.s32.totalorder %s46_s21, %s46_s21 }
  0x2e   :  { %p1099_p7 = scmp.lt.s32.totalorder %s1097_s6, %s1093_s1 }
  0x30   :  { %p1100_p8 = por %p1099_p7, %p1098_p6 }
  0x32   :  { %p1101_p9 = pnand %p1100_p8, %p1094_p5 }
  0x34   :  { %1104 = shalt.err (!%p1101_p9)
}
  0x35   :  { %48 = dma.hbm_to_vmem [thread:$0]  %s1271_s3, 16, %s46_s21, [#allocation5]  }
  0x36   :  { %s1105_s11 = scalar_lea.hbm %s1272_s4, 16 }
  0x37   :  { %p1106_p10 = scmp.ne.s32.totalorder %s1272_s4, %s1105_s11  ;;  %p1109_p11 = scmp.lt.u32.totalorder %s1105_s11, %s1272_s4 }
  0x39   :  { %p1111_p12 = pnand %p1109_p11, %p1106_p10 }
  0x3b   :  { %1114 = shalt.err (!%p1111_p12)
}
  0x3c   :  { %s1115_s16 = scalar_lea.vmem %s56_s23, 16  ;;  %s1119_s2 = scalar_lea.vmem %s56_s23, 32 }
  0x3d   :  { %p1116_p13 = scmp.ne.s32.totalorder %s56_s23, %s1115_s16  ;;  %p1120_p0 = scmp.lt.s32.totalorder %s56_s23, %s56_s23 }
  0x3e   :  { %p1121_p1 = scmp.lt.s32.totalorder %s1119_s2, %s1115_s16 }
  0x40   :  { %p1122_p2 = por %p1121_p1, %p1120_p0 }
  0x42   :  { %p1123_p3 = pnand %p1122_p2, %p1116_p13 }
  0x44   :  { %1126 = shalt.err (!%p1123_p3)
}
  0x45   :  { %58 = dma.hbm_to_vmem [thread:$0]  %s1272_s4, 16, %s56_s23, [#allocation8]  }
  0x46   :  { %1127 = dma.done.wait [#allocation3], 4096  }
  0x47   :  { %1128 = vsyncadd [#allocation3], 4294963200 }
  0x48   :  { %1129 = dma.done.wait [#allocation5], 2064  }
  0x49   :  { %1130 = vsyncadd [#allocation5], 4294965232 }
  0x4a   :  { %1131 = dma.done.wait [#allocation8], 16  }
  0x4b   :  { %1132 = vsyncadd [#allocation8], 4294967280  ;;  %v993_v0 = vld [vmem:[#allocation2 + $0x40] sm:$0xff]   ;;  %v997_v4 = vld [vmem:[#allocation2 + $0x48] sm:$0xff]   ;;  %v1141_v34 = vmov 0.0|0.0   ;;  %vm1142_vm0 = vmmov 0  }
  0x4c   :  { %v994_v1 = vld [vmem:[#allocation2 + $0xc0] sm:$0xff]   ;;  %774 = vmatprep.subr.bf16.mxu0 %v993_v0  ;;  %v998_v5 = vld [vmem:[#allocation2 + $0xc8] sm:$0xff]   ;;  %v1001_v8 = vld [vmem:[#allocation2 + $0x50] sm:$0xff]  }
  0x4d   :  { %v995_v2 = vld [vmem:[#allocation2] sm:$0xff]   ;;  %802 = vmatprep.subr.bf16.mxu1 %v994_v1  ;;  %v999_v6 = vld [vmem:[#allocation2 + $0x8] sm:$0xff]   ;;  %v1002_v9 = vld [vmem:[#allocation2 + $0xd0] sm:$0xff]   ;;  %v1143_v1 = vmov 0.0  }
  0x4e   :  { %v996_v3 = vld [vmem:[#allocation2 + $0x80] sm:$0xff]   ;;  %775 = vmatpush3.bf16.msra.mxu0 %v995_v2  ;;  %v1000_v7 = vld [vmem:[#allocation2 + $0x88] sm:$0xff]   ;;  %v1003_v10 = vld [vmem:[#allocation2 + $0x10] sm:$0xff]  }
  0x4f   :  { %803 = vmatpush3.bf16.msra.mxu1 %v996_v3  ;;  %776 = vmatprep.subr.bf16.mxu0 %v997_v4  ;;  %v1004_v11 = vld [vmem:[#allocation2 + $0x90] sm:$0xff]   ;;  %v1005_v12 = vld [vmem:[#allocation2 + $0x58] sm:$0xff]   ;;  %v1009_v16 = vld [vmem:[#allocation2 + $0x60] sm:$0xff]  }
  0x50   :  { %804 = vmatprep.subr.bf16.mxu1 %v998_v5  ;;  %v1006_v13 = vld [vmem:[#allocation2 + $0xd8] sm:$0xff]   ;;  %v1010_v17 = vld [vmem:[#allocation2 + $0xe0] sm:$0xff]   ;;  %v1013_v20 = vld [vmem:[#allocation2 + $0x68] sm:$0xff]  }
  0x51   :  { %v1007_v14 = vld [vmem:[#allocation2 + $0x18] sm:$0xff]   ;;  %v1011_v18 = vld [vmem:[#allocation2 + $0x20] sm:$0xff]   ;;  %v1014_v21 = vld [vmem:[#allocation2 + $0xe8] sm:$0xff]  }
  0x52   :  { %777 = vmatpush3.bf16.msra.mxu0 %v999_v6  ;;  %v1008_v15 = vld [vmem:[#allocation2 + $0x98] sm:$0xff]   ;;  %v1012_v19 = vld [vmem:[#allocation2 + $0xa0] sm:$0xff]   ;;  %v1015_v22 = vld [vmem:[#allocation2 + $0x28] sm:$0xff]  }
  0x53   :  { %805 = vmatpush3.bf16.msra.mxu1 %v1000_v7  ;;  %778 = vmatprep.subr.bf16.mxu0 %v1001_v8  ;;  %v1016_v23 = vld [vmem:[#allocation2 + $0xa8] sm:$0xff]   ;;  %v1017_v24 = vld [vmem:[#allocation2 + $0x70] sm:$0xff]   ;;  %v1021_v28 = vld [vmem:[#allocation2 + $0x78] sm:$0xff]  }
  0x54   :  { %806 = vmatprep.subr.bf16.mxu1 %v1002_v9  ;;  %v1018_v25 = vld [vmem:[#allocation2 + $0xf0] sm:$0xff]   ;;  %v1022_v29 = vld [vmem:[#allocation2 + $0xf8] sm:$0xff]   ;;  %v496_v39 = vld [vmem:[#allocation4] sm:$0xff] }
  0x55   :  { %v1019_v26 = vld [vmem:[#allocation2 + $0x30] sm:$0xff]   ;;  %v1023_v30 = vld [vmem:[#allocation2 + $0x38] sm:$0xff]   ;;  %v497_v40 = vld [vmem:[#allocation4 + $0x8] sm:$0xff] }
  0x56   :  { %779 = vmatpush3.bf16.msra.mxu0 %v1003_v10  ;;  %v1020_v27 = vld [vmem:[#allocation2 + $0xb0] sm:$0xff]   ;;  %v1024_v31 = vld [vmem:[#allocation2 + $0xb8] sm:$0xff]   ;;  %v935_v41 = vpack.c.bf16 %v497_v40, %v496_v39  ;;  %v500_v47 = vld [vmem:[#allocation4 + $0x20] sm:$0xff] }
  0x57   :  { %807 = vmatpush3.bf16.msra.mxu1 %v1004_v11  ;;  %780 = vmatprep.subr.bf16.mxu0 %v1005_v12  ;;  %v1025_v32 = vld [vmem:[%s1268_s0] ss:$16 sps:$4 sm:$0xff]   ;;  %v1027_v33 = vld [vmem:[%s1268_s0 + $0x4] ss:$16 sps:$4 sm:$0xff]   ;;  %v1028_v35 = vld [vmem:[%s1268_s0 + $0x8] ss:$16 sps:$4 sm:$0xff]  }
  0x58   :  { %808 = vmatprep.subr.bf16.mxu1 %v1006_v13  ;;  %v1030_v36 = vld [vmem:[%s1268_s0 + $0xc] ss:$16 sps:$4 sm:$0xff]   ;;  %408 = vmatprep.mubr.bf16.mxu0 %v1027_v33  ;;  %v1031_v37 = vld [vmem:[%s1268_s0 + $0x24] ss:$16 sps:$4 sm:$0xff]   ;;  %v1035_v42 = vld [vmem:[%s1268_s0 + $0x20] ss:$16 sps:$4 sm:$0xff]  }
  0x59   :  { %457 = vmatprep.mubr.bf16.mxu1 %v1030_v36  ;;  %v1033_v38 = vld [vmem:[%s1268_s0 + $0x2c] ss:$16 sps:$4 sm:$0xff]   ;;  %v1036_v43 = vld [vmem:[%s1268_s0 + $0x28] ss:$16 sps:$4 sm:$0xff]   ;;  %v498_v44 = vld [vmem:[#allocation4 + $0x10] sm:$0xff] }
  0x5a   :  { %781 = vmatpush3.bf16.msra.mxu0 %v1007_v14  ;;  %v499_v45 = vld [vmem:[#allocation4 + $0x18] sm:$0xff]  ;;  %v501_v48 = vld [vmem:[#allocation4 + $0x28] sm:$0xff]  ;;  %v502_v50 = vld [vmem:[#allocation4 + $0x30] sm:$0xff] }
  0x5b   :  { %809 = vmatpush3.bf16.msra.mxu1 %v1008_v15  ;;  %782 = vmatprep.subr.bf16.mxu0 %v1009_v16  ;;  %v938_v46 = vpack.c.bf16 %v499_v45, %v498_v44  ;;  %v941_v49 = vpack.c.bf16 %v501_v48, %v500_v47  ;;  %v503_v51 = vld [vmem:[#allocation4 + $0x38] sm:$0xff]  ;;  %v504_v53 = vld [vmem:[#allocation4 + $0x40] sm:$0xff]  ;;  %v505_v54 = vld [vmem:[#allocation4 + $0x48] sm:$0xff] }
  0x5c   :  { %810 = vmatprep.subr.bf16.mxu1 %v1010_v17  ;;  %v944_v52 = vpack.c.bf16 %v503_v51, %v502_v50  ;;  %v947_v55 = vpack.c.bf16 %v505_v54, %v504_v53  ;;  %v506_v56 = vld [vmem:[#allocation4 + $0x50] sm:$0xff]  ;;  %v507_v57 = vld [vmem:[#allocation4 + $0x58] sm:$0xff]  ;;  %v508_v59 = vld [vmem:[#allocation4 + $0x60] sm:$0xff] }
  0x5d   :  { %v950_v58 = vpack.c.bf16 %v507_v57, %v506_v56  ;;  %v509_v60 = vld [vmem:[#allocation4 + $0x68] sm:$0xff]  ;;  %v510_v62 = vld [vmem:[#allocation4 + $0x70] sm:$0xff]  ;;  %v511_v63 = vld [vmem:[#allocation4 + $0x78] sm:$0xff] }
  0x5e   :  { %783 = vmatpush3.bf16.msra.mxu0 %v1011_v18  ;;  %v953_v61 = vpack.c.bf16 %v509_v60, %v508_v59  ;;  %v956_v0 = vpack.c.bf16 %v511_v63, %v510_v62  ;;  %v665_v62 = vlaneseq }
  0x5f   :  { %811 = vmatpush3.bf16.msra.mxu1 %v1012_v19  ;;  %784 = vmatprep.subr.bf16.mxu0 %v1013_v20 }
  0x60   :  { %812 = vmatprep.subr.bf16.mxu1 %v1014_v21  ;;  %v666_v63 = vshrl.u32 %v665_v62, 7 }
  0x62   :  { %785 = vmatpush3.bf16.msra.mxu0 %v1015_v22 }
  0x63   :  { %813 = vmatpush3.bf16.msra.mxu1 %v1016_v23  ;;  %786 = vmatprep.subr.bf16.mxu0 %v1017_v24 }
  0x64   :  { %814 = vmatprep.subr.bf16.mxu1 %v1018_v25 }
  0x66   :  { %787 = vmatpush3.bf16.msra.mxu0 %v1019_v26 }
  0x67   :  { %815 = vmatpush3.bf16.msra.mxu1 %v1020_v27  ;;  %788 = vmatprep.subr.bf16.mxu0 %v1021_v28 }
  0x68   :  { %816 = vmatprep.subr.bf16.mxu1 %v1022_v29 }
  0x6a   :  { %789 = vmatpush3.bf16.msra.mxu0 %v1023_v30 }
  0x6b   :  { %817 = vmatpush3.bf16.msra.mxu1 %v1024_v31  ;;  %934 = vmatprep.subr.bf16.mxu0 %v1141_v34 }
  0x6c   :  { %958 = vmatprep.subr.bf16.mxu1 %v1141_v34 }
  0x6d   :  { %409 = vmatmul.mubr.bf16.vlgmr.msra.gmra.mrb[0].mxu0 %v1025_v32 }
  0x6e   :  { %458 = vmatmul.mubr.bf16.vlgmr.msra.gmra.mrb[0].mxu1 %v1028_v35  ;;  %416 = vmatprep.mubr.bf16.mxu0 %v1031_v37 }
  0x6f   :  { %465 = vmatprep.mubr.bf16.mxu1 %v1033_v38  ;;  %936 = vmatpush3.bf16.msra.mxu0 %v935_v41 }
  0x70   :  { %960 = vmatpush3.bf16.msra.mxu1 %v935_v41  ;;  %937 = vmatprep.subr.bf16.mxu0 %v1141_v34 }
  0x71   :  { %961 = vmatprep.subr.bf16.mxu1 %v1141_v34 }
  0x73   :  { %939 = vmatpush3.bf16.msra.mxu0 %v938_v46 }
  0x74   :  { %963 = vmatpush3.bf16.msra.mxu1 %v938_v46  ;;  %940 = vmatprep.subr.bf16.mxu0 %v1141_v34 }
  0x75   :  { %417 = vmatmul.mubr.bf16.gmra.mrb[4].mxu0 %v1035_v42  ;;  %964 = vmatprep.subr.bf16.mxu1 %v1141_v34 }
  0x76   :  { %466 = vmatmul.mubr.bf16.gmra.mrb[4].mxu1 %v1036_v43  ;;  %896 = vmatprep.mubr.msk.f32.mxu0 %vm1142_vm0, %v1143_v1 }
  0x77   :  { %942 = vmatpush3.bf16.msra.mxu0 %v941_v49  ;;  %931 = vmatprep.mubr.msk.f32.mxu1 %vm1142_vm0, %v1143_v1  ;;  %v667_v1 = vsub.s32 0, %v666_v63 }
  0x78   :  { %966 = vmatpush3.bf16.msra.mxu1 %v941_v49  ;;  %943 = vmatprep.subr.bf16.mxu0 %v1141_v34 }
  0x79   :  { %967 = vmatprep.subr.bf16.mxu1 %v1141_v34 }
  0x7b   :  { %945 = vmatpush3.bf16.msra.mxu0 %v944_v52 }
  0x7c   :  { %969 = vmatpush3.bf16.msra.mxu1 %v944_v52  ;;  %946 = vmatprep.subr.bf16.mxu0 %v1141_v34 }
  0x7d   :  { %970 = vmatprep.subr.bf16.mxu1 %v1141_v34 }
  0x7f   :  { %948 = vmatpush3.bf16.msra.mxu0 %v947_v55 }
  0x80   :  { %972 = vmatpush3.bf16.msra.mxu1 %v947_v55  ;;  %949 = vmatprep.subr.bf16.mxu0 %v1141_v34 }
  0x81   :  { %973 = vmatprep.subr.bf16.mxu1 %v1141_v34 }
  0x83   :  { %951 = vmatpush3.bf16.msra.mxu0 %v950_v58 }
  0x84   :  { %975 = vmatpush3.bf16.msra.mxu1 %v950_v58  ;;  %952 = vmatprep.subr.bf16.mxu0 %v1141_v34 }
  0x85   :  { %976 = vmatprep.subr.bf16.mxu1 %v1141_v34 }
  0x87   :  { %954 = vmatpush3.bf16.msra.mxu0 %v953_v61 }
  0x88   :  { %978 = vmatpush3.bf16.msra.mxu1 %v953_v61  ;;  %955 = vmatprep.subr.bf16.mxu0 %v1141_v34 }
  0x89   :  { %979 = vmatprep.subr.bf16.mxu1 %v1141_v34 }
  0x8b   :  { %957 = vmatpush3.bf16.msra.mxu0 %v956_v0 }
  0x8c   :  { %981 = vmatpush3.bf16.msra.mxu1 %v956_v0  ;;  %v657_v0 = vld [vmem:[#allocation6] sm:$0x1] }
 0x140   :  { %v790_v2 = vpop.f32.mrb[0].mxu0 }
 0x141   :  { %v818_v3 = vpop.f32.mrb[0].mxu1  ;;  %v791_v4 = vpop.f32.mrb[1].mxu0 }
 0x142   :  { %v792_v5 = vadd.f32 %v791_v4, %v790_v2  ;;  %v819_v6 = vpop.f32.mrb[1].mxu1  ;;  %v793_v7 = vpop.f32.mrb[2].mxu0  ;;  %v661_v4 = vld [vmem:[#allocation7] sm:$0x1] }
 0x143   :  { %v820_v8 = vadd.f32 %v819_v6, %v818_v3  ;;  %v821_v9 = vpop.f32.mrb[2].mxu1  ;;  %v794_v10 = vpop.f32.mrb[3].mxu0 }
 0x144   :  { %v795_v11 = vadd.f32 %v794_v10, %v793_v7  ;;  %v822_v12 = vpop.f32.mrb[3].mxu1 }
 0x145   :  { %v460_v13 = vadd.f32 %v820_v8, %v792_v5  ;;  %v823_v14 = vadd.f32 %v822_v12, %v821_v9 }
 0x147   :  { %v463_v15 = vadd.f32 %v823_v14, %v795_v11  ;;  %v483_v28 = vmul.f32 %v460_v13, %v460_v13 }
 0x148   :  { %v796_v16 = vpop.f32.mrb[4].mxu0 }
 0x149   :  { %v824_v17 = vpop.f32.mrb[4].mxu1  ;;  %v797_v18 = vpop.f32.mrb[5].mxu0  ;;  %v484_v22 = vmul.f32 %v463_v15, %v463_v15  ;;  %v474_v29 = vadd.f32 %v463_v15, %v460_v13 }
 0x14a   :  { %v798_v19 = vadd.f32 %v797_v18, %v796_v16  ;;  %v825_v20 = vpop.f32.mrb[5].mxu1  ;;  %v799_v21 = vpop.f32.mrb[6].mxu0 }
 0x14b   :  { %v826_v23 = vadd.f32 %v825_v20, %v824_v17  ;;  %v827_v24 = vpop.f32.mrb[6].mxu1  ;;  %v800_v25 = vpop.f32.mrb[7].mxu0  ;;  %v487_v32 = vadd.f32 %v484_v22, %v483_v28 }
 0x14c   :  { %v801_v26 = vadd.f32 %v800_v25, %v799_v21  ;;  %v828_v27 = vpop.f32.mrb[7].mxu1 }
 0x14d   :  { %v468_v30 = vadd.f32 %v826_v23, %v798_v19  ;;  %v829_v31 = vadd.f32 %v828_v27, %v827_v24 }
 0x14f   :  { %v475_v33 = vadd.f32 %v474_v29, %v468_v30  ;;  %v485_v34 = vmul.f32 %v468_v30, %v468_v30  ;;  %v471_v35 = vadd.f32 %v829_v31, %v801_v26 }
 0x151   :  { %v488_v36 = vadd.f32 %v487_v32, %v485_v34  ;;  %v476_v37 = vadd.f32 %v475_v33, %v471_v35  ;;  %v486_v38 = vmul.f32 %v471_v35, %v471_v35 }
 0x153   :  { %v477_v39 = vrot.slane %v476_v37, 4  ;;  %v489_v40 = vadd.f32 %v488_v36, %v486_v38 }
 0x155   :  { %v478_v41 = vadd.f32 %v477_v39, %v476_v37  ;;  %v490_v42 = vrot.slane %v489_v40, 4 }
 0x157   :  { %v479_v43 = vrot.slane %v478_v41, 2  ;;  %v491_v44 = vadd.f32 %v490_v42, %v489_v40 }
 0x159   :  { %v480_v45 = vadd.f32 %v479_v43, %v478_v41  ;;  %v492_v46 = vrot.slane %v491_v44, 2 }
 0x15b   :  { %v481_v47 = vrot.slane %v480_v45, 1  ;;  %v493_v48 = vadd.f32 %v492_v46, %v491_v44 }
 0x15d   :  { %v482_v49 = vadd.f32 %v481_v47, %v480_v45  ;;  %v494_v50 = vrot.slane %v493_v48, 1 }
 0x15f   :  { %897 = vmatmul.mubr.f32.vlgmr.msra.gmra.mrb[8].mxu0 %v482_v49  ;;  %v495_v51 = vadd.f32 %v494_v50, %v493_v48 }
 0x161   :  { %932 = vmatmul.mubr.f32.vlgmr.msra.gmra.mrb[8].mxu1 %v495_v51 }
 0x232   :  { %v578_v52 = vpop.f32.mrb[8].mxu0 }
 0x233   :  { %v582_v53 = vmul.f32 0.03125, %v578_v52  ;;  %v898_v54 = vpop.f32.mrb[9].mxu0 }
 0x234   :  { %v649_v55 = vpop.f32.mrb[8].mxu1 }
 0x235   :  { %v654_v56 = vmul.f32 %v582_v53, %v582_v53  ;;  %v653_v57 = vmul.f32 0.03125, %v649_v55  ;;  %v933_v58 = vpop.f32.mrb[9].mxu1 }
 0x237   :  { %v655_v59 = vsub.f32 %v653_v57, %v654_v56 }
 0x239   :  { %v656_v60 = vmax.f32 %v655_v59, 0.0 }
 0x23b   :  { %v658_v61 = vadd.f32 1e-05, %v656_v60 }
 0x23d   :  { %1037 = vrsqrt.f32 %v658_v61 }
 0x247   :  { %v1038_v2 = vpop.eup %1037 }
 0x248   :  { %v660_v3 = vmul.f32 %v1038_v2, %v657_v0 }
 0x24a   :  { %v662_v5 = vmul.f32 %v660_v3, %v582_v53  ;;  %v668_v6 = vrot.slane %v660_v3, %v667_v1 }
 0x24c   :  { %v663_v7 = vsub.f32 %v661_v4, %v662_v5  ;;  %v670_v8 = vmul.f32 %v668_v6, %v460_v13  ;;  %v671_v9 = vmul.f32 %v668_v6, %v463_v15  ;;  %v672_v10 = vmul.f32 %v668_v6, %v468_v30 }
 0x24d   :  { %v673_v11 = vmul.f32 %v668_v6, %v471_v35 }
 0x24e   :  { %v678_v12 = vrot.slane %v663_v7, %v667_v1 }
 0x250   :  { %v680_v14 = vadd.f32 %v678_v12, %v670_v8  ;;  %v681_v16 = vadd.f32 %v678_v12, %v671_v9  ;;  %v682_v17 = vadd.f32 %v678_v12, %v672_v10  ;;  %v683_v18 = vadd.f32 %v678_v12, %v673_v11 }
 0x252   :  { %v684_v19 = vmax.f32 %v680_v14, 0.0  ;;  %v685_v20 = vmax.f32 %v681_v16, 0.0  ;;  %v686_v21 = vmax.f32 %v682_v17, 0.0  ;;  %v687_v22 = vmax.f32 %v683_v18, 0.0 }
 0x254   :  { %v766_v23 = vpack.c.bf16 %v685_v20, %v684_v19  ;;  %v771_v24 = vpack.c.bf16 %v687_v22, %v686_v21 }
 0x256   :  { %767 = vst [vmem:[%s1273_s5] sm:$0xff] %v766_v23   ;;  %773 = vst [vmem:[%s1273_s5 + $0x8] sm:$0xff] %v771_v24  }
 0x257   :  { %712 = vsyncpa [#allocation3], 1 }
 0x258   :  { %713 = vsyncpa [#allocation5], 1 }
 0x259   :  { %714 = vsyncpa [#allocation8], 1 }

// kernel: generator_forward.6
= control target key start
LH: loop header
LB: loop body
LE: loop exit
PB: predicated region body
PF: predicated region fallthrough
CT: control target
= control target key end

     0   :  { %10 = vsyncpa [#allocation3], 0  ;;  %s2710_s0 = inlined_call_operand.vmem [shape: bf16[32,1152], index: 0, kind: input, shape index: {}]   ;;  %s2711_s1 = inlined_call_operand.hbm [shape: bf16[1152,256], index: 1, kind: input, shape index: {}]   ;;  %s2712_s2 = inlined_call_operand.hbm [shape: f32[256,256], index: 2, kind: input, shape index: {}]   ;;  %s2713_s3 = inlined_call_operand.hbm [shape: f32[1,256], index: 3, kind: input, shape index: {}]   ;;  %s2714_s4 = inlined_call_operand.hbm [shape: f32[1,256], index: 4, kind: input, shape index: {}]   ;;  %s2715_s5 = inlined_call_operand.vmem [shape: bf16[32,256], index: 5, kind: output, shape index: {}]  }
   0x1   :  { %11 = vsyncpa [#allocation5], 0 }
   0x2   :  { %12 = vsyncpa [#allocation8], 0  ;;  %s2380_s18 = smov [#allocation4]   ;;  %s2286_s22 = scalar_lea.hbm %s2712_s2, 8192 }
   0x3   :  { %s32_s19 = sshll.u32 %s2380_s18, 4  ;;  %p2287_p0 = scmp.ne.s32.totalorder %s2712_s2, %s2286_s22  ;;  %s33_s19 = int_to_ptr.vmem [resolvable:$true] %s32_s19 }
   0x4   :  { %p2290_p1 = scmp.lt.u32.totalorder %s2286_s22, %s2712_s2 }
   0x6   :  { %p2292_p2 = pnand %p2290_p1, %p2287_p0 }
   0x8   :  { %2295 = shalt.err (!%p2292_p2)
}
   0x9   :  { %s2296_s27 = scalar_lea.vmem %s33_s19, 8192  ;;  %p2301_p4 = scmp.lt.s32.totalorder %s33_s19, %s33_s19 }
   0xa   :  { %p2297_p3 = scmp.ne.s32.totalorder %s33_s19, %s2296_s27  ;;  %p2302_p5 = scmp.lt.s32.totalorder %s2296_s27, %s2296_s27 }
   0xc   :  { %p2303_p6 = por %p2302_p5, %p2301_p4 }
   0xe   :  { %p2304_p7 = pnand %p2303_p6, %p2297_p3 }
  0x10   :  { %2307 = shalt.err (!%p2304_p7)
}
  0x11   :  { %s2381_s28 = smov 256   ;;  %s2382_s29 = smov 16  }
  0x12   :  { %38 = dma.hbm_to_vmem [thread:$0]  %s2712_s2, 8192, %s33_s19, [#allocation5], %s2381_s28, %s2381_s28, %s2382_s29  }
  0x13   :  { %s2383_s7 = smov [#allocation2]   ;;  %s2308_s11 = scalar_lea.hbm %s2711_s1, 18432 }
  0x14   :  { %s20_s8 = sshll.u32 %s2383_s7, 4  ;;  %p2309_p8 = scmp.ne.s32.totalorder %s2711_s1, %s2308_s11  ;;  %s21_s8 = int_to_ptr.vmem [resolvable:$true] %s20_s8 }
  0x15   :  { %p2312_p9 = scmp.lt.u32.totalorder %s2308_s11, %s2711_s1 }
  0x17   :  { %p2314_p10 = pnand %p2312_p9, %p2309_p8 }
  0x19   :  { %2317 = shalt.err (!%p2314_p10)
}
  0x1a   :  { %s2318_s16 = scalar_lea.vmem %s21_s8, 18432  ;;  %p2323_p12 = scmp.lt.s32.totalorder %s21_s8, %s21_s8 }
  0x1b   :  { %p2319_p11 = scmp.ne.s32.totalorder %s21_s8, %s2318_s16  ;;  %p2324_p13 = scmp.lt.s32.totalorder %s2318_s16, %s2318_s16 }
  0x1d   :  { %p2325_p0 = por %p2324_p13, %p2323_p12 }
  0x1f   :  { %p2326_p1 = pnand %p2325_p0, %p2319_p11 }
  0x21   :  { %2329 = shalt.err (!%p2326_p1)
}
  0x22   :  { %s2384_s2 = smov 128   ;;  %s2385_s17 = smov 8  }
  0x23   :  { %26 = dma.hbm_to_vmem [thread:$0]  %s2711_s1, 18432, %s21_s8, [#allocation3], %s2384_s2, %s2384_s2, %s2385_s17  }
  0x24   :  { %s2386_s20 = smov [#allocation6]   ;;  %s2387_s22 = smov [#allocation7]  }
  0x25   :  { %s45_s21 = sshll.u32 %s2386_s20, 4  ;;  %s55_s23 = sshll.u32 %s2387_s22, 4  ;;  %s46_s21 = int_to_ptr.vmem [resolvable:$true] %s45_s21  ;;  %s56_s23 = int_to_ptr.vmem [resolvable:$true] %s55_s23 }
  0x26   :  { %s2330_s26 = scalar_lea.hbm %s2713_s3, 32 }
  0x27   :  { %p2331_p2 = scmp.ne.s32.totalorder %s2713_s3, %s2330_s26  ;;  %p2334_p3 = scmp.lt.u32.totalorder %s2330_s26, %s2713_s3 }
  0x29   :  { %p2336_p4 = pnand %p2334_p3, %p2331_p2 }
  0x2b   :  { %2339 = shalt.err (!%p2336_p4)
}
  0x2c   :  { %s2340_s1 = scalar_lea.vmem %s46_s21, 32  ;;  %p2345_p6 = scmp.lt.s32.totalorder %s46_s21, %s46_s21 }
  0x2d   :  { %p2341_p5 = scmp.ne.s32.totalorder %s46_s21, %s2340_s1  ;;  %p2346_p7 = scmp.lt.s32.totalorder %s2340_s1, %s2340_s1 }
  0x2f   :  { %p2347_p8 = por %p2346_p7, %p2345_p6 }
  0x31   :  { %p2348_p9 = pnand %p2347_p8, %p2341_p5 }
  0x33   :  { %2351 = shalt.err (!%p2348_p9)
}
  0x34   :  { %48 = dma.hbm_to_vmem [thread:$0]  %s2713_s3, 32, %s46_s21, [#allocation5]  }
  0x35   :  { %s2352_s10 = scalar_lea.hbm %s2714_s4, 32 }
  0x36   :  { %p2353_p10 = scmp.ne.s32.totalorder %s2714_s4, %s2352_s10  ;;  %p2356_p11 = scmp.lt.u32.totalorder %s2352_s10, %s2714_s4 }
  0x38   :  { %p2358_p12 = pnand %p2356_p11, %p2353_p10 }
  0x3a   :  { %2361 = shalt.err (!%p2358_p12)
}
  0x3b   :  { %s2362_s15 = scalar_lea.vmem %s56_s23, 32  ;;  %p2367_p0 = scmp.lt.s32.totalorder %s56_s23, %s56_s23 }
  0x3c   :  { %p2363_p13 = scmp.ne.s32.totalorder %s56_s23, %s2362_s15  ;;  %p2368_p1 = scmp.lt.s32.totalorder %s2362_s15, %s2362_s15 }
  0x3e   :  { %p2369_p2 = por %p2368_p1, %p2367_p0 }
  0x40   :  { %p2370_p3 = pnand %p2369_p2, %p2363_p13 }
  0x42   :  { %2373 = shalt.err (!%p2370_p3)
}
  0x43   :  { %58 = dma.hbm_to_vmem [thread:$0]  %s2714_s4, 32, %s56_s23, [#allocation8]  }
  0x44   :  { %2374 = dma.done.wait [#allocation3], 18432  }
  0x45   :  { %2375 = vsyncadd [#allocation3], 4294948864 }
  0x46   :  { %2376 = dma.done.wait [#allocation5], 8224  }
  0x47   :  { %2377 = vsyncadd [#allocation5], 4294959072 }
  0x48   :  { %2378 = dma.done.wait [#allocation8], 32  }
  0x49   :  { %2379 = vsyncadd [#allocation8], 4294967264  ;;  %v2040_v0 = vld [vmem:[#allocation2 + $0x104] ss:$8 sps:$4 sm:$0xff]   ;;  %v2042_v1 = vld [vmem:[#allocation2 + $0x100] ss:$8 sps:$4 sm:$0xff]  }
  0x4a   :  { %1101 = vmatprep.subr.bf16.mxu0 %v2040_v0  ;;  %v2043_v2 = vld [vmem:[#allocation2 + $0x114] ss:$8 sps:$4 sm:$0xff]   ;;  %v2045_v3 = vld [vmem:[#allocation2 + $0x110] ss:$8 sps:$4 sm:$0xff]   ;;  %v2046_v4 = vld [vmem:[#allocation2 + $0x124] ss:$8 sps:$4 sm:$0xff]  }
  0x4b   :  { %1102 = vmatpush1.bf16.msra.mxu0 %v2042_v1  ;;  %v2048_v5 = vld [vmem:[#allocation2 + $0x120] ss:$8 sps:$4 sm:$0xff]   ;;  %v2049_v6 = vld [vmem:[#allocation2 + $0x134] ss:$8 sps:$4 sm:$0xff]   ;;  %v2051_v7 = vld [vmem:[#allocation2 + $0x130] ss:$8 sps:$4 sm:$0xff]  }
  0x4c   :  { %1103 = vmatprep.subr.bf16.mxu0 %v2043_v2  ;;  %v2052_v8 = vld [vmem:[#allocation2 + $0x144] ss:$8 sps:$4 sm:$0xff]   ;;  %v2054_v9 = vld [vmem:[#allocation2 + $0x140] ss:$8 sps:$4 sm:$0xff]   ;;  %v2055_v10 = vld [vmem:[#allocation2 + $0x154] ss:$8 sps:$4 sm:$0xff]  }
  0x4d   :  { %v2057_v11 = vld [vmem:[#allocation2 + $0x150] ss:$8 sps:$4 sm:$0xff]   ;;  %v2058_v12 = vld [vmem:[#allocation2 + $0x164] ss:$8 sps:$4 sm:$0xff]   ;;  %v2060_v14 = vld [vmem:[#allocation2 + $0x160] ss:$8 sps:$4 sm:$0xff]  }
  0x4e   :  { %v2090_v13 = vld [vmem:[%s2710_s0 + $0xc] ss:$36 sps:$4 sm:$0xff]   ;;  %v2061_v15 = vld [vmem:[#allocation2 + $0x174] ss:$8 sps:$4 sm:$0xff]   ;;  %v2066_v18 = vld [vmem:[#allocation2 + $0x180] ss:$8 sps:$4 sm:$0xff]  }
  0x4f   :  { %1104 = vmatpush1.bf16.msra.mxu0 %v2045_v3  ;;  %1133 = vmatprep.mubr.bf16.mxu0 %v2090_v13  ;;  %v2063_v16 = vld [vmem:[#allocation2 + $0x170] ss:$8 sps:$4 sm:$0xff]   ;;  %v2064_v17 = vld [vmem:[#allocation2 + $0x184] ss:$8 sps:$4 sm:$0xff]   ;;  %v2067_v19 = vld [vmem:[#allocation2 + $0x194] ss:$8 sps:$4 sm:$0xff]  }
  0x50   :  { %1105 = vmatprep.subr.bf16.mxu0 %v2046_v4  ;;  %v2115_v20 = vld [vmem:[#allocation2 + $0x4] ss:$8 sps:$4 sm:$0xff]   ;;  %v2117_v21 = vld [vmem:[#allocation2] ss:$8 sps:$4 sm:$0xff]   ;;  %v2069_v22 = vld [vmem:[#allocation2 + $0x190] ss:$8 sps:$4 sm:$0xff]  }
  0x51   :  { %v2070_v23 = vld [vmem:[#allocation2 + $0x1a4] ss:$8 sps:$4 sm:$0xff]   ;;  %1048 = vmatprep.subr.bf16.mxu1 %v2115_v20  ;;  %v2121_v24 = vld [vmem:[#allocation2 + $0x14] ss:$8 sps:$4 sm:$0xff]   ;;  %v2123_v25 = vld [vmem:[#allocation2 + $0x10] ss:$8 sps:$4 sm:$0xff]  }
  0x52   :  { %1049 = vmatpush1.bf16.msra.mxu1 %v2117_v21  ;;  %v2072_v26 = vld [vmem:[#allocation2 + $0x1a0] ss:$8 sps:$4 sm:$0xff]   ;;  %v2127_v27 = vld [vmem:[#allocation2 + $0x24] ss:$8 sps:$4 sm:$0xff]   ;;  %v2073_v28 = vld [vmem:[#allocation2 + $0x1b4] ss:$8 sps:$4 sm:$0xff]  }
  0x53   :  { %1106 = vmatpush1.bf16.msra.mxu0 %v2048_v5  ;;  %1050 = vmatprep.subr.bf16.mxu1 %v2121_v24  ;;  %v2129_v29 = vld [vmem:[#allocation2 + $0x20] ss:$8 sps:$4 sm:$0xff]   ;;  %v2133_v30 = vld [vmem:[#allocation2 + $0x34] ss:$8 sps:$4 sm:$0xff]   ;;  %v2075_v31 = vld [vmem:[#allocation2 + $0x1b0] ss:$8 sps:$4 sm:$0xff]  }
  0x54   :  { %1107 = vmatprep.subr.bf16.mxu0 %v2049_v6  ;;  %v2076_v32 = vld [vmem:[#allocation2 + $0x1c4] ss:$8 sps:$4 sm:$0xff]   ;;  %v2135_v33 = vld [vmem:[#allocation2 + $0x30] ss:$8 sps:$4 sm:$0xff]   ;;  %v2078_v35 = vld [vmem:[#allocation2 + $0x1c0] ss:$8 sps:$4 sm:$0xff]  }
  0x55   :  { %v2139_v34 = vld [vmem:[#allocation2 + $0x44] ss:$8 sps:$4 sm:$0xff]   ;;  %v2079_v36 = vld [vmem:[#allocation2 + $0x1d4] ss:$8 sps:$4 sm:$0xff]   ;;  %v2141_v37 = vld [vmem:[#allocation2 + $0x40] ss:$8 sps:$4 sm:$0xff]  }
  0x56   :  { %1051 = vmatpush1.bf16.msra.mxu1 %v2123_v25  ;;  %v2145_v38 = vld [vmem:[#allocation2 + $0x54] ss:$8 sps:$4 sm:$0xff]   ;;  %v2081_v39 = vld [vmem:[#allocation2 + $0x1d0] ss:$8 sps:$4 sm:$0xff]   ;;  %v2082_v40 = vld [vmem:[#allocation2 + $0x1e4] ss:$8 sps:$4 sm:$0xff]  }
  0x57   :  { %1108 = vmatpush1.bf16.msra.mxu0 %v2051_v7  ;;  %1052 = vmatprep.subr.bf16.mxu1 %v2127_v27  ;;  %v2147_v41 = vld [vmem:[#allocation2 + $0x50] ss:$8 sps:$4 sm:$0xff]   ;;  %v2151_v42 = vld [vmem:[#allocation2 + $0x64] ss:$8 sps:$4 sm:$0xff]   ;;  %v2084_v43 = vld [vmem:[#allocation2 + $0x1e0] ss:$8 sps:$4 sm:$0xff]  }
  0x58   :  { %1109 = vmatprep.subr.bf16.mxu0 %v2052_v8  ;;  %v2085_v44 = vld [vmem:[#allocation2 + $0x1f4] ss:$8 sps:$4 sm:$0xff]   ;;  %v2153_v45 = vld [vmem:[#allocation2 + $0x60] ss:$8 sps:$4 sm:$0xff]   ;;  %v2087_v47 = vld [vmem:[#allocation2 + $0x1f0] ss:$8 sps:$4 sm:$0xff]  }
  0x59   :  { %v2160_v46 = vld [vmem:[#allocation2 + $0x74] ss:$8 sps:$4 sm:$0xff]   ;;  %v2093_v48 = vld [vmem:[#allocation2 + $0x204] ss:$8 sps:$4 sm:$0xff]   ;;  %v2162_v49 = vld [vmem:[#allocation2 + $0x70] ss:$8 sps:$4 sm:$0xff]  }
  0x5a   :  { %1053 = vmatpush1.bf16.msra.mxu1 %v2129_v29  ;;  %v2088_v50 = vld [vmem:[%s2710_s0 + $0x8] ss:$36 sps:$4 sm:$0xff]   ;;  %v2154_v53 = vld [vmem:[%s2710_s0 + $0x54] ss:$36 sps:$4 sm:$0xff]  }
  0x5b   :  { %1110 = vmatpush1.bf16.msra.mxu0 %v2054_v9  ;;  %1054 = vmatprep.subr.bf16.mxu1 %v2133_v30  ;;  %v2166_v51 = vld [vmem:[#allocation2 + $0x84] ss:$8 sps:$4 sm:$0xff]   ;;  %v2091_v52 = vld [vmem:[#allocation2 + $0x200] ss:$8 sps:$4 sm:$0xff]   ;;  %v2096_v54 = vld [vmem:[#allocation2 + $0x214] ss:$8 sps:$4 sm:$0xff]  }
  0x5c   :  { %1111 = vmatprep.subr.bf16.mxu0 %v2055_v10  ;;  %v2168_v55 = vld [vmem:[#allocation2 + $0x80] ss:$8 sps:$4 sm:$0xff]   ;;  %v2175_v56 = vld [vmem:[#allocation2 + $0x94] ss:$8 sps:$4 sm:$0xff]   ;;  %v2094_v57 = vld [vmem:[#allocation2 + $0x210] ss:$8 sps:$4 sm:$0xff]  }
  0x5d   :  { %v2099_v58 = vld [vmem:[#allocation2 + $0x224] ss:$8 sps:$4 sm:$0xff]   ;;  %v2177_v59 = vld [vmem:[#allocation2 + $0x90] ss:$8 sps:$4 sm:$0xff]   ;;  %v2097_v62 = vld [vmem:[#allocation2 + $0x220] ss:$8 sps:$4 sm:$0xff]  }
  0x5e   :  { %1055 = vmatpush1.bf16.msra.mxu1 %v2135_v33  ;;  %v2159_v60 = vld [vmem:[%s2710_s0 + $0x50] ss:$36 sps:$4 sm:$0xff]   ;;  %v2181_v61 = vld [vmem:[#allocation2 + $0xa4] ss:$8 sps:$4 sm:$0xff]   ;;  %v2183_v1 = vld [vmem:[#allocation2 + $0xa0] ss:$8 sps:$4 sm:$0xff]  }
  0x5f   :  { %1112 = vmatpush1.bf16.msra.mxu0 %v2057_v11  ;;  %1056 = vmatprep.subr.bf16.mxu1 %v2139_v34  ;;  %v2171_v63 = vld [vmem:[%s2710_s0 + $0x14] ss:$36 sps:$4 sm:$0xff]   ;;  %v2105_v4 = vld [vmem:[#allocation2 + $0x244] ss:$8 sps:$4 sm:$0xff]   ;;  %v2103_v7 = vld [vmem:[#allocation2 + $0x240] ss:$8 sps:$4 sm:$0xff]  }
  0x60   :  { %1113 = vmatprep.subr.bf16.mxu0 %v2058_v12  ;;  %v2102_v0 = vld [vmem:[#allocation2 + $0x234] ss:$8 sps:$4 sm:$0xff]   ;;  %v2100_v3 = vld [vmem:[#allocation2 + $0x230] ss:$8 sps:$4 sm:$0xff]   ;;  %v2193_v6 = vld [vmem:[#allocation2 + $0xc4] ss:$8 sps:$4 sm:$0xff]  }
  0x61   :  { %v2187_v2 = vld [vmem:[#allocation2 + $0xb4] ss:$8 sps:$4 sm:$0xff]   ;;  %v2189_v5 = vld [vmem:[#allocation2 + $0xb0] ss:$8 sps:$4 sm:$0xff]   ;;  %v2219_v8 = vld [vmem:[%s2710_s0 + $0x4] ss:$36 sps:$4 sm:$0xff]  }
  0x62   :  { %1057 = vmatpush1.bf16.msra.mxu1 %v2141_v37  ;;  %v2108_v9 = vld [vmem:[#allocation2 + $0x254] ss:$8 sps:$4 sm:$0xff]   ;;  %v2195_v10 = vld [vmem:[#allocation2 + $0xc0] ss:$8 sps:$4 sm:$0xff]   ;;  %1080 = vmatprep.mubr.bf16.mxu1 %v2219_v8  ;;  %v2106_v12 = vld [vmem:[#allocation2 + $0x250] ss:$8 sps:$4 sm:$0xff]  }
  0x63   :  { %1114 = vmatpush1.bf16.msra.mxu0 %v2060_v14  ;;  %1058 = vmatprep.subr.bf16.mxu1 %v2145_v38  ;;  %v2199_v11 = vld [vmem:[#allocation2 + $0xd4] ss:$8 sps:$4 sm:$0xff]   ;;  %v2111_v13 = vld [vmem:[#allocation2 + $0x264] ss:$8 sps:$4 sm:$0xff]   ;;  %v2201_v14 = vld [vmem:[#allocation2 + $0xd0] ss:$8 sps:$4 sm:$0xff]  }
  0x64   :  { %1115 = vmatprep.subr.bf16.mxu0 %v2061_v15  ;;  %v2205_v15 = vld [vmem:[#allocation2 + $0xe4] ss:$8 sps:$4 sm:$0xff]   ;;  %v2112_v20 = vld [vmem:[#allocation2 + $0x270] ss:$8 sps:$4 sm:$0xff]   ;;  %v2126_v25 = vld [vmem:[#allocation2 + $0x294] ss:$8 sps:$4 sm:$0xff]  }
  0x65   :  { %v2120_v21 = vld [vmem:[#allocation2 + $0x284] ss:$8 sps:$4 sm:$0xff]   ;;  %v2220_v27 = vld [vmem:[#allocation2 + $0x400] ss:$8 sps:$4 sm:$0xff]   ;;  %v2228_v29 = vld [vmem:[#allocation2 + $0x414] ss:$8 sps:$4 sm:$0xff]  }
  0x66   :  { %1059 = vmatpush1.bf16.msra.mxu1 %v2147_v41  ;;  %v2222_v24 = vld [vmem:[#allocation2 + $0x404] ss:$8 sps:$4 sm:$0xff]   ;;  %v2124_v30 = vld [vmem:[#allocation2 + $0x290] ss:$8 sps:$4 sm:$0xff]   ;;  %v2130_v34 = vld [vmem:[#allocation2 + $0x2a0] ss:$8 sps:$4 sm:$0xff]  }
  0x67   :  { %1116 = vmatpush1.bf16.msra.mxu0 %v2063_v16  ;;  %1060 = vmatprep.subr.bf16.mxu1 %v2151_v42  ;;  %v2109_v16 = vld [vmem:[#allocation2 + $0x260] ss:$8 sps:$4 sm:$0xff]   ;;  %v2234_v33 = vld [vmem:[#allocation2 + $0x424] ss:$8 sps:$4 sm:$0xff]   ;;  %v2240_v38 = vld [vmem:[#allocation2 + $0x434] ss:$8 sps:$4 sm:$0xff]  }
  0x68   :  { %1117 = vmatprep.subr.bf16.mxu0 %v2064_v17  ;;  %v2114_v17 = vld [vmem:[#allocation2 + $0x274] ss:$8 sps:$4 sm:$0xff]   ;;  %v2232_v37 = vld [vmem:[#allocation2 + $0x420] ss:$8 sps:$4 sm:$0xff]   ;;  %v2238_v41 = vld [vmem:[#allocation2 + $0x430] ss:$8 sps:$4 sm:$0xff]  }
  0x69   :  { %v2388_v42 = vmov 0   ;;  %v2264_v8 = vld [vmem:[%s2710_s0 + $0x58] ss:$36 sps:$4 sm:$0xff]  }
  0x6a   :  { %1061 = vmatpush1.bf16.msra.mxu1 %v2153_v45  ;;  %v2150_v45 = vld [vmem:[#allocation2 + $0x2d4] ss:$8 sps:$4 sm:$0xff]  }
  0x6b   :  { %1118 = vmatpush1.bf16.msra.mxu0 %v2066_v18  ;;  %1062 = vmatprep.subr.bf16.mxu1 %v2160_v46  ;;  %v2207_v18 = vld [vmem:[#allocation2 + $0xe0] ss:$8 sps:$4 sm:$0xff]  }
  0x6c   :  { %1119 = vmatprep.subr.bf16.mxu0 %v2067_v19  ;;  %v2211_v19 = vld [vmem:[#allocation2 + $0xf4] ss:$8 sps:$4 sm:$0xff]   ;;  %v2244_v46 = vld [vmem:[#allocation2 + $0x440] ss:$8 sps:$4 sm:$0xff]  }
  0x6e   :  { %1063 = vmatpush1.bf16.msra.mxu1 %v2162_v49  ;;  %v2158_v49 = vld [vmem:[#allocation2 + $0x2e4] ss:$8 sps:$4 sm:$0xff]  }
  0x6f   :  { %1120 = vmatpush1.bf16.msra.mxu0 %v2069_v22  ;;  %1064 = vmatprep.subr.bf16.mxu1 %v2166_v51  ;;  %v2213_v22 = vld [vmem:[#allocation2 + $0xf0] ss:$8 sps:$4 sm:$0xff]   ;;  %v2263_v51 = vld [vmem:[#allocation2 + $0x464] ss:$8 sps:$4 sm:$0xff]  }
  0x70   :  { %1121 = vmatprep.subr.bf16.mxu0 %v2070_v23  ;;  %v2118_v23 = vld [vmem:[#allocation2 + $0x280] ss:$8 sps:$4 sm:$0xff]  }
  0x72   :  { %1065 = vmatpush1.bf16.msra.mxu1 %v2168_v55  ;;  %v2270_v55 = vld [vmem:[#allocation2 + $0x474] ss:$8 sps:$4 sm:$0xff]  }
  0x73   :  { %1122 = vmatpush1.bf16.msra.mxu0 %v2072_v26  ;;  %1066 = vmatprep.subr.bf16.mxu1 %v2175_v56  ;;  %v2217_v26 = vld [vmem:[%s2710_s0] ss:$36 sps:$4 sm:$0xff]   ;;  %v2163_v56 = vld [vmem:[#allocation2 + $0x2f0] ss:$8 sps:$4 sm:$0xff]  }
  0x74   :  { %1123 = vmatprep.subr.bf16.mxu0 %v2073_v28  ;;  %v2256_v28 = vld [vmem:[%s2710_s0 + $0x4c] ss:$36 sps:$4 sm:$0xff]  }
  0x76   :  { %1067 = vmatpush1.bf16.msra.mxu1 %v2177_v59  ;;  %v2174_v59 = vld [vmem:[#allocation2 + $0x304] ss:$8 sps:$4 sm:$0xff]  }
  0x77   :  { %1124 = vmatpush1.bf16.msra.mxu0 %v2075_v31  ;;  %1068 = vmatprep.subr.bf16.mxu1 %v2181_v61  ;;  %v2132_v31 = vld [vmem:[#allocation2 + $0x2a4] ss:$8 sps:$4 sm:$0xff]   ;;  %v2169_v61 = vld [vmem:[%s2710_s0 + $0x10] ss:$36 sps:$4 sm:$0xff]  }
  0x78   :  { %1125 = vmatprep.subr.bf16.mxu0 %v2076_v32  ;;  %v2226_v32 = vld [vmem:[#allocation2 + $0x410] ss:$8 sps:$4 sm:$0xff]  }
  0x7a   :  { %1069 = vmatpush1.bf16.msra.mxu1 %v2183_v1  ;;  %v2172_v1 = vld [vmem:[#allocation2 + $0x300] ss:$8 sps:$4 sm:$0xff]  }
  0x7b   :  { %1126 = vmatpush1.bf16.msra.mxu0 %v2078_v35  ;;  %1070 = vmatprep.subr.bf16.mxu1 %v2187_v2  ;;  %v2138_v35 = vld [vmem:[#allocation2 + $0x2b4] ss:$8 sps:$4 sm:$0xff]  }
  0x7c   :  { %1127 = vmatprep.subr.bf16.mxu0 %v2079_v36  ;;  %v2258_v36 = vld [vmem:[%s2710_s0 + $0x48] ss:$36 sps:$4 sm:$0xff]   ;;  %v2259_v2 = vld [vmem:[%s2710_s0 + $0x5c] ss:$36 sps:$4 sm:$0xff]  }
  0x7e   :  { %1071 = vmatpush1.bf16.msra.mxu1 %v2189_v5 }
  0x7f   :  { %1128 = vmatpush1.bf16.msra.mxu0 %v2081_v39  ;;  %1072 = vmatprep.subr.bf16.mxu1 %v2193_v6  ;;  %v2136_v39 = vld [vmem:[#allocation2 + $0x2b0] ss:$8 sps:$4 sm:$0xff]  }
  0x80   :  { %1129 = vmatprep.subr.bf16.mxu0 %v2082_v40  ;;  %v2144_v40 = vld [vmem:[#allocation2 + $0x2c4] ss:$8 sps:$4 sm:$0xff]   ;;  %v2178_v6 = vld [vmem:[#allocation2 + $0x310] ss:$8 sps:$4 sm:$0xff]  }
  0x82   :  { %1073 = vmatpush1.bf16.msra.mxu1 %v2195_v10  ;;  %v2276_v10 = vld [vmem:[%s2710_s0 + $0x1c] ss:$36 sps:$4 sm:$0xff]  }
  0x83   :  { %1130 = vmatpush1.bf16.msra.mxu0 %v2084_v43  ;;  %1074 = vmatprep.subr.bf16.mxu1 %v2199_v11  ;;  %v2246_v43 = vld [vmem:[#allocation2 + $0x444] ss:$8 sps:$4 sm:$0xff]   ;;  %v2192_v11 = vld [vmem:[#allocation2 + $0x334] ss:$8 sps:$4 sm:$0xff]  }
  0x84   :  { %1131 = vmatprep.subr.bf16.mxu0 %v2085_v44  ;;  %v2142_v44 = vld [vmem:[#allocation2 + $0x2c0] ss:$8 sps:$4 sm:$0xff]  }
  0x86   :  { %1075 = vmatpush1.bf16.msra.mxu1 %v2201_v14  ;;  %v2198_v14 = vld [vmem:[#allocation2 + $0x344] ss:$8 sps:$4 sm:$0xff]  }
  0x87   :  { %1132 = vmatpush1.bf16.msra.mxu0 %v2087_v47  ;;  %1076 = vmatprep.subr.bf16.mxu1 %v2205_v15  ;;  %v2252_v47 = vld [vmem:[#allocation2 + $0x454] ss:$8 sps:$4 sm:$0xff]   ;;  %v2196_v15 = vld [vmem:[#allocation2 + $0x340] ss:$8 sps:$4 sm:$0xff]  }
  0x88   :  { %1154 = vmatprep.subr.bf16.mxu0 %v2093_v48  ;;  %v2148_v48 = vld [vmem:[#allocation2 + $0x2d0] ss:$8 sps:$4 sm:$0xff]  }
  0x8a   :  { %1134 = vmatmul.mubr.bf16.vlgmr.msra.gmra.mrb[0].mxu0 %v2088_v50  ;;  %1077 = vmatpush1.bf16.msra.mxu1 %v2207_v18  ;;  %v2250_v50 = vld [vmem:[#allocation2 + $0x450] ss:$8 sps:$4 sm:$0xff]   ;;  %v2210_v18 = vld [vmem:[#allocation2 + $0x364] ss:$8 sps:$4 sm:$0xff]  }
  0x8b   :  { %1155 = vmatpush1.bf16.msra.mxu0 %v2091_v52  ;;  %1143 = vmatprep.mubr.bf16.mxu0 %v2154_v53  ;;  %v2156_v52 = vld [vmem:[#allocation2 + $0x2e0] ss:$8 sps:$4 sm:$0xff]   ;;  %v2165_v53 = vld [vmem:[#allocation2 + $0x2f4] ss:$8 sps:$4 sm:$0xff]  }
  0x8c   :  { %1156 = vmatprep.subr.bf16.mxu0 %v2096_v54  ;;  %1078 = vmatprep.subr.bf16.mxu1 %v2211_v19  ;;  %v2261_v54 = vld [vmem:[#allocation2 + $0x460] ss:$8 sps:$4 sm:$0xff]  }
  0x8d   :  { %v2208_v19 = vld [vmem:[#allocation2 + $0x360] ss:$8 sps:$4 sm:$0xff]  }
  0x8e   :  { %1079 = vmatpush1.bf16.msra.mxu1 %v2213_v22  ;;  %v2225_v22 = vld [vmem:[#allocation2 + $0x384] ss:$8 sps:$4 sm:$0xff]  }
  0x8f   :  { %1157 = vmatpush1.bf16.msra.mxu0 %v2094_v57  ;;  %1260 = vmatprep.subr.bf16.mxu1 %v2222_v24  ;;  %v1358_v57 = vld [vmem:[#allocation4 + $0x8] sm:$0xff]  ;;  %v2231_v24 = vld [vmem:[#allocation2 + $0x394] ss:$8 sps:$4 sm:$0xff]  }
  0x90   :  { %1158 = vmatprep.subr.bf16.mxu0 %v2099_v58  ;;  %v1360_v58 = vld [vmem:[#allocation4 + $0x18] sm:$0xff] }
  0x91   :  { %1081 = vmatmul.mubr.bf16.vlgmr.msra.gmra.mrb[0].mxu1 %v2217_v26  ;;  %v2237_v26 = vld [vmem:[#allocation2 + $0x3a4] ss:$8 sps:$4 sm:$0xff]  }
  0x92   :  { %1144 = vmatmul.mubr.bf16.gmra.mrb[4].mxu0 %v2159_v60  ;;  %1261 = vmatpush1.bf16.msra.mxu1 %v2220_v27  ;;  %v2268_v60 = vld [vmem:[#allocation2 + $0x470] ss:$8 sps:$4 sm:$0xff]   ;;  %v2235_v27 = vld [vmem:[#allocation2 + $0x3a0] ss:$8 sps:$4 sm:$0xff]  }
  0x93   :  { %1159 = vmatpush1.bf16.msra.mxu0 %v2097_v62  ;;  %1186 = vmatprep.mubr.bf16.mxu0 %v2171_v63  ;;  %v2498_v62 = vpack.c.bf16 %v1360_v58, %v1358_v57  ;;  %v1357_v63 = vld [vmem:[#allocation4] sm:$0xff]  ;;  %v1374_v57 = vld [vmem:[#allocation4 + $0x88] sm:$0xff]  ;;  %v1376_v58 = vld [vmem:[#allocation4 + $0x98] sm:$0xff] }
  0x94   :  { %1160 = vmatprep.subr.bf16.mxu0 %v2102_v0  ;;  %1090 = vmatprep.mubr.bf16.mxu1 %v2256_v28  ;;  %v1359_v0 = vld [vmem:[#allocation4 + $0x10] sm:$0xff] }
  0x95   :  { %1262 = vmatprep.subr.bf16.mxu1 %v2228_v29  ;;  %v2506_v5 = vpack.c.bf16 %v1359_v0, %v1357_v63  ;;  %v2243_v28 = vld [vmem:[#allocation2 + $0x3b4] ss:$8 sps:$4 sm:$0xff]   ;;  %v2241_v29 = vld [vmem:[#allocation2 + $0x3b0] ss:$8 sps:$4 sm:$0xff]   ;;  %v1378_v0 = vld [vmem:[#allocation4 + $0xa8] sm:$0xff] }
  0x96   :  { %1263 = vmatpush1.bf16.msra.mxu1 %v2226_v32  ;;  %v2255_v32 = vld [vmem:[#allocation2 + $0x3d4] ss:$8 sps:$4 sm:$0xff]  }
  0x97   :  { %1161 = vmatpush1.bf16.msra.mxu0 %v2100_v3  ;;  %1264 = vmatprep.subr.bf16.mxu1 %v2234_v33  ;;  %v2180_v3 = vld [vmem:[#allocation2 + $0x314] ss:$8 sps:$4 sm:$0xff]   ;;  %v2253_v33 = vld [vmem:[#allocation2 + $0x3d0] ss:$8 sps:$4 sm:$0xff]  }
  0x98   :  { %1162 = vmatprep.subr.bf16.mxu0 %v2105_v4  ;;  %v2277_v4 = vld [vmem:[%s2710_s0 + $0x20] ss:$36 sps:$4 sm:$0xff]   ;;  %v1375_v63 = vld [vmem:[#allocation4 + $0x90] sm:$0xff] }
  0x99   :  { %1091 = vmatmul.mubr.bf16.gmra.mrb[4].mxu1 %v2258_v36  ;;  %v2273_v36 = vld [vmem:[#allocation2 + $0x3f4] ss:$8 sps:$4 sm:$0xff]  }
  0x9a   :  { %1265 = vmatpush1.bf16.msra.mxu1 %v2232_v37  ;;  %1292 = vmatprep.mubr.bf16.mxu1 %v2388_v42  ;;  %v2271_v37 = vld [vmem:[#allocation2 + $0x3f0] ss:$8 sps:$4 sm:$0xff]  }
  0x9b   :  { %1163 = vmatpush1.bf16.msra.mxu0 %v2103_v7  ;;  %1266 = vmatprep.subr.bf16.mxu1 %v2240_v38  ;;  %v2186_v7 = vld [vmem:[#allocation2 + $0x324] ss:$8 sps:$4 sm:$0xff]  }
  0x9c   :  { %1164 = vmatprep.subr.bf16.mxu0 %v2108_v9  ;;  %v2184_v9 = vld [vmem:[#allocation2 + $0x320] ss:$8 sps:$4 sm:$0xff]  }
  0x9d   :  { %v1362_v38 = vld [vmem:[#allocation4 + $0x28] sm:$0xff] }
  0x9e   :  { %1267 = vmatpush1.bf16.msra.mxu1 %v2238_v41  ;;  %v1361_v41 = vld [vmem:[#allocation4 + $0x20] sm:$0xff] }
  0x9f   :  { %1165 = vmatpush1.bf16.msra.mxu0 %v2106_v12  ;;  %1268 = vmatprep.subr.bf16.mxu1 %v2246_v43  ;;  %v2280_v12 = vld [vmem:[%s2710_s0 + $0x68] ss:$36 sps:$4 sm:$0xff]  }
  0xa0   :  { %1166 = vmatprep.subr.bf16.mxu0 %v2111_v13  ;;  %v2190_v13 = vld [vmem:[#allocation2 + $0x330] ss:$8 sps:$4 sm:$0xff]   ;;  %v1366_v43 = vld [vmem:[#allocation4 + $0x48] sm:$0xff] }
  0xa2   :  { %1269 = vmatpush1.bf16.msra.mxu1 %v2244_v46  ;;  %v1365_v46 = vld [vmem:[#allocation4 + $0x40] sm:$0xff] }
  0xa3   :  { %1167 = vmatpush1.bf16.msra.mxu0 %v2109_v16  ;;  %1270 = vmatprep.subr.bf16.mxu1 %v2252_v47  ;;  %v2204_v16 = vld [vmem:[#allocation2 + $0x354] ss:$8 sps:$4 sm:$0xff]  }
  0xa4   :  { %1168 = vmatprep.subr.bf16.mxu0 %v2114_v17  ;;  %v2202_v17 = vld [vmem:[#allocation2 + $0x350] ss:$8 sps:$4 sm:$0xff]  }
  0xa5   :  { %v1367_v47 = vld [vmem:[#allocation4 + $0x50] sm:$0xff] }
  0xa6   :  { %1271 = vmatpush1.bf16.msra.mxu1 %v2250_v50  ;;  %v1372_v50 = vld [vmem:[#allocation4 + $0x78] sm:$0xff] }
  0xa7   :  { %1169 = vmatpush1.bf16.msra.mxu0 %v2112_v20  ;;  %1272 = vmatprep.subr.bf16.mxu1 %v2263_v51  ;;  %v2216_v20 = vld [vmem:[#allocation2 + $0x374] ss:$8 sps:$4 sm:$0xff]   ;;  %v2527_v51 = vpack.c.bf16 %v1367_v47, %v1365_v46  ;;  %v1406_v47 = vld [vmem:[#allocation4 + $0x188] sm:$0xff] }
  0xa8   :  { %1170 = vmatprep.subr.bf16.mxu0 %v2120_v21  ;;  %v2214_v21 = vld [vmem:[#allocation2 + $0x370] ss:$8 sps:$4 sm:$0xff]  }
  0xaa   :  { %1273 = vmatpush1.bf16.msra.mxu1 %v2261_v54  ;;  %v1369_v54 = vld [vmem:[#allocation4 + $0x60] sm:$0xff] }
  0xab   :  { %1171 = vmatpush1.bf16.msra.mxu0 %v2118_v23  ;;  %1274 = vmatprep.subr.bf16.mxu1 %v2270_v55  ;;  %v2223_v23 = vld [vmem:[#allocation2 + $0x380] ss:$8 sps:$4 sm:$0xff]   ;;  %v1371_v55 = vld [vmem:[#allocation4 + $0x70] sm:$0xff] }
  0xac   :  { %1172 = vmatprep.subr.bf16.mxu0 %v2126_v25  ;;  %v2229_v25 = vld [vmem:[#allocation2 + $0x390] ss:$8 sps:$4 sm:$0xff]  }
  0xae   :  { %1275 = vmatpush1.bf16.msra.mxu1 %v2268_v60  ;;  %v2542_v60 = vpack.c.bf16 %v1376_v58, %v1374_v57  ;;  %v1412_v57 = vld [vmem:[#allocation4 + $0x1b8] sm:$0xff] }
  0xaf   :  { %1173 = vmatpush1.bf16.msra.mxu0 %v2124_v30  ;;  %1871 = vmatprep.subr.bf16.mxu1 %v2498_v62  ;;  %v2249_v30 = vld [vmem:[#allocation2 + $0x3c4] ss:$8 sps:$4 sm:$0xff]  }
  0xb0   :  { %1174 = vmatprep.subr.bf16.mxu0 %v2132_v31  ;;  %v2247_v31 = vld [vmem:[#allocation2 + $0x3c0] ss:$8 sps:$4 sm:$0xff]  }
  0xb1   :  { %1293 = vmatmul.mubr.bf16.vlgmr.msra.gmra.mrb[8].mxu1 %v2277_v4 }
  0xb2   :  { %1302 = vmatprep.mubr.bf16.mxu1 %v2388_v42  ;;  %1873 = vmatpush1.bf16.msra.mxu1 %v2506_v5  ;;  %v1363_v42 = vld [vmem:[#allocation4 + $0x30] sm:$0xff] }
  0xb3   :  { %1175 = vmatpush1.bf16.msra.mxu0 %v2130_v34  ;;  %v2267_v34 = vld [vmem:[#allocation2 + $0x3e4] ss:$8 sps:$4 sm:$0xff]  }
  0xb4   :  { %1176 = vmatprep.subr.bf16.mxu0 %v2138_v35  ;;  %v2265_v35 = vld [vmem:[#allocation2 + $0x3e0] ss:$8 sps:$4 sm:$0xff]  }
  0xb7   :  { %1177 = vmatpush1.bf16.msra.mxu0 %v2136_v39  ;;  %v1364_v39 = vld [vmem:[#allocation4 + $0x38] sm:$0xff] }
  0xb8   :  { %1178 = vmatprep.subr.bf16.mxu0 %v2144_v40  ;;  %v2519_v40 = vpack.c.bf16 %v1364_v39, %v1362_v38  ;;  %v1402_v39 = vld [vmem:[#allocation4 + $0x168] sm:$0xff] }
  0xb9   :  { %1303 = vmatmul.mubr.bf16.gmra.mrb[12].mxu1 %v2280_v12  ;;  %v1381_v12 = vld [vmem:[#allocation4 + $0xc0] sm:$0xff] }
  0xba   :  { %1875 = vmatprep.subr.bf16.mxu1 %v2519_v40 }
  0xbb   :  { %1179 = vmatpush1.bf16.msra.mxu0 %v2142_v44  ;;  %v2521_v44 = vpack.c.bf16 %v1363_v42, %v1361_v41  ;;  %v1404_v41 = vld [vmem:[#allocation4 + $0x178] sm:$0xff] }
  0xbc   :  { %1180 = vmatprep.subr.bf16.mxu0 %v2150_v45  ;;  %v1368_v45 = vld [vmem:[#allocation4 + $0x58] sm:$0xff]  ;;  %v2588_v42 = vpack.c.bf16 %v1404_v41, %v1402_v39 }
  0xbd   :  { %1877 = vmatpush1.bf16.msra.mxu1 %v2521_v44 }
  0xbf   :  { %1181 = vmatpush1.bf16.msra.mxu0 %v2148_v48  ;;  %v2524_v48 = vpack.c.bf16 %v1368_v45, %v1366_v43  ;;  %v1401_v43 = vld [vmem:[#allocation4 + $0x160] sm:$0xff]  ;;  %v1403_v45 = vld [vmem:[#allocation4 + $0x170] sm:$0xff] }
  0xc0   :  { %1182 = vmatprep.subr.bf16.mxu0 %v2158_v49  ;;  %v1370_v49 = vld [vmem:[#allocation4 + $0x68] sm:$0xff]  ;;  %v2590_v46 = vpack.c.bf16 %v1403_v45, %v1401_v43 }
  0xc1   :  { %1879 = vmatprep.subr.bf16.mxu1 %v2524_v48 }
  0xc2   :  { %1881 = vmatpush1.bf16.msra.mxu1 %v2527_v51 }
  0xc3   :  { %1183 = vmatpush1.bf16.msra.mxu0 %v2156_v52  ;;  %v2274_v52 = vld [vmem:[%s2710_s0 + $0x18] ss:$36 sps:$4 sm:$0xff]  }
  0xc4   :  { %1184 = vmatprep.subr.bf16.mxu0 %v2165_v53  ;;  %v2533_v53 = vpack.c.bf16 %v1372_v50, %v1370_v49  ;;  %v1408_v49 = vld [vmem:[#allocation4 + $0x198] sm:$0xff] }
  0xc5   :  { %v2594_v50 = vpack.c.bf16 %v1408_v49, %v1406_v47 }
  0xc6   :  { %1883 = vmatprep.subr.bf16.mxu1 %v2533_v53 }
  0xc7   :  { %1185 = vmatpush1.bf16.msra.mxu0 %v2163_v56  ;;  %v2278_v56 = vld [vmem:[%s2710_s0 + $0x64] ss:$36 sps:$4 sm:$0xff]  }
  0xc8   :  { %1207 = vmatprep.subr.bf16.mxu0 %v2174_v59  ;;  %v2539_v59 = vpack.c.bf16 %v1371_v55, %v1369_v54  ;;  %v1407_v54 = vld [vmem:[#allocation4 + $0x190] sm:$0xff] }
  0xca   :  { %1187 = vmatmul.mubr.bf16.vlgmr.msra.gmra.mrb[0].mxu0 %v2169_v61  ;;  %v1373_v61 = vld [vmem:[#allocation4 + $0x80] sm:$0xff]  ;;  %1885 = vmatpush1.bf16.msra.mxu1 %v2539_v59 }
  0xcb   :  { %1208 = vmatpush1.bf16.msra.mxu0 %v2172_v1  ;;  %1196 = vmatprep.mubr.bf16.mxu0 %v2259_v2  ;;  %v1380_v1 = vld [vmem:[#allocation4 + $0xb8] sm:$0xff]  ;;  %v2545_v2 = vpack.c.bf16 %v1375_v63, %v1373_v61  ;;  %v1409_v61 = vld [vmem:[#allocation4 + $0x1a0] sm:$0xff]  ;;  %v1411_v63 = vld [vmem:[#allocation4 + $0x1b0] sm:$0xff] }
  0xcc   :  { %1209 = vmatprep.subr.bf16.mxu0 %v2180_v3  ;;  %v2281_v3 = vld [vmem:[%s2710_s0 + $0x60] ss:$36 sps:$4 sm:$0xff]   ;;  %1887 = vmatprep.subr.bf16.mxu1 %v2542_v60  ;;  %v2551_v4 = vpack.c.bf16 %v1380_v1, %v1378_v0  ;;  %v2602_v0 = vpack.c.bf16 %v1411_v63, %v1409_v61  ;;  %v1414_v1 = vld [vmem:[#allocation4 + $0x1c8] sm:$0xff] }
  0xce   :  { %1889 = vmatpush1.bf16.msra.mxu1 %v2545_v2 }
  0xcf   :  { %1210 = vmatpush1.bf16.msra.mxu0 %v2178_v6  ;;  %v1377_v6 = vld [vmem:[#allocation4 + $0xa0] sm:$0xff]  ;;  %1891 = vmatprep.subr.bf16.mxu1 %v2551_v4 }
  0xd0   :  { %1211 = vmatprep.subr.bf16.mxu0 %v2186_v7  ;;  %v1379_v7 = vld [vmem:[#allocation4 + $0xb0] sm:$0xff] }
  0xd2   :  { %1197 = vmatmul.mubr.bf16.gmra.mrb[4].mxu0 %v2264_v8  ;;  %v1382_v8 = vld [vmem:[#allocation4 + $0xc8] sm:$0xff] }
  0xd3   :  { %1212 = vmatpush1.bf16.msra.mxu0 %v2184_v9  ;;  %1239 = vmatprep.mubr.bf16.mxu0 %v2276_v10  ;;  %v1384_v9 = vld [vmem:[#allocation4 + $0xd8] sm:$0xff]  ;;  %v2554_v10 = vpack.c.bf16 %v1379_v7, %v1377_v6  ;;  %v1413_v7 = vld [vmem:[#allocation4 + $0x1c0] sm:$0xff] }
  0xd4   :  { %1213 = vmatprep.subr.bf16.mxu0 %v2192_v11  ;;  %v2557_v11 = vpack.c.bf16 %v1384_v9, %v1382_v8  ;;  %v1415_v8 = vld [vmem:[#allocation4 + $0x1d0] sm:$0xff] }
  0xd5   :  { %1893 = vmatpush1.bf16.msra.mxu1 %v2554_v10  ;;  %v2608_v9 = vpack.c.bf16 %v1415_v8, %v1413_v7 }
  0xd6   :  { %1895 = vmatprep.subr.bf16.mxu1 %v2557_v11 }
  0xd7   :  { %1214 = vmatpush1.bf16.msra.mxu0 %v2190_v13  ;;  %v1383_v13 = vld [vmem:[#allocation4 + $0xd0] sm:$0xff] }
  0xd8   :  { %1215 = vmatprep.subr.bf16.mxu0 %v2198_v14  ;;  %v1386_v14 = vld [vmem:[#allocation4 + $0xe8] sm:$0xff] }
  0xdb   :  { %1216 = vmatpush1.bf16.msra.mxu0 %v2196_v15  ;;  %v1388_v15 = vld [vmem:[#allocation4 + $0xf8] sm:$0xff] }
  0xdc   :  { %1217 = vmatprep.subr.bf16.mxu0 %v2204_v16  ;;  %v2560_v16 = vpack.c.bf16 %v1383_v13, %v1381_v12  ;;  %v1418_v12 = vld [vmem:[#allocation4 + $0x1e8] sm:$0xff]  ;;  %v1420_v13 = vld [vmem:[#allocation4 + $0x1f8] sm:$0xff] }
  0xde   :  { %1897 = vmatpush1.bf16.msra.mxu1 %v2560_v16 }
  0xdf   :  { %1218 = vmatpush1.bf16.msra.mxu0 %v2202_v17  ;;  %v2563_v17 = vpack.c.bf16 %v1388_v15, %v1386_v14  ;;  %v2612_v14 = vpack.c.bf16 %v1420_v13, %v1418_v12  ;;  %v1417_v15 = vld [vmem:[#allocation4 + $0x1e0] sm:$0xff] }
  0xe0   :  { %1219 = vmatprep.subr.bf16.mxu0 %v2210_v18  ;;  %v1385_v18 = vld [vmem:[#allocation4 + $0xe0] sm:$0xff] }
  0xe1   :  { %1899 = vmatprep.subr.bf16.mxu1 %v2563_v17 }
  0xe3   :  { %1220 = vmatpush1.bf16.msra.mxu0 %v2208_v19  ;;  %v1387_v19 = vld [vmem:[#allocation4 + $0xf0] sm:$0xff] }
  0xe4   :  { %1221 = vmatprep.subr.bf16.mxu0 %v2216_v20  ;;  %v1390_v20 = vld [vmem:[#allocation4 + $0x108] sm:$0xff] }
  0xe7   :  { %1222 = vmatpush1.bf16.msra.mxu0 %v2214_v21  ;;  %v1392_v21 = vld [vmem:[#allocation4 + $0x118] sm:$0xff] }
  0xe8   :  { %1223 = vmatprep.subr.bf16.mxu0 %v2225_v22  ;;  %v2566_v22 = vpack.c.bf16 %v1387_v19, %v1385_v18  ;;  %v1419_v18 = vld [vmem:[#allocation4 + $0x1f0] sm:$0xff] }
  0xe9   :  { %v2614_v19 = vpack.c.bf16 %v1419_v18, %v1417_v15 }
  0xea   :  { %1901 = vmatpush1.bf16.msra.mxu1 %v2566_v22 }
  0xeb   :  { %1224 = vmatpush1.bf16.msra.mxu0 %v2223_v23  ;;  %v2569_v23 = vpack.c.bf16 %v1392_v21, %v1390_v20 }
  0xec   :  { %1225 = vmatprep.subr.bf16.mxu0 %v2231_v24  ;;  %v1389_v24 = vld [vmem:[#allocation4 + $0x100] sm:$0xff] }
  0xed   :  { %1903 = vmatprep.subr.bf16.mxu1 %v2569_v23 }
  0xef   :  { %1226 = vmatpush1.bf16.msra.mxu0 %v2229_v25  ;;  %v1391_v25 = vld [vmem:[#allocation4 + $0x110] sm:$0xff] }
  0xf0   :  { %1227 = vmatprep.subr.bf16.mxu0 %v2237_v26  ;;  %v2573_v26 = vpack.c.bf16 %v1391_v25, %v1389_v24 }
  0xf2   :  { %1905 = vmatpush1.bf16.msra.mxu1 %v2573_v26 }
  0xf3   :  { %1228 = vmatpush1.bf16.msra.mxu0 %v2235_v27  ;;  %v1394_v27 = vld [vmem:[#allocation4 + $0x128] sm:$0xff] }
  0xf4   :  { %1229 = vmatprep.subr.bf16.mxu0 %v2243_v28  ;;  %v1396_v28 = vld [vmem:[#allocation4 + $0x138] sm:$0xff] }
  0xf7   :  { %1230 = vmatpush1.bf16.msra.mxu0 %v2241_v29  ;;  %v2576_v29 = vpack.c.bf16 %v1396_v28, %v1394_v27 }
  0xf8   :  { %1231 = vmatprep.subr.bf16.mxu0 %v2249_v30  ;;  %v1393_v30 = vld [vmem:[#allocation4 + $0x120] sm:$0xff] }
  0xf9   :  { %1907 = vmatprep.subr.bf16.mxu1 %v2576_v29 }
  0xfb   :  { %1232 = vmatpush1.bf16.msra.mxu0 %v2247_v31  ;;  %v1395_v31 = vld [vmem:[#allocation4 + $0x130] sm:$0xff] }
  0xfc   :  { %1233 = vmatprep.subr.bf16.mxu0 %v2255_v32  ;;  %v2578_v32 = vpack.c.bf16 %v1395_v31, %v1393_v30 }
  0xfe   :  { %1909 = vmatpush1.bf16.msra.mxu1 %v2578_v32 }
  0xff   :  { %1234 = vmatpush1.bf16.msra.mxu0 %v2253_v33  ;;  %v1398_v33 = vld [vmem:[#allocation4 + $0x148] sm:$0xff] }
 0x100   :  { %1235 = vmatprep.subr.bf16.mxu0 %v2267_v34  ;;  %v1400_v34 = vld [vmem:[#allocation4 + $0x158] sm:$0xff] }
 0x103   :  { %1236 = vmatpush1.bf16.msra.mxu0 %v2265_v35  ;;  %v2582_v35 = vpack.c.bf16 %v1400_v34, %v1398_v33 }
 0x104   :  { %1237 = vmatprep.subr.bf16.mxu0 %v2273_v36  ;;  %v1397_v36 = vld [vmem:[#allocation4 + $0x140] sm:$0xff] }
 0x105   :  { %1911 = vmatprep.subr.bf16.mxu1 %v2582_v35 }
 0x107   :  { %1238 = vmatpush1.bf16.msra.mxu0 %v2271_v37  ;;  %v1399_v37 = vld [vmem:[#allocation4 + $0x150] sm:$0xff] }
 0x108   :  { %v2584_v38 = vpack.c.bf16 %v1399_v37, %v1397_v36 }
 0x10a   :  { %1240 = vmatmul.mubr.bf16.vlgmr.msra.gmra.mrb[0].mxu0 %v2274_v52  ;;  %1913 = vmatpush1.bf16.msra.mxu1 %v2584_v38  ;;  %v1405_v52 = vld [vmem:[#allocation4 + $0x180] sm:$0xff] }
 0x10b   :  { %1249 = vmatprep.mubr.bf16.mxu0 %v2278_v56  ;;  %1915 = vmatprep.subr.bf16.mxu1 %v2588_v42  ;;  %v2596_v55 = vpack.c.bf16 %v1407_v54, %v1405_v52  ;;  %v1410_v56 = vld [vmem:[#allocation4 + $0x1a8] sm:$0xff] }
 0x10c   :  { %v2600_v58 = vpack.c.bf16 %v1412_v57, %v1410_v56 }
 0x10e   :  { %1917 = vmatpush1.bf16.msra.mxu1 %v2590_v46 }
 0x10f   :  { %1919 = vmatprep.subr.bf16.mxu1 %v2594_v50 }
 0x112   :  { %1250 = vmatmul.mubr.bf16.gmra.mrb[4].mxu0 %v2281_v3  ;;  %1921 = vmatpush1.bf16.msra.mxu1 %v2596_v55  ;;  %v1416_v3 = vld [vmem:[#allocation4 + $0x1d8] sm:$0xff] }
 0x113   :  { %1923 = vmatprep.subr.bf16.mxu1 %v2600_v58  ;;  %v2606_v6 = vpack.c.bf16 %v1416_v3, %v1414_v1 }
 0x116   :  { %1925 = vmatpush1.bf16.msra.mxu1 %v2602_v0 }
 0x117   :  { %1927 = vmatprep.subr.bf16.mxu1 %v2606_v6 }
 0x11a   :  { %1929 = vmatpush1.bf16.msra.mxu1 %v2608_v9 }
 0x11b   :  { %1931 = vmatprep.subr.bf16.mxu1 %v2612_v14 }
 0x11e   :  { %1933 = vmatpush1.bf16.msra.mxu1 %v2614_v19 }
 0x11f   :  { %1935 = vmatprep.subr.bf16.mxu1 %v2498_v62 }
 0x164   :  { %v1082_v20 = vpop.f32.mrb[0].mxu1 }
 0x165   :  { %v1084_v21 = vpop.f32.mrb[1].mxu1 }
 0x166   :  { %v1086_v24 = vpop.f32.mrb[2].mxu1 }
 0x167   :  { %v1088_v25 = vpop.f32.mrb[3].mxu1 }
 0x16c   :  { %v1092_v27 = vpop.f32.mrb[4].mxu1 }
 0x16d   :  { %v1094_v28 = vpop.f32.mrb[5].mxu1 }
 0x16e   :  { %v1096_v30 = vpop.f32.mrb[6].mxu1 }
 0x16f   :  { %v1098_v31 = vpop.f32.mrb[7].mxu1 }
 0x184   :  { %v1294_v33 = vpop.f32.mrb[8].mxu1 }
 0x185   :  { %v1296_v34 = vpop.f32.mrb[9].mxu1 }
 0x186   :  { %v1298_v36 = vpop.f32.mrb[10].mxu1 }
 0x187   :  { %v1300_v37 = vpop.f32.mrb[11].mxu1 }
 0x18c   :  { %v1304_v39 = vpop.f32.mrb[12].mxu1 }
 0x18d   :  { %v1306_v41 = vpop.f32.mrb[13].mxu1 }
 0x18e   :  { %v1308_v43 = vpop.f32.mrb[14].mxu1 }
 0x18f   :  { %v1310_v45 = vpop.f32.mrb[15].mxu1 }
 0x1dd   :  { %v1241_v47 = vpop.f32.mrb[0].mxu0 }
 0x1de   :  { %v1998_v49 = vadd.f32 %v1241_v47, %v1082_v20  ;;  %v1243_v52 = vpop.f32.mrb[1].mxu0 }
 0x1df   :  { %v2000_v62 = vadd.f32 %v1243_v52, %v1084_v21  ;;  %v1245_v54 = vpop.f32.mrb[2].mxu0 }
 0x1e0   :  { %v2619_v56 = vadd.f32 %v1998_v49, %v1294_v33  ;;  %v2002_v57 = vadd.f32 %v1245_v54, %v1086_v24  ;;  %v1247_v61 = vpop.f32.mrb[3].mxu0 }
 0x1e1   :  { %v2621_v63 = vadd.f32 %v2000_v62, %v1296_v34  ;;  %v2004_v1 = vadd.f32 %v1247_v61, %v1088_v25 }
 0x1e2   :  { %v2623_v3 = vadd.f32 %v2002_v57, %v1298_v36 }
 0x1e3   :  { %v2625_v7 = vadd.f32 %v2004_v1, %v1300_v37  ;;  %v1332_v25 = vmul.f32 %v2621_v63, %v2621_v63 }
 0x1e4   :  { %v1313_v21 = vadd.f32 %v2623_v3, %v2619_v56 }
 0x1e5   :  { %v1251_v8 = vpop.f32.mrb[4].mxu0  ;;  %v1334_v15 = vmul.f32 %v2625_v7, %v2625_v7  ;;  %v1322_v36 = vadd.f32 %v2625_v7, %v2621_v63 }
 0x1e6   :  { %v2006_v12 = vadd.f32 %v1251_v8, %v1092_v27  ;;  %v1253_v13 = vpop.f32.mrb[5].mxu0 }
 0x1e7   :  { %v2008_v18 = vadd.f32 %v1253_v13, %v1094_v28  ;;  %v1255_v20 = vpop.f32.mrb[6].mxu0  ;;  %v1348_v49 = vadd.f32 %v1334_v15, %v1332_v25 }
 0x1e8   :  { %v2631_v24 = vadd.f32 %v2006_v12, %v1304_v39  ;;  %v2010_v33 = vadd.f32 %v1255_v20, %v1096_v30  ;;  %v1257_v34 = vpop.f32.mrb[7].mxu0 }
 0x1e9   :  { %v2637_v27 = vadd.f32 %v2008_v18, %v1306_v41  ;;  %v2012_v37 = vadd.f32 %v1257_v34, %v1098_v31 }
 0x1ea   :  { %v1314_v47 = vadd.f32 %v2631_v24, %v1313_v21  ;;  %v2640_v28 = vadd.f32 %v2010_v33, %v1308_v43 }
 0x1eb   :  { %v1323_v52 = vadd.f32 %v2637_v27, %v1322_v36  ;;  %v1336_v30 = vmul.f32 %v2637_v27, %v2637_v27  ;;  %v2645_v39 = vadd.f32 %v2012_v37, %v1310_v45 }
 0x1ec   :  { %v1315_v62 = vadd.f32 %v2640_v28, %v1314_v47 }
 0x1ed   :  { %v1349_v54 = vadd.f32 %v1348_v49, %v1336_v30  ;;  %v1324_v57 = vadd.f32 %v2645_v39, %v1323_v52  ;;  %v1338_v31 = vmul.f32 %v2645_v39, %v2645_v39  ;;  %v1584_v52 = vlaneseq }
 0x1ee   :  { %v1316_v41 = vrot.slane %v1315_v62, 4 }
 0x1ef   :  { %v1325_v61 = vrot.slane %v1324_v57, 4  ;;  %v1350_v43 = vadd.f32 %v1349_v54, %v1338_v31 }
 0x1f0   :  { %v1317_v1 = vadd.f32 %v1316_v41, %v1315_v62  ;;  %v1585_v62 = vshrl.u32 %v1584_v52, 7 }
 0x1f1   :  { %v1326_v8 = vadd.f32 %v1325_v61, %v1324_v57  ;;  %v1351_v12 = vrot.slane %v1350_v43, 4 }
 0x1f2   :  { %v1318_v13 = vrot.slane %v1317_v1, 2 }
 0x1f3   :  { %v1327_v15 = vrot.slane %v1326_v8, 2  ;;  %v1352_v18 = vadd.f32 %v1351_v12, %v1350_v43  ;;  %v1573_v43 = vld [vmem:[#allocation6] sm:$0x3]  ;;  %v1605_v12 = vsub.s32 1, %v1585_v62 }
 0x1f4   :  { %v1319_v20 = vadd.f32 %v1318_v13, %v1317_v1 }
 0x1f5   :  { %v1328_v45 = vadd.f32 %v1327_v15, %v1326_v8  ;;  %v1353_v21 = vrot.slane %v1352_v18, 2  ;;  %v1601_v8 = vsub.s32 0, %v1585_v62 }
 0x1f6   :  { %v1320_v33 = vrot.slane %v1319_v20, 1 }
 0x1f7   :  { %v1329_v34 = vrot.slane %v1328_v45, 1  ;;  %v1354_v25 = vadd.f32 %v1353_v21, %v1352_v18 }
 0x1f8   :  { %v1321_v47 = vadd.f32 %v1320_v33, %v1319_v20 }
 0x1f9   :  { %v1330_v36 = vadd.f32 %v1329_v34, %v1328_v45  ;;  %v1355_v37 = vrot.slane %v1354_v25, 1  ;;  %v1597_v34 = vld [vmem:[#allocation7] sm:$0x3] }
 0x1fb   :  { %1485 = vmatprep.mubr.f32.mxu1 %v1330_v36  ;;  %v1356_v49 = vadd.f32 %v1355_v37, %v1354_v25 }
 0x1fc   :  { %1486 = vmatmul.mubr.f32.vlgmr.msra.gmra.mrb[16].mxu1 %v1321_v47 }
 0x1fd   :  { %1937 = vmatpush1.bf16.msra.mxu1 %v2506_v5  ;;  %1558 = vmatprep.mubr.f32.mxu1 %v1356_v49  ;;  %v1333_v5 = vmul.f32 %v2623_v3, %v2623_v3 }
 0x1fe   :  { %1939 = vmatprep.subr.bf16.mxu1 %v2519_v40  ;;  %v1331_v40 = vmul.f32 %v2619_v56, %v2619_v56 }
 0x201   :  { %1941 = vmatpush1.bf16.msra.mxu1 %v2521_v44  ;;  %v1335_v44 = vmul.f32 %v2631_v24, %v2631_v24 }
 0x202   :  { %1943 = vmatprep.subr.bf16.mxu1 %v2524_v48  ;;  %v1339_v48 = vadd.f32 %v1333_v5, %v1331_v40 }
 0x205   :  { %1945 = vmatpush1.bf16.msra.mxu1 %v2527_v51  ;;  %v1340_v51 = vadd.f32 %v1339_v48, %v1335_v44 }
 0x206   :  { %1947 = vmatprep.subr.bf16.mxu1 %v2533_v53  ;;  %v1337_v53 = vmul.f32 %v2640_v28, %v2640_v28 }
 0x209   :  { %1949 = vmatpush1.bf16.msra.mxu1 %v2539_v59  ;;  %v1341_v59 = vadd.f32 %v1340_v51, %v1337_v53 }
 0x20a   :  { %1951 = vmatprep.subr.bf16.mxu1 %v2542_v60 }
 0x20b   :  { %v1342_v60 = vrot.slane %v1341_v59, 4 }
 0x20d   :  { %1953 = vmatpush1.bf16.msra.mxu1 %v2545_v2  ;;  %v1343_v2 = vadd.f32 %v1342_v60, %v1341_v59 }
 0x20e   :  { %1955 = vmatprep.subr.bf16.mxu1 %v2551_v4 }
 0x20f   :  { %v1344_v4 = vrot.slane %v1343_v2, 2 }
 0x211   :  { %1957 = vmatpush1.bf16.msra.mxu1 %v2554_v10  ;;  %v1345_v10 = vadd.f32 %v1344_v4, %v1343_v2 }
 0x212   :  { %1959 = vmatprep.subr.bf16.mxu1 %v2557_v11 }
 0x213   :  { %v1346_v11 = vrot.slane %v1345_v10, 1 }
 0x215   :  { %1961 = vmatpush1.bf16.msra.mxu1 %v2560_v16  ;;  %v1347_v16 = vadd.f32 %v1346_v11, %v1345_v10 }
 0x216   :  { %1963 = vmatprep.subr.bf16.mxu1 %v2563_v17 }
 0x219   :  { %1965 = vmatpush1.bf16.msra.mxu1 %v2566_v22 }
 0x21a   :  { %1967 = vmatprep.subr.bf16.mxu1 %v2569_v23 }
 0x21d   :  { %1969 = vmatpush1.bf16.msra.mxu1 %v2573_v26 }
 0x21e   :  { %1971 = vmatprep.subr.bf16.mxu1 %v2576_v29 }
 0x221   :  { %1973 = vmatpush1.bf16.msra.mxu1 %v2578_v32 }
 0x222   :  { %1975 = vmatprep.subr.bf16.mxu1 %v2582_v35 }
 0x225   :  { %1977 = vmatpush1.bf16.msra.mxu1 %v2584_v38 }
 0x226   :  { %1979 = vmatprep.subr.bf16.mxu1 %v2588_v42 }
 0x229   :  { %1981 = vmatpush1.bf16.msra.mxu1 %v2590_v46 }
 0x22a   :  { %1983 = vmatprep.subr.bf16.mxu1 %v2594_v50 }
 0x22d   :  { %1985 = vmatpush1.bf16.msra.mxu1 %v2596_v55 }
 0x22e   :  { %1987 = vmatprep.subr.bf16.mxu1 %v2600_v58 }
 0x231   :  { %1989 = vmatpush1.bf16.msra.mxu1 %v2602_v0 }
 0x232   :  { %1991 = vmatprep.subr.bf16.mxu1 %v2606_v6 }
 0x235   :  { %1993 = vmatpush1.bf16.msra.mxu1 %v2608_v9 }
 0x236   :  { %1995 = vmatprep.subr.bf16.mxu1 %v2612_v14  ;;  %v2389_v14 = vmov 1966171168  }
 0x239   :  { %1997 = vmatpush1.bf16.msra.mxu1 %v2614_v19  ;;  %v1582_v19 = vunpack.c.l.s4 %v2389_v14 }
 0x23b   :  { %v1583_v30 = vunpack.c.0.s8 %v1582_v19 }
 0x23c   :  { %1559 = vmatmul.mubr.f32.vlgmr.msra.gmra.mrb[18].mxu1 %v1347_v16 }
 0x23d   :  { %v1586_v57 = vsub.s32 %v1583_v30, %v1585_v62 }
 0x2cf   :  { %v1487_v17 = vpop.f32.mrb[16].mxu1 }
 0x2d0   :  { %v1489_v22 = vpop.f32.mrb[17].mxu1  ;;  %v1492_v23 = vmul.f32 0.0078125, %v1487_v17 }
 0x2d1   :  { %v1493_v26 = vmul.f32 0.0078125, %v1489_v22 }
 0x2d2   :  { %v1567_v32 = vmul.f32 %v1492_v23, %v1492_v23 }
 0x2d3   :  { %v1568_v42 = vmul.f32 %v1493_v26, %v1493_v26 }
 0x30f   :  { %v1560_v29 = vpop.f32.mrb[18].mxu1 }
 0x310   :  { %v1565_v35 = vmul.f32 0.0078125, %v1560_v29  ;;  %v1562_v38 = vpop.f32.mrb[19].mxu1 }
 0x311   :  { %v1566_v46 = vmul.f32 0.0078125, %v1562_v38 }
 0x312   :  { %v1569_v50 = vsub.f32 %v1565_v35, %v1567_v32 }
 0x313   :  { %v1570_v55 = vsub.f32 %v1566_v46, %v1568_v42 }
 0x314   :  { %v1571_v58 = vmax.f32 %v1569_v50, 0.0 }
 0x315   :  { %v1572_v0 = vmax.f32 %v1570_v55, 0.0 }
 0x316   :  { %v1574_v6 = vadd.f32 1e-05, %v1571_v58 }
 0x317   :  { %v1575_v9 = vadd.f32 1e-05, %v1572_v0 }
 0x318   :  { %2282 = vrsqrt.f32 %v1574_v6 }
 0x319   :  { %2284 = vrsqrt.f32 %v1575_v9 }
 0x322   :  { %v2283_v54 = vpop.eup %2282 }
 0x323   :  { %v2285_v31 = vpop.eup %2284 }
 0x324   :  { %v1580_v41 = vcombine.low %v2283_v54, %v2285_v31 }
 0x326   :  { %v1587_v61 = vrot.slane %v1580_v41, %v1586_v57 }
 0x328   :  { %v1594_v1 = vrot.slane %v1587_v61, %v1586_v57 }
 0x32a   :  { %v1596_v13 = vmul.f32 %v1594_v1, %v1573_v43 }
 0x32c   :  { %v1602_v15 = vrot.slane %v1596_v13, %v1601_v8  ;;  %v1606_v18 = vrot.slane %v1596_v13, %v1605_v12 }
 0x32e   :  { %v1609_v20 = vmul.f32 %v1602_v15, %v1492_v23  ;;  %v1610_v45 = vmul.f32 %v1606_v18, %v1493_v26  ;;  %v1630_v37 = vmul.f32 %v2619_v56, %v1602_v15  ;;  %v1631_v47 = vmul.f32 %v2621_v63, %v1606_v18 }
 0x32f   :  { %v1632_v49 = vmul.f32 %v2623_v3, %v1602_v15  ;;  %v1633_v5 = vmul.f32 %v2625_v7, %v1606_v18  ;;  %v1634_v48 = vmul.f32 %v2631_v24, %v1602_v15  ;;  %v1635_v51 = vmul.f32 %v2637_v27, %v1606_v18 }
 0x330   :  { %v1613_v21 = vcombine.low %v1609_v20, %v1610_v45  ;;  %v1636_v53 = vmul.f32 %v2640_v28, %v1602_v15  ;;  %v1637_v59 = vmul.f32 %v2645_v39, %v1606_v18 }
 0x332   :  { %v1620_v33 = vrot.slane %v1613_v21, %v1586_v57 }
 0x334   :  { %v1627_v25 = vrot.slane %v1620_v33, %v1586_v57 }
 0x336   :  { %v1629_v36 = vsub.f32 %v1597_v34, %v1627_v25 }
 0x338   :  { %v1642_v40 = vrot.slane %v1629_v36, %v1601_v8  ;;  %v1646_v44 = vrot.slane %v1629_v36, %v1605_v12 }
 0x33a   :  { %v1649_v60 = vadd.f32 %v1642_v40, %v1630_v37  ;;  %v1650_v2 = vadd.f32 %v1646_v44, %v1631_v47  ;;  %v1651_v4 = vadd.f32 %v1642_v40, %v1632_v49  ;;  %v1652_v56 = vadd.f32 %v1646_v44, %v1633_v5 }
 0x33b   :  { %v1653_v10 = vadd.f32 %v1642_v40, %v1634_v48  ;;  %v1654_v63 = vadd.f32 %v1646_v44, %v1635_v51  ;;  %v1655_v11 = vadd.f32 %v1642_v40, %v1636_v53  ;;  %v1656_v3 = vadd.f32 %v1646_v44, %v1637_v59 }
 0x33c   :  { %v1657_v16 = vmax.f32 %v1649_v60, 0.0  ;;  %v1658_v7 = vmax.f32 %v1650_v2, 0.0  ;;  %v1659_v17 = vmax.f32 %v1651_v4, 0.0  ;;  %v1660_v22 = vmax.f32 %v1652_v56, 0.0 }
 0x33d   :  { %v1661_v23 = vmax.f32 %v1653_v10, 0.0  ;;  %v1662_v24 = vmax.f32 %v1654_v63, 0.0  ;;  %v1663_v26 = vmax.f32 %v1655_v11, 0.0  ;;  %v1664_v27 = vmax.f32 %v1656_v3, 0.0 }
 0x33e   :  { %v1866_v29 = vpack.c.bf16 %v1658_v7, %v1657_v16  ;;  %v1867_v28 = vpack.c.bf16 %v1660_v22, %v1659_v17 }
 0x33f   :  { %v1868_v32 = vpack.c.bf16 %v1662_v24, %v1661_v23  ;;  %v1869_v39 = vpack.c.bf16 %v1664_v27, %v1663_v26 }
 0x340   :  { %1689 = vst [vmem:[%s2715_s5] sm:$0xff] %v1866_v29  ;;  %1690 = vst [vmem:[%s2715_s5 + $0x8] sm:$0xff] %v1867_v28 }
 0x341   :  { %1691 = vst [vmem:[%s2715_s5 + $0x10] sm:$0xff] %v1868_v32  ;;  %1692 = vst [vmem:[%s2715_s5 + $0x18] sm:$0xff] %v1869_v39 }
 0x342   :  { %1697 = vsyncpa [#allocation3], 1 }
 0x343   :  { %1698 = vsyncpa [#allocation5], 1 }
 0x344   :  { %1699 = vsyncpa [#allocation8], 1 }

// kernel: generator_forward.7
= control target key start
LH: loop header
LB: loop body
LE: loop exit
PB: predicated region body
PF: predicated region fallthrough
CT: control target
= control target key end

     0   :  { %10 = vsyncpa [#allocation3], 0  ;;  %s2351_s0 = inlined_call_operand.vmem [shape: bf16[128,576], index: 0, kind: input, shape index: {}]   ;;  %s2352_s1 = inlined_call_operand.hbm [shape: bf16[576,128], index: 1, kind: input, shape index: {}]   ;;  %s2353_s2 = inlined_call_operand.hbm [shape: f32[128,128], index: 2, kind: input, shape index: {}]   ;;  %s2354_s3 = inlined_call_operand.hbm [shape: f32[1,128], index: 3, kind: input, shape index: {}]   ;;  %s2355_s4 = inlined_call_operand.hbm [shape: f32[1,128], index: 4, kind: input, shape index: {}]   ;;  %s2356_s5 = inlined_call_operand.vmem [shape: bf16[128,128], index: 5, kind: output, shape index: {}]  }
   0x1   :  { %11 = vsyncpa [#allocation5], 0 }
   0x2   :  { %12 = vsyncpa [#allocation8], 0  ;;  %s1975_s18 = smov [#allocation4]   ;;  %s1881_s22 = scalar_lea.hbm %s2353_s2, 2048 }
   0x3   :  { %s32_s19 = sshll.u32 %s1975_s18, 4  ;;  %p1882_p0 = scmp.ne.s32.totalorder %s2353_s2, %s1881_s22  ;;  %s33_s19 = int_to_ptr.vmem [resolvable:$true] %s32_s19 }
   0x4   :  { %p1885_p1 = scmp.lt.u32.totalorder %s1881_s22, %s2353_s2 }
   0x6   :  { %p1887_p2 = pnand %p1885_p1, %p1882_p0 }
   0x8   :  { %1890 = shalt.err (!%p1887_p2)
}
   0x9   :  { %s1891_s27 = scalar_lea.vmem %s33_s19, 2048  ;;  %p1896_p4 = scmp.lt.s32.totalorder %s33_s19, %s33_s19 }
   0xa   :  { %p1892_p3 = scmp.ne.s32.totalorder %s33_s19, %s1891_s27  ;;  %p1897_p5 = scmp.lt.s32.totalorder %s1891_s27, %s1891_s27 }
   0xc   :  { %p1898_p6 = por %p1897_p5, %p1896_p4 }
   0xe   :  { %p1899_p7 = pnand %p1898_p6, %p1892_p3 }
  0x10   :  { %1902 = shalt.err (!%p1899_p7)
}
  0x11   :  { %s1976_s28 = smov 128   ;;  %s1977_s29 = smov 8  }
  0x12   :  { %38 = dma.hbm_to_vmem [thread:$0]  %s2353_s2, 2048, %s33_s19, [#allocation5], %s1976_s28, %s1976_s28, %s1977_s29  }
  0x13   :  { %s1978_s7 = smov [#allocation2]   ;;  %s1903_s11 = scalar_lea.hbm %s2352_s1, 4608 }
  0x14   :  { %s20_s8 = sshll.u32 %s1978_s7, 4  ;;  %p1904_p8 = scmp.ne.s32.totalorder %s2352_s1, %s1903_s11  ;;  %s21_s8 = int_to_ptr.vmem [resolvable:$true] %s20_s8 }
  0x15   :  { %p1907_p9 = scmp.lt.u32.totalorder %s1903_s11, %s2352_s1 }
  0x17   :  { %p1909_p10 = pnand %p1907_p9, %p1904_p8 }
  0x19   :  { %1912 = shalt.err (!%p1909_p10)
}
  0x1a   :  { %s1913_s16 = scalar_lea.vmem %s21_s8, 4608  ;;  %p1918_p12 = scmp.lt.s32.totalorder %s21_s8, %s21_s8 }
  0x1b   :  { %p1914_p11 = scmp.ne.s32.totalorder %s21_s8, %s1913_s16  ;;  %p1919_p13 = scmp.lt.s32.totalorder %s1913_s16, %s1913_s16 }
  0x1d   :  { %p1920_p0 = por %p1919_p13, %p1918_p12 }
  0x1f   :  { %p1921_p1 = pnand %p1920_p0, %p1914_p11 }
  0x21   :  { %1924 = shalt.err (!%p1921_p1)
}
  0x22   :  { %s1979_s2 = smov 64   ;;  %s1980_s17 = smov 4  }
  0x23   :  { %26 = dma.hbm_to_vmem [thread:$0]  %s2352_s1, 4608, %s21_s8, [#allocation3], %s1979_s2, %s1979_s2, %s1980_s17  }
  0x24   :  { %s1981_s20 = smov [#allocation6]   ;;  %s1982_s22 = smov [#allocation7]  }
  0x25   :  { %s45_s21 = sshll.u32 %s1981_s20, 4  ;;  %s55_s23 = sshll.u32 %s1982_s22, 4  ;;  %s46_s21 = int_to_ptr.vmem [resolvable:$true] %s45_s21  ;;  %s56_s23 = int_to_ptr.vmem [resolvable:$true] %s55_s23 }
  0x26   :  { %s1925_s26 = scalar_lea.hbm %s2354_s3, 16 }
  0x27   :  { %p1926_p2 = scmp.ne.s32.totalorder %s2354_s3, %s1925_s26  ;;  %p1929_p3 = scmp.lt.u32.totalorder %s1925_s26, %s2354_s3 }
  0x29   :  { %p1931_p4 = pnand %p1929_p3, %p1926_p2 }
  0x2b   :  { %1934 = shalt.err (!%p1931_p4)
}
  0x2c   :  { %s1935_s1 = scalar_lea.vmem %s46_s21, 16  ;;  %s1939_s6 = scalar_lea.vmem %s46_s21, 32 }
  0x2d   :  { %p1936_p5 = scmp.ne.s32.totalorder %s46_s21, %s1935_s1  ;;  %p1940_p6 = scmp.lt.s32.totalorder %s46_s21, %s46_s21 }
  0x2e   :  { %p1941_p7 = scmp.lt.s32.totalorder %s1939_s6, %s1935_s1 }
  0x30   :  { %p1942_p8 = por %p1941_p7, %p1940_p6 }
  0x32   :  { %p1943_p9 = pnand %p1942_p8, %p1936_p5 }
  0x34   :  { %1946 = shalt.err (!%p1943_p9)
}
  0x35   :  { %48 = dma.hbm_to_vmem [thread:$0]  %s2354_s3, 16, %s46_s21, [#allocation5]  }
  0x36   :  { %s1947_s11 = scalar_lea.hbm %s2355_s4, 16 }
  0x37   :  { %p1948_p10 = scmp.ne.s32.totalorder %s2355_s4, %s1947_s11  ;;  %p1951_p11 = scmp.lt.u32.totalorder %s1947_s11, %s2355_s4 }
  0x39   :  { %p1953_p12 = pnand %p1951_p11, %p1948_p10 }
  0x3b   :  { %1956 = shalt.err (!%p1953_p12)
}
  0x3c   :  { %s1957_s16 = scalar_lea.vmem %s56_s23, 16  ;;  %s1961_s2 = scalar_lea.vmem %s56_s23, 32 }
  0x3d   :  { %p1958_p13 = scmp.ne.s32.totalorder %s56_s23, %s1957_s16  ;;  %p1962_p0 = scmp.lt.s32.totalorder %s56_s23, %s56_s23 }
  0x3e   :  { %p1963_p1 = scmp.lt.s32.totalorder %s1961_s2, %s1957_s16 }
  0x40   :  { %p1964_p2 = por %p1963_p1, %p1962_p0 }
  0x42   :  { %p1965_p3 = pnand %p1964_p2, %p1958_p13 }
  0x44   :  { %1968 = shalt.err (!%p1965_p3)
}
  0x45   :  { %58 = dma.hbm_to_vmem [thread:$0]  %s2355_s4, 16, %s56_s23, [#allocation8]  }
  0x46   :  { %1969 = dma.done.wait [#allocation3], 4608  }
  0x47   :  { %1970 = vsyncadd [#allocation3], 4294962688 }
  0x48   :  { %1971 = dma.done.wait [#allocation5], 2064  }
  0x49   :  { %1972 = vsyncadd [#allocation5], 4294965232 }
  0x4a   :  { %1973 = dma.done.wait [#allocation8], 16  }
  0x4b   :  { %1974 = vsyncadd [#allocation8], 4294967280  ;;  %v1787_v0 = vld [vmem:[#allocation2 + $0x40] sm:$0xff]   ;;  %v1791_v4 = vld [vmem:[#allocation2 + $0x48] sm:$0xff]   ;;  %vm608_vm0 = vcmask 523264   ;;  %vm1984_vm1 = vmmov 0  }
  0x4c   :  { %v1788_v1 = vld [vmem:[#allocation2 + $0xc0] sm:$0xff]   ;;  %1460 = vmatprep.subr.bf16.mxu0 %v1787_v0  ;;  %v1792_v5 = vld [vmem:[#allocation2 + $0xc8] sm:$0xff]   ;;  %v1795_v8 = vld [vmem:[#allocation2 + $0x50] sm:$0xff]  }
  0x4d   :  { %v1789_v2 = vld [vmem:[#allocation2] sm:$0xff]   ;;  %1524 = vmatprep.subr.bf16.mxu1 %v1788_v1  ;;  %v1793_v6 = vld [vmem:[#allocation2 + $0x8] sm:$0xff]   ;;  %v1796_v9 = vld [vmem:[#allocation2 + $0xd0] sm:$0xff]  }
  0x4e   :  { %v1790_v3 = vld [vmem:[#allocation2 + $0x80] sm:$0xff]   ;;  %1461 = vmatpush3.bf16.msra.mxu0 %v1789_v2  ;;  %v1794_v7 = vld [vmem:[#allocation2 + $0x88] sm:$0xff]   ;;  %v1797_v10 = vld [vmem:[#allocation2 + $0x10] sm:$0xff]  }
  0x4f   :  { %1525 = vmatpush3.bf16.msra.mxu1 %v1790_v3  ;;  %1462 = vmatprep.subr.bf16.mxu0 %v1791_v4  ;;  %v1798_v11 = vld [vmem:[#allocation2 + $0x90] sm:$0xff]   ;;  %v1799_v12 = vld [vmem:[#allocation2 + $0x58] sm:$0xff]   ;;  %v1803_v16 = vld [vmem:[#allocation2 + $0x60] sm:$0xff]  }
  0x50   :  { %1526 = vmatprep.subr.bf16.mxu1 %v1792_v5  ;;  %v1800_v13 = vld [vmem:[#allocation2 + $0xd8] sm:$0xff]   ;;  %v1804_v17 = vld [vmem:[#allocation2 + $0xe0] sm:$0xff]   ;;  %v1807_v20 = vld [vmem:[#allocation2 + $0x68] sm:$0xff]  }
  0x51   :  { %v1801_v14 = vld [vmem:[#allocation2 + $0x18] sm:$0xff]   ;;  %v1805_v18 = vld [vmem:[#allocation2 + $0x20] sm:$0xff]   ;;  %v1808_v21 = vld [vmem:[#allocation2 + $0xe8] sm:$0xff]  }
  0x52   :  { %1463 = vmatpush3.bf16.msra.mxu0 %v1793_v6  ;;  %v1802_v15 = vld [vmem:[#allocation2 + $0x98] sm:$0xff]   ;;  %v1806_v19 = vld [vmem:[#allocation2 + $0xa0] sm:$0xff]   ;;  %v1809_v22 = vld [vmem:[#allocation2 + $0x28] sm:$0xff]  }
  0x53   :  { %1527 = vmatpush3.bf16.msra.mxu1 %v1794_v7  ;;  %1464 = vmatprep.subr.bf16.mxu0 %v1795_v8  ;;  %v1810_v23 = vld [vmem:[#allocation2 + $0xa8] sm:$0xff]   ;;  %v1811_v24 = vld [vmem:[#allocation2 + $0x70] sm:$0xff]   ;;  %v1815_v28 = vld [vmem:[#allocation2 + $0x78] sm:$0xff]  }
  0x54   :  { %1528 = vmatprep.subr.bf16.mxu1 %v1796_v9  ;;  %v1812_v25 = vld [vmem:[#allocation2 + $0xf0] sm:$0xff]   ;;  %v1816_v29 = vld [vmem:[#allocation2 + $0xf8] sm:$0xff]   ;;  %v1824_v35 = vld [vmem:[%s2351_s0 + $0xc] ss:$20 sps:$4 sm:$0xff]  }
  0x55   :  { %v1813_v26 = vld [vmem:[#allocation2 + $0x30] sm:$0xff]   ;;  %v1817_v30 = vld [vmem:[#allocation2 + $0x38] sm:$0xff]   ;;  %v1825_v36 = vld [vmem:[#allocation2 + $0x100] sm:$0xff]   ;;  %762 = vmatprep.mubr.bf16.mxu1 %v1824_v35 }
  0x56   :  { %1465 = vmatpush3.bf16.msra.mxu0 %v1797_v10  ;;  %v1814_v27 = vld [vmem:[#allocation2 + $0xb0] sm:$0xff]   ;;  %v1818_v31 = vld [vmem:[#allocation2 + $0xb8] sm:$0xff]   ;;  %v1826_v37 = vld [vmem:[%s2351_s0 + $0x2c] ss:$20 sps:$4 sm:$0xff]  }
  0x57   :  { %1529 = vmatpush3.bf16.msra.mxu1 %v1798_v11  ;;  %1466 = vmatprep.subr.bf16.mxu0 %v1799_v12  ;;  %v1819_v32 = vld [vmem:[%s2351_s0] ss:$20 sps:$4 sm:$0xff]   ;;  %v1821_v33 = vld [vmem:[%s2351_s0 + $0x4] ss:$20 sps:$4 sm:$0xff]   ;;  %v1822_v34 = vld [vmem:[%s2351_s0 + $0x8] ss:$20 sps:$4 sm:$0xff]  }
  0x58   :  { %1530 = vmatprep.subr.bf16.mxu1 %v1800_v13  ;;  %665 = vmatprep.mubr.bf16.mxu0 %v1821_v33  ;;  %v1828_v38 = vld [vmem:[%s2351_s0 + $0x34] ss:$20 sps:$4 sm:$0xff]   ;;  %v1831_v40 = vld [vmem:[%s2351_s0 + $0x30] ss:$20 sps:$4 sm:$0xff]   ;;  %v1837_v45 = vld [vmem:[%s2351_s0 + $0x58] ss:$20 sps:$4 sm:$0xff]  }
  0x59   :  { %v1830_v39 = vld [vmem:[%s2351_s0 + $0x28] ss:$20 sps:$4 sm:$0xff]   ;;  %v1836_v44 = vld [vmem:[%s2351_s0 + $0x50] ss:$20 sps:$4 sm:$0xff]   ;;  %v1843_v50 = vld [vmem:[%s2351_s0 + $0x78] ss:$20 sps:$4 sm:$0xff]  }
  0x5a   :  { %1467 = vmatpush3.bf16.msra.mxu0 %v1801_v14  ;;  %v1832_v41 = vld [vmem:[%s2351_s0 + $0x54] ss:$20 sps:$4 sm:$0xff]   ;;  %v1834_v43 = vld [vmem:[%s2351_s0 + $0x5c] ss:$20 sps:$4 sm:$0xff]   ;;  %v1841_v48 = vld [vmem:[%s2351_s0 + $0x84] ss:$20 sps:$4 sm:$0xff]  }
  0x5b   :  { %1531 = vmatpush3.bf16.msra.mxu1 %v1802_v15  ;;  %1468 = vmatprep.subr.bf16.mxu0 %v1803_v16  ;;  %v1838_v42 = vld [vmem:[#allocation2 + $0x108] sm:$0xff]   ;;  %v1851_v46 = vld [vmem:[#allocation2 + $0x110] sm:$0xff]   ;;  %v1864_v49 = vld [vmem:[#allocation2 + $0x118] sm:$0xff]   ;;  %v1983_v12 = vmov 0.0|0.0  }
  0x5c   :  { %1532 = vmatprep.subr.bf16.mxu1 %v1804_v17  ;;  %v1839_v47 = vld [vmem:[%s2351_s0 + $0x7c] ss:$20 sps:$4 sm:$0xff]   ;;  %v1844_v51 = vld [vmem:[%s2351_s0 + $0x80] ss:$20 sps:$4 sm:$0xff]   ;;  %v1845_v52 = vld [vmem:[%s2351_s0 + $0xa4] ss:$20 sps:$4 sm:$0xff]  }
  0x5d   :  { %v1847_v53 = vld [vmem:[%s2351_s0 + $0xac] ss:$20 sps:$4 sm:$0xff]   ;;  %v1850_v55 = vld [vmem:[%s2351_s0 + $0xa8] ss:$20 sps:$4 sm:$0xff]   ;;  %v1857_v59 = vld [vmem:[%s2351_s0 + $0xd0] ss:$20 sps:$4 sm:$0xff]  }
  0x5e   :  { %1469 = vmatpush3.bf16.msra.mxu0 %v1805_v18  ;;  %v1849_v54 = vld [vmem:[%s2351_s0 + $0xa0] ss:$20 sps:$4 sm:$0xff]   ;;  %v1856_v58 = vld [vmem:[%s2351_s0 + $0xc8] ss:$20 sps:$4 sm:$0xff]   ;;  %v1862_v62 = vld [vmem:[%s2351_s0 + $0xf0] ss:$20 sps:$4 sm:$0xff]  }
  0x5f   :  { %1533 = vmatpush3.bf16.msra.mxu1 %v1806_v19  ;;  %1470 = vmatprep.subr.bf16.mxu0 %v1807_v20  ;;  %v1852_v56 = vld [vmem:[%s2351_s0 + $0xcc] ss:$20 sps:$4 sm:$0xff]   ;;  %v1854_v57 = vld [vmem:[%s2351_s0 + $0xd4] ss:$20 sps:$4 sm:$0xff]   ;;  %v1860_v61 = vld [vmem:[%s2351_s0 + $0xfc] ss:$20 sps:$4 sm:$0xff]  }
  0x60   :  { %1534 = vmatprep.subr.bf16.mxu1 %v1808_v21  ;;  %v1858_v60 = vld [vmem:[%s2351_s0 + $0xf4] ss:$20 sps:$4 sm:$0xff]   ;;  %v1863_v63 = vld [vmem:[%s2351_s0 + $0xf8] ss:$20 sps:$4 sm:$0xff]   ;;  %v1865_v0 = vld [vmem:[%s2351_s0 + $0x11c] ss:$20 sps:$4 sm:$0xff]  }
  0x61   :  { %v1867_v1 = vld [vmem:[%s2351_s0 + $0x124] ss:$20 sps:$4 sm:$0xff]   ;;  %v1870_v3 = vld [vmem:[%s2351_s0 + $0x120] ss:$20 sps:$4 sm:$0xff]   ;;  %v1874_v7 = vld [vmem:[%s2351_s0 + $0x88] ss:$20 sps:$4 sm:$0xff]  }
  0x62   :  { %1471 = vmatpush3.bf16.msra.mxu0 %v1809_v22  ;;  %v1869_v2 = vld [vmem:[%s2351_s0 + $0x118] ss:$20 sps:$4 sm:$0xff]   ;;  %v1871_v4 = vld [vmem:[%s2351_s0 + $0x10] ss:$20 sps:$4 sm:$0xff]   ;;  %v1873_v6 = vld [vmem:[%s2351_s0 + $0x60] ss:$20 sps:$4 sm:$0xff]  }
  0x63   :  { %1535 = vmatpush3.bf16.msra.mxu1 %v1810_v23  ;;  %1472 = vmatprep.subr.bf16.mxu0 %v1811_v24  ;;  %v1872_v5 = vld [vmem:[%s2351_s0 + $0x38] ss:$20 sps:$4 sm:$0xff]   ;;  %v1875_v8 = vld [vmem:[%s2351_s0 + $0xb0] ss:$20 sps:$4 sm:$0xff]   ;;  %v1877_v10 = vld [vmem:[%s2351_s0 + $0x100] ss:$20 sps:$4 sm:$0xff]  }
  0x64   :  { %1536 = vmatprep.subr.bf16.mxu1 %v1812_v25  ;;  %v1876_v9 = vld [vmem:[%s2351_s0 + $0xd8] ss:$20 sps:$4 sm:$0xff]   ;;  %v1878_v11 = vld [vmem:[%s2351_s0 + $0x128] ss:$20 sps:$4 sm:$0xff]   ;;  %v982_v13 = vld [vmem:[#allocation4] sm:$0xff] }
  0x65   :  { %v983_v14 = vld [vmem:[#allocation4 + $0x8] sm:$0xff]  ;;  %v984_v16 = vld [vmem:[#allocation4 + $0x10] sm:$0xff]  ;;  %v985_v17 = vld [vmem:[#allocation4 + $0x18] sm:$0xff] }
  0x66   :  { %1473 = vmatpush3.bf16.msra.mxu0 %v1813_v26  ;;  %v1729_v15 = vpack.c.bf16 %v983_v14, %v982_v13  ;;  %v1732_v18 = vpack.c.bf16 %v985_v17, %v984_v16  ;;  %v986_v19 = vld [vmem:[#allocation4 + $0x20] sm:$0xff]  ;;  %v987_v20 = vld [vmem:[#allocation4 + $0x28] sm:$0xff]  ;;  %v988_v22 = vld [vmem:[#allocation4 + $0x30] sm:$0xff] }
  0x67   :  { %1537 = vmatpush3.bf16.msra.mxu1 %v1814_v27  ;;  %1474 = vmatprep.subr.bf16.mxu0 %v1815_v28  ;;  %v1735_v21 = vpack.c.bf16 %v987_v20, %v986_v19  ;;  %v989_v23 = vld [vmem:[#allocation4 + $0x38] sm:$0xff]  ;;  %v990_v25 = vld [vmem:[#allocation4 + $0x40] sm:$0xff]  ;;  %v991_v26 = vld [vmem:[#allocation4 + $0x48] sm:$0xff] }
  0x68   :  { %1538 = vmatprep.subr.bf16.mxu1 %v1816_v29  ;;  %v1738_v24 = vpack.c.bf16 %v989_v23, %v988_v22  ;;  %v1741_v27 = vpack.c.bf16 %v991_v26, %v990_v25  ;;  %v992_v28 = vld [vmem:[#allocation4 + $0x50] sm:$0xff]  ;;  %v993_v29 = vld [vmem:[#allocation4 + $0x58] sm:$0xff] }
  0x69   :  { %v997_v35 = vld [vmem:[#allocation4 + $0x78] sm:$0xff] }
  0x6a   :  { %1475 = vmatpush3.bf16.msra.mxu0 %v1817_v30  ;;  %v1744_v30 = vpack.c.bf16 %v993_v29, %v992_v28 }
  0x6b   :  { %1539 = vmatpush3.bf16.msra.mxu1 %v1818_v31  ;;  %1634 = vmatprep.subr.bf16.mxu0 %v1825_v36  ;;  %v994_v31 = vld [vmem:[#allocation4 + $0x60] sm:$0xff] }
  0x6c   :  { %1728 = vmatprep.subr.bf16.mxu1 %v1983_v12 }
  0x6d   :  { %666 = vmatmul.mubr.bf16.vlgmr.msra.gmra.mrb[0].mxu0 %v1819_v32  ;;  %v995_v32 = vld [vmem:[#allocation4 + $0x68] sm:$0xff] }
  0x6e   :  { %763 = vmatmul.mubr.bf16.vlgmr.msra.gmra.mrb[0].mxu1 %v1822_v34  ;;  %1635 = vmatpush3.bf16.msra.mxu0 %v1825_v36  ;;  %v1747_v33 = vpack.c.bf16 %v995_v32, %v994_v31  ;;  %v996_v34 = vld [vmem:[#allocation4 + $0x70] sm:$0xff] }
  0x6f   :  { %673 = vmatprep.mubr.bf16.mxu0 %v1826_v37  ;;  %770 = vmatprep.mubr.bf16.mxu1 %v1828_v38  ;;  %v1750_v36 = vpack.c.bf16 %v997_v35, %v996_v34  ;;  %v1985_v37 = vmov 0.0  }
  0x70   :  { %1636 = vmatprep.subr.bf16.mxu0 %v1838_v42  ;;  %1730 = vmatpush3.bf16.msra.mxu1 %v1729_v15 }
  0x71   :  { %1731 = vmatprep.subr.bf16.mxu1 %v1983_v12 }
  0x72   :  { %1637 = vmatpush3.bf16.msra.mxu0 %v1838_v42 }
  0x73   :  { %1638 = vmatprep.subr.bf16.mxu0 %v1851_v46 }
  0x74   :  { %1733 = vmatpush3.bf16.msra.mxu1 %v1732_v18 }
  0x75   :  { %674 = vmatmul.mubr.bf16.gmra.mrb[4].mxu0 %v1830_v39  ;;  %1734 = vmatprep.subr.bf16.mxu1 %v1983_v12 }
  0x76   :  { %771 = vmatmul.mubr.bf16.gmra.mrb[4].mxu1 %v1831_v40  ;;  %681 = vmatprep.mubr.bf16.mxu0 %v1832_v41 }
  0x77   :  { %778 = vmatprep.mubr.bf16.mxu1 %v1834_v43  ;;  %1639 = vmatpush3.bf16.msra.mxu0 %v1851_v46 }
  0x78   :  { %1640 = vmatprep.subr.bf16.mxu0 %v1864_v49  ;;  %1736 = vmatpush3.bf16.msra.mxu1 %v1735_v21 }
  0x79   :  { %1737 = vmatprep.subr.bf16.mxu1 %v1983_v12 }
  0x7b   :  { %1641 = vmatpush3.bf16.msra.mxu0 %v1864_v49 }
  0x7c   :  { %1752 = vmatprep.subr.bf16.mxu0 %v1983_v12  ;;  %1739 = vmatpush3.bf16.msra.mxu1 %v1738_v24 }
  0x7d   :  { %682 = vmatmul.mubr.bf16.gmra.mrb[8].mxu0 %v1836_v44  ;;  %1740 = vmatprep.subr.bf16.mxu1 %v1983_v12 }
  0x7e   :  { %779 = vmatmul.mubr.bf16.gmra.mrb[8].mxu1 %v1837_v45  ;;  %689 = vmatprep.mubr.bf16.mxu0 %v1839_v47 }
  0x7f   :  { %786 = vmatprep.mubr.bf16.mxu1 %v1841_v48 }
  0x80   :  { %1742 = vmatpush3.bf16.msra.mxu1 %v1741_v27 }
  0x81   :  { %1743 = vmatprep.subr.bf16.mxu1 %v1983_v12 }
  0x84   :  { %1745 = vmatpush3.bf16.msra.mxu1 %v1744_v30 }
  0x85   :  { %690 = vmatmul.mubr.bf16.gmra.mrb[12].mxu0 %v1843_v50  ;;  %1746 = vmatprep.subr.bf16.mxu1 %v1983_v12 }
  0x86   :  { %787 = vmatmul.mubr.bf16.gmra.mrb[12].mxu1 %v1844_v51  ;;  %697 = vmatprep.mubr.bf16.mxu0 %v1845_v52 }
  0x87   :  { %794 = vmatprep.mubr.bf16.mxu1 %v1847_v53 }
  0x88   :  { %1748 = vmatpush3.bf16.msra.mxu1 %v1747_v33 }
  0x89   :  { %1749 = vmatprep.subr.bf16.mxu1 %v1983_v12 }
  0x8c   :  { %1751 = vmatpush3.bf16.msra.mxu1 %v1750_v36 }
  0x8d   :  { %698 = vmatmul.mubr.bf16.gmra.mrb[16].mxu0 %v1849_v54 }
  0x8e   :  { %795 = vmatmul.mubr.bf16.gmra.mrb[16].mxu1 %v1850_v55  ;;  %705 = vmatprep.mubr.bf16.mxu0 %v1852_v56 }
  0x8f   :  { %802 = vmatprep.mubr.bf16.mxu1 %v1854_v57 }
  0x95   :  { %706 = vmatmul.mubr.bf16.gmra.mrb[20].mxu0 %v1856_v58 }
  0x96   :  { %803 = vmatmul.mubr.bf16.gmra.mrb[20].mxu1 %v1857_v59  ;;  %713 = vmatprep.mubr.bf16.mxu0 %v1858_v60 }
  0x97   :  { %810 = vmatprep.mubr.bf16.mxu1 %v1860_v61 }
  0x9d   :  { %714 = vmatmul.mubr.bf16.gmra.mrb[24].mxu0 %v1862_v62 }
  0x9e   :  { %811 = vmatmul.mubr.bf16.gmra.mrb[24].mxu1 %v1863_v63  ;;  %721 = vmatprep.mubr.bf16.mxu0 %v1865_v0 }
  0x9f   :  { %818 = vmatprep.mubr.bf16.mxu1 %v1867_v1 }
  0xa5   :  { %722 = vmatmul.mubr.bf16.gmra.mrb[28].mxu0 %v1869_v2 }
  0xa6   :  { %819 = vmatmul.mubr.bf16.gmra.mrb[28].mxu1 %v1870_v3  ;;  %1642 = vmatprep.mubr.msk.bf16.mxu0 %vm608_vm0, %v1871_v4 }
  0xa7   :  { %1690 = vmatprep.mubr.msk.f32.mxu1 %vm1984_vm1, %v1985_v37 }
  0xad   :  { %1643 = vmatmul.mubr.msk.bf16.vlgmr.msra.gmra.mrb[32].mxu0 %vm608_vm0, %v1872_v5 }
  0xae   :  { %1646 = vmatprep.mubr.msk.bf16.mxu0 %vm608_vm0, %v1873_v6  ;;  %1754 = vmatpush3.bf16.msra.mxu0 %v1729_v15 }
  0xaf   :  { %1755 = vmatprep.subr.bf16.mxu0 %v1983_v12 }
  0xb2   :  { %1757 = vmatpush3.bf16.msra.mxu0 %v1732_v18 }
  0xb3   :  { %1758 = vmatprep.subr.bf16.mxu0 %v1983_v12 }
  0xb5   :  { %1647 = vmatmul.mubr.msk.bf16.gmra.mrb[36].mxu0 %vm608_vm0, %v1874_v7 }
  0xb6   :  { %1650 = vmatprep.mubr.msk.bf16.mxu0 %vm608_vm0, %v1875_v8  ;;  %1760 = vmatpush3.bf16.msra.mxu0 %v1735_v21 }
  0xb7   :  { %1761 = vmatprep.subr.bf16.mxu0 %v1983_v12 }
  0xba   :  { %1763 = vmatpush3.bf16.msra.mxu0 %v1738_v24 }
  0xbb   :  { %1764 = vmatprep.subr.bf16.mxu0 %v1983_v12 }
  0xbd   :  { %1651 = vmatmul.mubr.msk.bf16.gmra.mrb[40].mxu0 %vm608_vm0, %v1876_v9 }
  0xbe   :  { %1654 = vmatprep.mubr.msk.bf16.mxu0 %vm608_vm0, %v1877_v10  ;;  %1766 = vmatpush3.bf16.msra.mxu0 %v1741_v27 }
  0xbf   :  { %1767 = vmatprep.subr.bf16.mxu0 %v1983_v12 }
  0xc2   :  { %1769 = vmatpush3.bf16.msra.mxu0 %v1744_v30 }
  0xc3   :  { %1770 = vmatprep.subr.bf16.mxu0 %v1983_v12 }
  0xc5   :  { %1655 = vmatmul.mubr.msk.bf16.gmra.mrb[44].mxu0 %vm608_vm0, %v1878_v11 }
  0xc6   :  { %1772 = vmatpush3.bf16.msra.mxu0 %v1747_v33  ;;  %1725 = vmatprep.mubr.msk.f32.mxu0 %vm1984_vm1, %v1985_v37 }
  0xc7   :  { %1773 = vmatprep.subr.bf16.mxu0 %v1983_v12 }
  0xca   :  { %1775 = vmatpush3.bf16.msra.mxu0 %v1750_v36 }
 0x140   :  { %v1476_v38 = vpop.f32.mrb[0].mxu0 }
 0x141   :  { %v1540_v39 = vpop.f32.mrb[0].mxu1  ;;  %v1477_v40 = vpop.f32.mrb[1].mxu0 }
 0x142   :  { %v1478_v41 = vadd.f32 %v1477_v40, %v1476_v38  ;;  %v1541_v42 = vpop.f32.mrb[1].mxu1  ;;  %v1479_v43 = vpop.f32.mrb[2].mxu0 }
 0x143   :  { %v1542_v44 = vadd.f32 %v1541_v42, %v1540_v39  ;;  %v1543_v45 = vpop.f32.mrb[2].mxu1  ;;  %v1480_v46 = vpop.f32.mrb[3].mxu0 }
 0x144   :  { %v1481_v47 = vadd.f32 %v1480_v46, %v1479_v43  ;;  %v1544_v48 = vpop.f32.mrb[3].mxu1 }
 0x145   :  { %v1545_v49 = vadd.f32 %v1544_v48, %v1543_v45  ;;  %v2192_v50 = vadd.f32 %v1542_v44, %v1478_v41 }
 0x147   :  { %v2194_v51 = vadd.f32 %v1545_v49, %v1481_v47 }
 0x148   :  { %v1482_v52 = vpop.f32.mrb[4].mxu0 }
 0x149   :  { %v1546_v53 = vpop.f32.mrb[4].mxu1  ;;  %v1483_v54 = vpop.f32.mrb[5].mxu0 }
 0x14a   :  { %v1484_v55 = vadd.f32 %v1483_v54, %v1482_v52  ;;  %v1547_v56 = vpop.f32.mrb[5].mxu1  ;;  %v1485_v57 = vpop.f32.mrb[6].mxu0 }
 0x14b   :  { %v1548_v58 = vadd.f32 %v1547_v56, %v1546_v53  ;;  %v1549_v59 = vpop.f32.mrb[6].mxu1  ;;  %v1486_v60 = vpop.f32.mrb[7].mxu0 }
 0x14c   :  { %v1487_v61 = vadd.f32 %v1486_v60, %v1485_v57  ;;  %v1550_v62 = vpop.f32.mrb[7].mxu1 }
 0x14d   :  { %v1551_v63 = vadd.f32 %v1550_v62, %v1549_v59  ;;  %v2196_v0 = vadd.f32 %v1548_v58, %v1484_v55 }
 0x14f   :  { %v2198_v1 = vadd.f32 %v1551_v63, %v1487_v61 }
 0x150   :  { %v1488_v2 = vpop.f32.mrb[8].mxu0 }
 0x151   :  { %v1552_v3 = vpop.f32.mrb[8].mxu1  ;;  %v1489_v4 = vpop.f32.mrb[9].mxu0 }
 0x152   :  { %v1490_v5 = vadd.f32 %v1489_v4, %v1488_v2  ;;  %v1553_v6 = vpop.f32.mrb[9].mxu1  ;;  %v1491_v7 = vpop.f32.mrb[10].mxu0 }
 0x153   :  { %v1554_v8 = vadd.f32 %v1553_v6, %v1552_v3  ;;  %v1555_v9 = vpop.f32.mrb[10].mxu1  ;;  %v1492_v10 = vpop.f32.mrb[11].mxu0 }
 0x154   :  { %v1493_v11 = vadd.f32 %v1492_v10, %v1491_v7  ;;  %v1556_v12 = vpop.f32.mrb[11].mxu1 }
 0x155   :  { %v1557_v13 = vadd.f32 %v1556_v12, %v1555_v9  ;;  %v2200_v14 = vadd.f32 %v1554_v8, %v1490_v5 }
 0x157   :  { %v2202_v15 = vadd.f32 %v1557_v13, %v1493_v11 }
 0x158   :  { %v1494_v16 = vpop.f32.mrb[12].mxu0 }
 0x159   :  { %v1558_v17 = vpop.f32.mrb[12].mxu1  ;;  %v1495_v18 = vpop.f32.mrb[13].mxu0 }
 0x15a   :  { %v1496_v19 = vadd.f32 %v1495_v18, %v1494_v16  ;;  %v1559_v20 = vpop.f32.mrb[13].mxu1  ;;  %v1497_v21 = vpop.f32.mrb[14].mxu0 }
 0x15b   :  { %v1560_v22 = vadd.f32 %v1559_v20, %v1558_v17  ;;  %v1561_v23 = vpop.f32.mrb[14].mxu1  ;;  %v1498_v24 = vpop.f32.mrb[15].mxu0 }
 0x15c   :  { %v1499_v25 = vadd.f32 %v1498_v24, %v1497_v21  ;;  %v1562_v26 = vpop.f32.mrb[15].mxu1 }
 0x15d   :  { %v1563_v27 = vadd.f32 %v1562_v26, %v1561_v23  ;;  %v2204_v28 = vadd.f32 %v1560_v22, %v1496_v19 }
 0x15f   :  { %v2206_v29 = vadd.f32 %v1563_v27, %v1499_v25 }
 0x160   :  { %v1500_v30 = vpop.f32.mrb[16].mxu0 }
 0x161   :  { %v1564_v31 = vpop.f32.mrb[16].mxu1  ;;  %v1501_v32 = vpop.f32.mrb[17].mxu0 }
 0x162   :  { %v1502_v33 = vadd.f32 %v1501_v32, %v1500_v30  ;;  %v1565_v34 = vpop.f32.mrb[17].mxu1  ;;  %v1503_v35 = vpop.f32.mrb[18].mxu0 }
 0x163   :  { %v1566_v36 = vadd.f32 %v1565_v34, %v1564_v31  ;;  %v1567_v37 = vpop.f32.mrb[18].mxu1  ;;  %v1504_v38 = vpop.f32.mrb[19].mxu0 }
 0x164   :  { %v1505_v39 = vadd.f32 %v1504_v38, %v1503_v35  ;;  %v1568_v40 = vpop.f32.mrb[19].mxu1 }
 0x165   :  { %v1569_v41 = vadd.f32 %v1568_v40, %v1567_v37  ;;  %v2208_v42 = vadd.f32 %v1566_v36, %v1502_v33 }
 0x167   :  { %v2210_v43 = vadd.f32 %v1569_v41, %v1505_v39 }
 0x168   :  { %v1506_v44 = vpop.f32.mrb[20].mxu0 }
 0x169   :  { %v1570_v45 = vpop.f32.mrb[20].mxu1  ;;  %v1507_v46 = vpop.f32.mrb[21].mxu0 }
 0x16a   :  { %v1508_v47 = vadd.f32 %v1507_v46, %v1506_v44  ;;  %v1571_v48 = vpop.f32.mrb[21].mxu1  ;;  %v1509_v49 = vpop.f32.mrb[22].mxu0 }
 0x16b   :  { %v1572_v52 = vadd.f32 %v1571_v48, %v1570_v45  ;;  %v1573_v53 = vpop.f32.mrb[22].mxu1  ;;  %v1510_v54 = vpop.f32.mrb[23].mxu0 }
 0x16c   :  { %v1511_v55 = vadd.f32 %v1510_v54, %v1509_v49  ;;  %v1574_v56 = vpop.f32.mrb[23].mxu1 }
 0x16d   :  { %v1575_v57 = vadd.f32 %v1574_v56, %v1573_v53  ;;  %v2212_v58 = vadd.f32 %v1572_v52, %v1508_v47 }
 0x16f   :  { %v2214_v59 = vadd.f32 %v1575_v57, %v1511_v55 }
 0x170   :  { %v1512_v60 = vpop.f32.mrb[24].mxu0 }
 0x171   :  { %v1576_v61 = vpop.f32.mrb[24].mxu1  ;;  %v1513_v62 = vpop.f32.mrb[25].mxu0 }
 0x172   :  { %v1514_v63 = vadd.f32 %v1513_v62, %v1512_v60  ;;  %v1577_v2 = vpop.f32.mrb[25].mxu1  ;;  %v1515_v3 = vpop.f32.mrb[26].mxu0 }
 0x173   :  { %v1578_v4 = vadd.f32 %v1577_v2, %v1576_v61  ;;  %v1579_v5 = vpop.f32.mrb[26].mxu1  ;;  %v1516_v6 = vpop.f32.mrb[27].mxu0 }
 0x174   :  { %v1517_v7 = vadd.f32 %v1516_v6, %v1515_v3  ;;  %v1580_v8 = vpop.f32.mrb[27].mxu1 }
 0x175   :  { %v1581_v9 = vadd.f32 %v1580_v8, %v1579_v5  ;;  %v2216_v10 = vadd.f32 %v1578_v4, %v1514_v63 }
 0x177   :  { %v2218_v11 = vadd.f32 %v1581_v9, %v1517_v7 }
 0x178   :  { %v1518_v12 = vpop.f32.mrb[28].mxu0 }
 0x179   :  { %v1582_v13 = vpop.f32.mrb[28].mxu1  ;;  %v1519_v16 = vpop.f32.mrb[29].mxu0 }
 0x17a   :  { %v1520_v17 = vadd.f32 %v1519_v16, %v1518_v12  ;;  %v1583_v18 = vpop.f32.mrb[29].mxu1  ;;  %v1521_v19 = vpop.f32.mrb[30].mxu0 }
 0x17b   :  { %v1584_v20 = vadd.f32 %v1583_v18, %v1582_v13  ;;  %v1585_v21 = vpop.f32.mrb[30].mxu1  ;;  %v1522_v22 = vpop.f32.mrb[31].mxu0 }
 0x17c   :  { %v1523_v23 = vadd.f32 %v1522_v22, %v1521_v19  ;;  %v1586_v24 = vpop.f32.mrb[31].mxu1 }
 0x17d   :  { %v1587_v25 = vadd.f32 %v1586_v24, %v1585_v21  ;;  %v821_v26 = vadd.f32 %v1584_v20, %v1520_v17 }
 0x17f   :  { %v2220_v27 = vadd.f32 %v1587_v25, %v1523_v23 }
 0x180   :  { %v1644_v30 = vpop.f32.mrb[32].mxu0 }
 0x181   :  { %v2223_v31 = vadd.f32 %v1644_v30, %v2196_v0  ;;  %v861_v32 = vpop.f32.mrb[33].mxu0 }
 0x182   :  { %v2226_v33 = vadd.f32 %v861_v32, %v2192_v50  ;;  %v1645_v34 = vpop.f32.mrb[34].mxu0 }
 0x183   :  { %v2229_v35 = vadd.f32 %v1645_v34, %v2198_v1  ;;  %v864_v36 = vpop.f32.mrb[35].mxu0  ;;  %v947_v50 = vmul.f32 %v2223_v31, %v2223_v31 }
 0x184   :  { %v2232_v37 = vadd.f32 %v864_v36, %v2194_v51  ;;  %v945_v38 = vmul.f32 %v2226_v33, %v2226_v33 }
 0x185   :  { %v948_v45 = vmul.f32 %v2229_v35, %v2229_v35 }
 0x186   :  { %v924_v39 = vadd.f32 %v2232_v37, %v2226_v33  ;;  %v946_v0 = vmul.f32 %v2232_v37, %v2232_v37 }
 0x188   :  { %v925_v40 = vadd.f32 %v924_v39, %v2223_v31  ;;  %v961_v1 = vadd.f32 %v946_v0, %v945_v38  ;;  %v1648_v41 = vpop.f32.mrb[36].mxu0 }
 0x189   :  { %v2244_v44 = vadd.f32 %v1648_v41, %v2204_v28  ;;  %v877_v51 = vpop.f32.mrb[37].mxu0 }
 0x18a   :  { %v962_v46 = vadd.f32 %v961_v1, %v947_v50  ;;  %v2249_v47 = vadd.f32 %v877_v51, %v2200_v14  ;;  %v926_v48 = vadd.f32 %v925_v40, %v2229_v35  ;;  %v1649_v49 = vpop.f32.mrb[38].mxu0 }
 0x18b   :  { %v2253_v52 = vadd.f32 %v1649_v49, %v2206_v29  ;;  %v880_v53 = vpop.f32.mrb[39].mxu0  ;;  %v951_v29 = vmul.f32 %v2244_v44, %v2244_v44 }
 0x18c   :  { %v927_v54 = vadd.f32 %v926_v48, %v2249_v47  ;;  %v949_v28 = vmul.f32 %v2249_v47, %v2249_v47  ;;  %v963_v55 = vadd.f32 %v962_v46, %v948_v45  ;;  %v2259_v56 = vadd.f32 %v880_v53, %v2202_v15 }
 0x18d   :  { %v952_v15 = vmul.f32 %v2253_v52, %v2253_v52 }
 0x18e   :  { %v964_v57 = vadd.f32 %v963_v55, %v949_v28  ;;  %v928_v14 = vadd.f32 %v927_v54, %v2259_v56  ;;  %v950_v60 = vmul.f32 %v2259_v56, %v2259_v56 }
 0x190   :  { %v929_v61 = vadd.f32 %v928_v14, %v2244_v44  ;;  %v965_v62 = vadd.f32 %v964_v57, %v950_v60  ;;  %v1652_v63 = vpop.f32.mrb[40].mxu0 }
 0x191   :  { %v2268_v2 = vadd.f32 %v1652_v63, %v2212_v58  ;;  %v893_v3 = vpop.f32.mrb[41].mxu0 }
 0x192   :  { %v966_v4 = vadd.f32 %v965_v62, %v951_v29  ;;  %v2273_v5 = vadd.f32 %v893_v3, %v2208_v42  ;;  %v930_v6 = vadd.f32 %v929_v61, %v2253_v52  ;;  %v1653_v7 = vpop.f32.mrb[42].mxu0 }
 0x193   :  { %v2277_v8 = vadd.f32 %v1653_v7, %v2214_v59  ;;  %v896_v9 = vpop.f32.mrb[43].mxu0  ;;  %v955_v59 = vmul.f32 %v2268_v2, %v2268_v2 }
 0x194   :  { %v931_v12 = vadd.f32 %v930_v6, %v2273_v5  ;;  %v953_v58 = vmul.f32 %v2273_v5, %v2273_v5  ;;  %v967_v13 = vadd.f32 %v966_v4, %v952_v15  ;;  %v2283_v16 = vadd.f32 %v896_v9, %v2210_v43 }
 0x195   :  { %v956_v43 = vmul.f32 %v2277_v8, %v2277_v8 }
 0x196   :  { %v968_v17 = vadd.f32 %v967_v13, %v953_v58  ;;  %v932_v42 = vadd.f32 %v931_v12, %v2283_v16  ;;  %v954_v18 = vmul.f32 %v2283_v16, %v2283_v16 }
 0x198   :  { %v933_v19 = vadd.f32 %v932_v42, %v2268_v2  ;;  %v969_v20 = vadd.f32 %v968_v17, %v954_v18  ;;  %v1656_v21 = vpop.f32.mrb[44].mxu0  ;;  %v1151_v17 = vlaneseq  ;;  %v1143_v18 = vld [vmem:[#allocation6] sm:$0x1] }
 0x199   :  { %v2291_v22 = vadd.f32 %v1656_v21, %v821_v26  ;;  %v909_v23 = vpop.f32.mrb[45].mxu0  ;;  %v1147_v21 = vld [vmem:[#allocation7] sm:$0x1] }
 0x19a   :  { %v970_v24 = vadd.f32 %v969_v20, %v955_v59  ;;  %v2296_v25 = vadd.f32 %v909_v23, %v2216_v10  ;;  %v934_v30 = vadd.f32 %v933_v19, %v2277_v8  ;;  %v1657_v32 = vpop.f32.mrb[46].mxu0  ;;  %v1152_v42 = vshrl.u32 %v1151_v17, 7 }
 0x19b   :  { %v2300_v34 = vadd.f32 %v1657_v32, %v2220_v27  ;;  %v912_v36 = vpop.f32.mrb[47].mxu0  ;;  %v959_v10 = vmul.f32 %v2291_v22, %v2291_v22 }
 0x19c   :  { %v935_v38 = vadd.f32 %v934_v30, %v2296_v25  ;;  %v957_v26 = vmul.f32 %v2296_v25, %v2296_v25  ;;  %v971_v39 = vadd.f32 %v970_v24, %v956_v43  ;;  %v913_v0 = vadd.f32 %v912_v36, %v2218_v11 }
 0x19d   :  { %v960_v27 = vmul.f32 %v2300_v34, %v2300_v34  ;;  %v1153_v59 = vsub.s32 0, %v1152_v42 }
 0x19e   :  { %v972_v50 = vadd.f32 %v971_v39, %v957_v26  ;;  %v936_v40 = vadd.f32 %v935_v38, %v913_v0  ;;  %v958_v1 = vmul.f32 %v913_v0, %v913_v0 }
 0x1a0   :  { %v937_v41 = vadd.f32 %v936_v40, %v2291_v22  ;;  %v973_v51 = vadd.f32 %v972_v50, %v958_v1 }
 0x1a2   :  { %v938_v45 = vadd.f32 %v937_v41, %v2300_v34  ;;  %v974_v46 = vadd.f32 %v973_v51, %v959_v10 }
 0x1a4   :  { %v939_v48 = vrot.slane %v938_v45, 4  ;;  %v975_v49 = vadd.f32 %v974_v46, %v960_v27 }
 0x1a6   :  { %v940_v53 = vadd.f32 %v939_v48, %v938_v45  ;;  %v976_v54 = vrot.slane %v975_v49, 4 }
 0x1a8   :  { %v941_v11 = vrot.slane %v940_v53, 2  ;;  %v977_v28 = vadd.f32 %v976_v54, %v975_v49 }
 0x1aa   :  { %v942_v55 = vadd.f32 %v941_v11, %v940_v53  ;;  %v978_v57 = vrot.slane %v977_v28, 2 }
 0x1ac   :  { %v943_v14 = vrot.slane %v942_v55, 1  ;;  %v979_v60 = vadd.f32 %v978_v57, %v977_v28 }
 0x1ae   :  { %v944_v29 = vadd.f32 %v943_v14, %v942_v55  ;;  %v980_v61 = vrot.slane %v979_v60, 1 }
 0x1b0   :  { %1691 = vmatmul.mubr.f32.vlgmr.msra.gmra.mrb[32].mxu1 %v944_v29  ;;  %v981_v62 = vadd.f32 %v980_v61, %v979_v60 }
 0x1b2   :  { %1726 = vmatmul.mubr.f32.vlgmr.msra.gmra.mrb[48].mxu0 %v981_v62 }
 0x283   :  { %v1064_v63 = vpop.f32.mrb[32].mxu1 }
 0x284   :  { %v1068_v3 = vmul.f32 0.001953125, %v1064_v63  ;;  %v1692_v15 = vpop.f32.mrb[33].mxu1 }
 0x285   :  { %v1135_v4 = vpop.f32.mrb[48].mxu0 }
 0x286   :  { %v1140_v6 = vmul.f32 %v1068_v3, %v1068_v3  ;;  %v1139_v7 = vmul.f32 0.001953125, %v1135_v4  ;;  %v1727_v9 = vpop.f32.mrb[49].mxu0 }
 0x288   :  { %v1141_v12 = vsub.f32 %v1139_v7, %v1140_v6 }
 0x28a   :  { %v1142_v58 = vmax.f32 %v1141_v12, 0.0 }
 0x28c   :  { %v1144_v13 = vadd.f32 1e-05, %v1142_v58 }
 0x28e   :  { %1879 = vrsqrt.f32 %v1144_v13 }
 0x298   :  { %v1880_v19 = vpop.eup %1879 }
 0x299   :  { %v1146_v20 = vmul.f32 %v1880_v19, %v1143_v18 }
 0x29b   :  { %v1148_v23 = vmul.f32 %v1146_v20, %v1068_v3  ;;  %v1154_v43 = vrot.slane %v1146_v20, %v1153_v59 }
 0x29d   :  { %v1149_v24 = vsub.f32 %v1147_v21, %v1148_v23  ;;  %v1156_v30 = vmul.f32 %v1154_v43, %v2226_v33  ;;  %v1157_v32 = vmul.f32 %v1154_v43, %v2232_v37  ;;  %v1158_v36 = vmul.f32 %v1154_v43, %v2223_v31 }
 0x29e   :  { %v1159_v38 = vmul.f32 %v1154_v43, %v2229_v35  ;;  %v1160_v26 = vmul.f32 %v1154_v43, %v2249_v47  ;;  %v1161_v39 = vmul.f32 %v1154_v43, %v2259_v56  ;;  %v1162_v50 = vmul.f32 %v1154_v43, %v2244_v44 }
 0x29f   :  { %v1163_v40 = vmul.f32 %v1154_v43, %v2253_v52  ;;  %v1164_v1 = vmul.f32 %v1154_v43, %v2273_v5  ;;  %v1165_v10 = vmul.f32 %v1154_v43, %v2283_v16  ;;  %v1166_v33 = vmul.f32 %v1154_v43, %v2268_v2 }
 0x2a0   :  { %v1167_v37 = vmul.f32 %v1154_v43, %v2277_v8  ;;  %v1176_v41 = vrot.slane %v1149_v24, %v1153_v59  ;;  %v1168_v31 = vmul.f32 %v1154_v43, %v2296_v25  ;;  %v1169_v35 = vmul.f32 %v1154_v43, %v913_v0 }
 0x2a1   :  { %v1170_v47 = vmul.f32 %v1154_v43, %v2291_v22  ;;  %v1171_v56 = vmul.f32 %v1154_v43, %v2300_v34 }
 0x2a2   :  { %v1178_v51 = vadd.f32 %v1176_v41, %v1156_v30  ;;  %v1179_v44 = vadd.f32 %v1176_v41, %v1157_v32  ;;  %v1180_v27 = vadd.f32 %v1176_v41, %v1158_v36  ;;  %v1181_v52 = vadd.f32 %v1176_v41, %v1159_v38 }
 0x2a3   :  { %v1182_v45 = vadd.f32 %v1176_v41, %v1160_v26  ;;  %v1183_v5 = vadd.f32 %v1176_v41, %v1161_v39  ;;  %v1184_v46 = vadd.f32 %v1176_v41, %v1162_v50  ;;  %v1185_v16 = vadd.f32 %v1176_v41, %v1163_v40 }
 0x2a4   :  { %v1186_v48 = vadd.f32 %v1176_v41, %v1164_v1  ;;  %v1187_v2 = vadd.f32 %v1176_v41, %v1165_v10  ;;  %v1188_v49 = vadd.f32 %v1176_v41, %v1166_v33  ;;  %v1189_v8 = vadd.f32 %v1176_v41, %v1167_v37 }
 0x2a5   :  { %v1190_v53 = vadd.f32 %v1176_v41, %v1168_v31  ;;  %v1191_v54 = vadd.f32 %v1176_v41, %v1169_v35  ;;  %v1192_v25 = vadd.f32 %v1176_v41, %v1170_v47  ;;  %v1193_v0 = vadd.f32 %v1176_v41, %v1171_v56 }
 0x2a6   :  { %v1194_v11 = vmax.f32 %v1178_v51, 0.0  ;;  %v1195_v22 = vmax.f32 %v1179_v44, 0.0  ;;  %v1196_v28 = vmax.f32 %v1180_v27, 0.0  ;;  %v1197_v34 = vmax.f32 %v1181_v52, 0.0 }
 0x2a7   :  { %v1198_v55 = vmax.f32 %v1182_v45, 0.0  ;;  %v1199_v57 = vmax.f32 %v1183_v5, 0.0  ;;  %v1200_v14 = vmax.f32 %v1184_v46, 0.0  ;;  %v1201_v60 = vmax.f32 %v1185_v16, 0.0 }
 0x2a8   :  { %v1202_v29 = vmax.f32 %v1186_v48, 0.0  ;;  %v1203_v61 = vmax.f32 %v1187_v2, 0.0  ;;  %v1204_v62 = vmax.f32 %v1188_v49, 0.0  ;;  %v1205_v63 = vmax.f32 %v1189_v8, 0.0 }
 0x2a9   :  { %v1206_v3 = vmax.f32 %v1190_v53, 0.0  ;;  %v1207_v15 = vmax.f32 %v1191_v54, 0.0  ;;  %v1208_v4 = vmax.f32 %v1192_v25, 0.0  ;;  %v1209_v6 = vmax.f32 %v1193_v0, 0.0 }
 0x2aa   :  { %v1416_v7 = vpack.c.bf16 %v1195_v22, %v1194_v11  ;;  %v1421_v9 = vpack.c.bf16 %v1197_v34, %v1196_v28  ;;  %v1426_v12 = vpack.c.bf16 %v1199_v57, %v1198_v55  ;;  %v1431_v58 = vpack.c.bf16 %v1201_v60, %v1200_v14 }
 0x2ab   :  { %v1436_v13 = vpack.c.bf16 %v1203_v61, %v1202_v29  ;;  %v1441_v17 = vpack.c.bf16 %v1205_v63, %v1204_v62  ;;  %v1446_v42 = vpack.c.bf16 %v1207_v15, %v1206_v3  ;;  %v1451_v18 = vpack.c.bf16 %v1209_v6, %v1208_v4 }
 0x2ac   :  { %1417 = vst [vmem:[%s2356_s5] sm:$0xff] %v1416_v7   ;;  %1453 = vst [vmem:[%s2356_s5 + $0x8] sm:$0xff] %v1421_v9  }
 0x2ad   :  { %1454 = vst [vmem:[%s2356_s5 + $0x10] sm:$0xff] %v1426_v12   ;;  %1455 = vst [vmem:[%s2356_s5 + $0x18] sm:$0xff] %v1431_v58  }
 0x2ae   :  { %1456 = vst [vmem:[%s2356_s5 + $0x20] sm:$0xff] %v1436_v13   ;;  %1457 = vst [vmem:[%s2356_s5 + $0x28] sm:$0xff] %v1441_v17  }
 0x2af   :  { %1458 = vst [vmem:[%s2356_s5 + $0x30] sm:$0xff] %v1446_v42   ;;  %1459 = vst [vmem:[%s2356_s5 + $0x38] sm:$0xff] %v1451_v18  }
 0x2b0   :  { %1294 = vsyncpa [#allocation3], 1 }
 0x2b1   :  { %1295 = vsyncpa [#allocation5], 1 }
 0x2b2   :  { %1296 = vsyncpa [#allocation8], 1 }

// kernel: generator_forward.8
= control target key start
LH: loop header
LB: loop body
LE: loop exit
PB: predicated region body
PF: predicated region fallthrough
CT: control target
= control target key end

     0   :  { %v3249_v0 = vmov 0   ;;  %vm773_vm0 = vcmask 261120   ;;  %vm3251_vm1 = vmmov 0   ;;  %s4916_s1 = inlined_call_operand.vmem [shape: bf16[288,128], index: 1, kind: input, shape index: {}]   ;;  %s4917_s0 = inlined_call_operand.vmem [shape: bf16[512,288], index: 0, kind: input, shape index: {}]   ;;  %s4918_s2 = inlined_call_operand.vmem [shape: f32[128,128], index: 2, kind: input, shape index: {}]   ;;  %s4919_s3 = inlined_call_operand.vmem [shape: f32[1,128], index: 3, kind: input, shape index: {}]   ;;  %s4920_s4 = inlined_call_operand.vmem [shape: f32[1,128], index: 4, kind: input, shape index: {}]   ;;  %s4921_s5 = inlined_call_operand.vmem [shape: bf16[512,128], index: 5, kind: output, shape index: {}]  }
   0x1   :  { %870 = vmatprep.subr.bf16.mxu0 %v3249_v0  ;;  %3065 = vmatprep.subr.bf16.mxu1 %v3249_v0  ;;  %v3101_v1 = vld [vmem:[%s4916_s1] sm:$0xff]   ;;  %v3102_v2 = vld [vmem:[%s4916_s1 + $0x8] sm:$0xff]   ;;  %v3103_v3 = vld [vmem:[%s4916_s1 + $0x10] sm:$0xff]  }
   0x2   :  { %871 = vmatpush1.bf16.msra.mxu0 %v3101_v1  ;;  %3081 = vmatpush1.bf16.msra.mxu1 %v3101_v1  ;;  %v3104_v4 = vld [vmem:[%s4916_s1 + $0x18] sm:$0xff]   ;;  %v3105_v5 = vld [vmem:[%s4916_s1 + $0x20] sm:$0xff]   ;;  %v3106_v7 = vld [vmem:[%s4916_s1 + $0x28] sm:$0xff]  }
   0x3   :  { %872 = vmatprep.subr.bf16.mxu0 %v3249_v0  ;;  %3066 = vmatprep.subr.bf16.mxu1 %v3249_v0  ;;  %v3119_v6 = vld [vmem:[%s4917_s0 + $0x4] ss:$12 sps:$4 sm:$0xff]   ;;  %v3122_v8 = vld [vmem:[%s4917_s0 + $0x28c] ss:$12 sps:$4 sm:$0xff]   ;;  %v3120_v21 = vld [vmem:[%s4917_s0 + $0x288] ss:$12 sps:$4 sm:$0xff]  }
   0x4   :  { %902 = vmatprep.mubr.bf16.mxu0 %v3119_v6  ;;  %1118 = vmatprep.mubr.bf16.mxu1 %v3122_v8  ;;  %v3107_v9 = vld [vmem:[%s4916_s1 + $0x30] sm:$0xff]   ;;  %v3108_v10 = vld [vmem:[%s4916_s1 + $0x38] sm:$0xff]   ;;  %v3109_v11 = vld [vmem:[%s4916_s1 + $0x40] sm:$0xff]  }
   0x5   :  { %v3110_v12 = vld [vmem:[%s4916_s1 + $0x48] sm:$0xff]   ;;  %v3111_v13 = vld [vmem:[%s4916_s1 + $0x50] sm:$0xff]   ;;  %v3112_v14 = vld [vmem:[%s4916_s1 + $0x58] sm:$0xff]  }
   0x6   :  { %873 = vmatpush1.bf16.msra.mxu0 %v3102_v2  ;;  %3082 = vmatpush1.bf16.msra.mxu1 %v3102_v2  ;;  %v3113_v15 = vld [vmem:[%s4916_s1 + $0x60] sm:$0xff]   ;;  %v3114_v16 = vld [vmem:[%s4916_s1 + $0x68] sm:$0xff]   ;;  %v3115_v17 = vld [vmem:[%s4916_s1 + $0x70] sm:$0xff]  }
   0x7   :  { %874 = vmatprep.subr.bf16.mxu0 %v3249_v0  ;;  %3067 = vmatprep.subr.bf16.mxu1 %v3249_v0  ;;  %v3116_v18 = vld [vmem:[%s4916_s1 + $0x78] sm:$0xff]   ;;  %v3117_v19 = vld [vmem:[%s4917_s0] ss:$12 sps:$4 sm:$0xff]   ;;  %v3125_v23 = vld [vmem:[%s4917_s0 + $0x2a4] ss:$12 sps:$4 sm:$0xff]  }
   0x8   :  { %v3147_v20 = vld [vmem:[%s4916_s1 + $0x80] sm:$0xff]   ;;  %v3123_v22 = vld [vmem:[%s4917_s0 + $0x1c] ss:$12 sps:$4 sm:$0xff]   ;;  %v3135_v31 = vld [vmem:[%s4917_s0 + $0x4c] ss:$12 sps:$4 sm:$0xff]  }
   0x9   :  { %v3148_v24 = vld [vmem:[%s4916_s1 + $0x88] sm:$0xff]   ;;  %v3127_v25 = vld [vmem:[%s4917_s0 + $0x18] ss:$12 sps:$4 sm:$0xff]   ;;  %v3129_v27 = vld [vmem:[%s4917_s0 + $0x34] ss:$12 sps:$4 sm:$0xff]  }
   0xa   :  { %875 = vmatpush1.bf16.msra.mxu0 %v3103_v3  ;;  %3083 = vmatpush1.bf16.msra.mxu1 %v3103_v3  ;;  %v3128_v26 = vld [vmem:[%s4917_s0 + $0x2a0] ss:$12 sps:$4 sm:$0xff]   ;;  %v3131_v28 = vld [vmem:[%s4917_s0 + $0x2bc] ss:$12 sps:$4 sm:$0xff]   ;;  %v3134_v30 = vld [vmem:[%s4917_s0 + $0x2b8] ss:$12 sps:$4 sm:$0xff]  }
   0xb   :  { %876 = vmatprep.subr.bf16.mxu0 %v3249_v0  ;;  %3068 = vmatprep.subr.bf16.mxu1 %v3249_v0  ;;  %v3133_v29 = vld [vmem:[%s4917_s0 + $0x30] ss:$12 sps:$4 sm:$0xff]   ;;  %v3137_v32 = vld [vmem:[%s4917_s0 + $0x2d4] ss:$12 sps:$4 sm:$0xff]   ;;  %v3143_v36 = vld [vmem:[%s4917_s0 + $0x2ec] ss:$12 sps:$4 sm:$0xff]  }
   0xc   :  { %v3139_v33 = vld [vmem:[%s4917_s0 + $0x48] ss:$12 sps:$4 sm:$0xff]   ;;  %v3140_v34 = vld [vmem:[%s4917_s0 + $0x2d0] ss:$12 sps:$4 sm:$0xff]   ;;  %v3145_v37 = vld [vmem:[%s4917_s0 + $0x60] ss:$12 sps:$4 sm:$0xff]  }
   0xd   :  { %v3141_v35 = vld [vmem:[%s4917_s0 + $0x64] ss:$12 sps:$4 sm:$0xff]   ;;  %v3146_v38 = vld [vmem:[%s4917_s0 + $0x2e8] ss:$12 sps:$4 sm:$0xff]   ;;  %v3153_v42 = vld [vmem:[%s4917_s0 + $0x20] ss:$12 sps:$4 sm:$0xff]  }
   0xe   :  { %877 = vmatpush1.bf16.msra.mxu0 %v3104_v4  ;;  %3084 = vmatpush1.bf16.msra.mxu1 %v3104_v4  ;;  %v3149_v39 = vld [vmem:[%s4917_s0 + $0x7c] ss:$12 sps:$4 sm:$0xff]   ;;  %v3152_v41 = vld [vmem:[%s4917_s0 + $0x78] ss:$12 sps:$4 sm:$0xff]   ;;  %v3154_v43 = vld [vmem:[%s4917_s0 + $0x94] ss:$12 sps:$4 sm:$0xff]  }
   0xf   :  { %878 = vmatprep.subr.bf16.mxu0 %v3249_v0  ;;  %3069 = vmatprep.subr.bf16.mxu1 %v3249_v0  ;;  %v3151_v40 = vld [vmem:[%s4917_s0 + $0x8] ss:$12 sps:$4 sm:$0xff]   ;;  %v3156_v44 = vld [vmem:[%s4917_s0 + $0x38] ss:$12 sps:$4 sm:$0xff]   ;;  %v3157_v45 = vld [vmem:[%s4917_s0 + $0x90] ss:$12 sps:$4 sm:$0xff]  }
  0x10   :  { %v3158_v46 = vld [vmem:[%s4917_s0 + $0x50] ss:$12 sps:$4 sm:$0xff]   ;;  %v3159_v47 = vld [vmem:[%s4917_s0 + $0xac] ss:$12 sps:$4 sm:$0xff]   ;;  %v3161_v48 = vld [vmem:[%s4917_s0 + $0x68] ss:$12 sps:$4 sm:$0xff]  }
  0x11   :  { %v3162_v49 = vld [vmem:[%s4917_s0 + $0xa8] ss:$12 sps:$4 sm:$0xff]   ;;  %v3163_v50 = vld [vmem:[%s4917_s0 + $0x80] ss:$12 sps:$4 sm:$0xff]   ;;  %v3164_v51 = vld [vmem:[%s4917_s0 + $0xc4] ss:$12 sps:$4 sm:$0xff]  }
  0x12   :  { %879 = vmatpush1.bf16.msra.mxu0 %v3105_v5  ;;  %3085 = vmatpush1.bf16.msra.mxu1 %v3105_v5  ;;  %v3166_v52 = vld [vmem:[%s4917_s0 + $0x98] ss:$12 sps:$4 sm:$0xff]   ;;  %v3167_v53 = vld [vmem:[%s4917_s0 + $0xc0] ss:$12 sps:$4 sm:$0xff]   ;;  %v3168_v54 = vld [vmem:[%s4917_s0 + $0xb0] ss:$12 sps:$4 sm:$0xff]  }
  0x13   :  { %880 = vmatprep.subr.bf16.mxu0 %v3249_v0  ;;  %3070 = vmatprep.subr.bf16.mxu1 %v3249_v0  ;;  %v3169_v55 = vld [vmem:[%s4917_s0 + $0xdc] ss:$12 sps:$4 sm:$0xff]   ;;  %v3172_v57 = vld [vmem:[%s4917_s0 + $0xd8] ss:$12 sps:$4 sm:$0xff]   ;;  %v3173_v58 = vld [vmem:[%s4917_s0 + $0xe0] ss:$12 sps:$4 sm:$0xff]  }
  0x14   :  { %v3171_v56 = vld [vmem:[%s4917_s0 + $0xc8] ss:$12 sps:$4 sm:$0xff]   ;;  %v3176_v60 = vld [vmem:[%s4917_s0 + $0xf8] ss:$12 sps:$4 sm:$0xff]   ;;  %v3177_v61 = vld [vmem:[%s4917_s0 + $0xf0] ss:$12 sps:$4 sm:$0xff]  }
  0x15   :  { %v3174_v59 = vld [vmem:[%s4917_s0 + $0xf4] ss:$12 sps:$4 sm:$0xff]   ;;  %v3178_v62 = vld [vmem:[%s4917_s0 + $0x110] ss:$12 sps:$4 sm:$0xff]   ;;  %v3179_v63 = vld [vmem:[%s4917_s0 + $0x10c] ss:$12 sps:$4 sm:$0xff]  }
  0x16   :  { %881 = vmatpush1.bf16.msra.mxu0 %v3106_v7  ;;  %3086 = vmatpush1.bf16.msra.mxu1 %v3106_v7  ;;  %v3182_v1 = vld [vmem:[%s4917_s0 + $0x108] ss:$12 sps:$4 sm:$0xff]   ;;  %v3183_v2 = vld [vmem:[%s4917_s0 + $0x140] ss:$12 sps:$4 sm:$0xff]   ;;  %v3184_v3 = vld [vmem:[%s4917_s0 + $0x124] ss:$12 sps:$4 sm:$0xff]  }
  0x17   :  { %882 = vmatprep.subr.bf16.mxu0 %v3249_v0  ;;  %3071 = vmatprep.subr.bf16.mxu1 %v3249_v0  ;;  %v3186_v4 = vld [vmem:[%s4917_s0 + $0x158] ss:$12 sps:$4 sm:$0xff]   ;;  %v3187_v5 = vld [vmem:[%s4917_s0 + $0x120] ss:$12 sps:$4 sm:$0xff]   ;;  %v3188_v6 = vld [vmem:[%s4917_s0 + $0x170] ss:$12 sps:$4 sm:$0xff]  }
  0x18   :  { %v3189_v7 = vld [vmem:[%s4917_s0 + $0x13c] ss:$12 sps:$4 sm:$0xff]  }
  0x19   :  { %v3191_v8 = vld [vmem:[%s4917_s0 + $0x188] ss:$12 sps:$4 sm:$0xff]  }
  0x1a   :  { %883 = vmatpush1.bf16.msra.mxu0 %v3107_v9  ;;  %3087 = vmatpush1.bf16.msra.mxu1 %v3107_v9  ;;  %v3192_v9 = vld [vmem:[%s4917_s0 + $0x138] ss:$12 sps:$4 sm:$0xff]  }
  0x1b   :  { %884 = vmatprep.subr.bf16.mxu0 %v3249_v0  ;;  %3072 = vmatprep.subr.bf16.mxu1 %v3249_v0 }
  0x1e   :  { %885 = vmatpush1.bf16.msra.mxu0 %v3108_v10  ;;  %3088 = vmatpush1.bf16.msra.mxu1 %v3108_v10  ;;  %v3193_v10 = vld [vmem:[%s4917_s0 + $0x1a0] ss:$12 sps:$4 sm:$0xff]  }
  0x1f   :  { %886 = vmatprep.subr.bf16.mxu0 %v3249_v0  ;;  %3073 = vmatprep.subr.bf16.mxu1 %v3249_v0 }
  0x22   :  { %887 = vmatpush1.bf16.msra.mxu0 %v3109_v11  ;;  %3089 = vmatpush1.bf16.msra.mxu1 %v3109_v11  ;;  %v3194_v11 = vld [vmem:[%s4917_s0 + $0x154] ss:$12 sps:$4 sm:$0xff]  }
  0x23   :  { %888 = vmatprep.subr.bf16.mxu0 %v3249_v0  ;;  %3074 = vmatprep.subr.bf16.mxu1 %v3249_v0 }
  0x26   :  { %889 = vmatpush1.bf16.msra.mxu0 %v3110_v12  ;;  %3090 = vmatpush1.bf16.msra.mxu1 %v3110_v12  ;;  %v3196_v12 = vld [vmem:[%s4917_s0 + $0x1b8] ss:$12 sps:$4 sm:$0xff]  }
  0x27   :  { %890 = vmatprep.subr.bf16.mxu0 %v3249_v0  ;;  %3075 = vmatprep.subr.bf16.mxu1 %v3249_v0 }
  0x2a   :  { %891 = vmatpush1.bf16.msra.mxu0 %v3111_v13  ;;  %3091 = vmatpush1.bf16.msra.mxu1 %v3111_v13  ;;  %v3197_v13 = vld [vmem:[%s4917_s0 + $0x150] ss:$12 sps:$4 sm:$0xff]  }
  0x2b   :  { %892 = vmatprep.subr.bf16.mxu0 %v3249_v0  ;;  %3076 = vmatprep.subr.bf16.mxu1 %v3249_v0 }
  0x2e   :  { %893 = vmatpush1.bf16.msra.mxu0 %v3112_v14  ;;  %3092 = vmatpush1.bf16.msra.mxu1 %v3112_v14  ;;  %v3198_v14 = vld [vmem:[%s4917_s0 + $0x1d0] ss:$12 sps:$4 sm:$0xff]  }
  0x2f   :  { %894 = vmatprep.subr.bf16.mxu0 %v3249_v0  ;;  %3077 = vmatprep.subr.bf16.mxu1 %v3249_v0 }
  0x32   :  { %895 = vmatpush1.bf16.msra.mxu0 %v3113_v15  ;;  %3093 = vmatpush1.bf16.msra.mxu1 %v3113_v15  ;;  %v3199_v15 = vld [vmem:[%s4917_s0 + $0x16c] ss:$12 sps:$4 sm:$0xff]  }
  0x33   :  { %896 = vmatprep.subr.bf16.mxu0 %v3249_v0  ;;  %3078 = vmatprep.subr.bf16.mxu1 %v3249_v0 }
  0x36   :  { %897 = vmatpush1.bf16.msra.mxu0 %v3114_v16  ;;  %3094 = vmatpush1.bf16.msra.mxu1 %v3114_v16  ;;  %v3201_v16 = vld [vmem:[%s4917_s0 + $0x1e8] ss:$12 sps:$4 sm:$0xff]  }
  0x37   :  { %898 = vmatprep.subr.bf16.mxu0 %v3249_v0  ;;  %3079 = vmatprep.subr.bf16.mxu1 %v3249_v0 }
  0x3a   :  { %899 = vmatpush1.bf16.msra.mxu0 %v3115_v17  ;;  %3095 = vmatpush1.bf16.msra.mxu1 %v3115_v17  ;;  %v3202_v17 = vld [vmem:[%s4917_s0 + $0x168] ss:$12 sps:$4 sm:$0xff]  }
  0x3b   :  { %900 = vmatprep.subr.bf16.mxu0 %v3249_v0  ;;  %3080 = vmatprep.subr.bf16.mxu1 %v3249_v0  ;;  %v3181_v0 = vld [vmem:[%s4917_s0 + $0x128] ss:$12 sps:$4 sm:$0xff]  }
  0x3e   :  { %901 = vmatpush1.bf16.msra.mxu0 %v3116_v18  ;;  %3096 = vmatpush1.bf16.msra.mxu1 %v3116_v18  ;;  %v3203_v18 = vld [vmem:[%s4917_s0 + $0x200] ss:$12 sps:$4 sm:$0xff]  }
  0x3f   :  { %2879 = vmatprep.subr.bf16.mxu1 %v3147_v20 }
  0x41   :  { %903 = vmatmul.mubr.bf16.vlgmr.msra.gmra.mrb[0].mxu0 %v3117_v19  ;;  %1119 = vmatmul.mubr.bf16.vlgmr.msra.gmra.mrb[0].mxu1 %v3120_v21  ;;  %v3204_v19 = vld [vmem:[%s4917_s0 + $0x184] ss:$12 sps:$4 sm:$0xff]   ;;  %v3207_v21 = vld [vmem:[%s4917_s0 + $0x180] ss:$12 sps:$4 sm:$0xff]  }
  0x42   :  { %910 = vmatprep.mubr.bf16.mxu0 %v3123_v22  ;;  %1126 = vmatprep.mubr.bf16.mxu1 %v3125_v23  ;;  %v3208_v22 = vld [vmem:[%s4917_s0 + $0x230] ss:$12 sps:$4 sm:$0xff]  }
  0x43   :  { %2880 = vmatpush3.bf16.msra.mxu1 %v3147_v20  ;;  %v3206_v20 = vld [vmem:[%s4917_s0 + $0x218] ss:$12 sps:$4 sm:$0xff]   ;;  %v3209_v23 = vld [vmem:[%s4917_s0 + $0x19c] ss:$12 sps:$4 sm:$0xff]  }
  0x44   :  { %2881 = vmatprep.subr.bf16.mxu1 %v3148_v24 }
  0x47   :  { %2882 = vmatpush3.bf16.msra.mxu1 %v3148_v24  ;;  %v3211_v24 = vld [vmem:[%s4917_s0 + $0x248] ss:$12 sps:$4 sm:$0xff]  }
  0x49   :  { %911 = vmatmul.mubr.bf16.gmra.mrb[4].mxu0 %v3127_v25  ;;  %1127 = vmatmul.mubr.bf16.gmra.mrb[4].mxu1 %v3128_v26  ;;  %v3212_v25 = vld [vmem:[%s4917_s0 + $0x198] ss:$12 sps:$4 sm:$0xff]   ;;  %v3213_v26 = vld [vmem:[%s4917_s0 + $0x260] ss:$12 sps:$4 sm:$0xff]  }
  0x4a   :  { %918 = vmatprep.mubr.bf16.mxu0 %v3129_v27  ;;  %1134 = vmatprep.mubr.bf16.mxu1 %v3131_v28  ;;  %v3214_v27 = vld [vmem:[%s4917_s0 + $0x1b4] ss:$12 sps:$4 sm:$0xff]   ;;  %v3216_v28 = vld [vmem:[%s4917_s0 + $0x278] ss:$12 sps:$4 sm:$0xff]  }
  0x51   :  { %919 = vmatmul.mubr.bf16.gmra.mrb[8].mxu0 %v3133_v29  ;;  %1135 = vmatmul.mubr.bf16.gmra.mrb[8].mxu1 %v3134_v30  ;;  %v3217_v29 = vld [vmem:[%s4917_s0 + $0x1b0] ss:$12 sps:$4 sm:$0xff]  }
  0x52   :  { %926 = vmatprep.mubr.bf16.mxu0 %v3135_v31  ;;  %1142 = vmatprep.mubr.bf16.mxu1 %v3137_v32  ;;  %v3218_v30 = vld [vmem:[%s4917_s0 + $0x290] ss:$12 sps:$4 sm:$0xff]   ;;  %v3219_v31 = vld [vmem:[%s4917_s0 + $0x1cc] ss:$12 sps:$4 sm:$0xff]   ;;  %v3221_v32 = vld [vmem:[%s4917_s0 + $0x2a8] ss:$12 sps:$4 sm:$0xff]  }
  0x59   :  { %927 = vmatmul.mubr.bf16.gmra.mrb[12].mxu0 %v3139_v33  ;;  %1143 = vmatmul.mubr.bf16.gmra.mrb[12].mxu1 %v3140_v34  ;;  %v3222_v33 = vld [vmem:[%s4917_s0 + $0x1c8] ss:$12 sps:$4 sm:$0xff]   ;;  %v3223_v34 = vld [vmem:[%s4917_s0 + $0x2c0] ss:$12 sps:$4 sm:$0xff]  }
  0x5a   :  { %934 = vmatprep.mubr.bf16.mxu0 %v3141_v35  ;;  %1150 = vmatprep.mubr.bf16.mxu1 %v3143_v36  ;;  %v3224_v35 = vld [vmem:[%s4917_s0 + $0x1e4] ss:$12 sps:$4 sm:$0xff]  }
  0x5b   :  { %v3226_v36 = vld [vmem:[%s4917_s0 + $0x2d8] ss:$12 sps:$4 sm:$0xff]  }
  0x61   :  { %935 = vmatmul.mubr.bf16.gmra.mrb[16].mxu0 %v3145_v37  ;;  %1151 = vmatmul.mubr.bf16.gmra.mrb[16].mxu1 %v3146_v38  ;;  %v3227_v37 = vld [vmem:[%s4917_s0 + $0x1e0] ss:$12 sps:$4 sm:$0xff]   ;;  %v3228_v38 = vld [vmem:[%s4917_s0 + $0x2f0] ss:$12 sps:$4 sm:$0xff]  }
  0x62   :  { %942 = vmatprep.mubr.bf16.mxu0 %v3149_v39  ;;  %2883 = vmatprep.mubr.msk.bf16.mxu1 %vm773_vm0, %v3151_v40  ;;  %v3229_v39 = vld [vmem:[%s4917_s0 + $0x1fc] ss:$12 sps:$4 sm:$0xff]   ;;  %v3231_v40 = vld [vmem:[%s4917_s0 + $0x1f8] ss:$12 sps:$4 sm:$0xff]  }
  0x69   :  { %943 = vmatmul.mubr.bf16.gmra.mrb[20].mxu0 %v3152_v41  ;;  %2884 = vmatmul.mubr.msk.bf16.vlgmr.msra.gmra.mrb[20].mxu1 %vm773_vm0, %v3153_v42  ;;  %v3232_v41 = vld [vmem:[%s4917_s0 + $0x214] ss:$12 sps:$4 sm:$0xff]   ;;  %v3234_v42 = vld [vmem:[%s4917_s0 + $0x210] ss:$12 sps:$4 sm:$0xff]  }
  0x6a   :  { %950 = vmatprep.mubr.bf16.mxu0 %v3154_v43  ;;  %2887 = vmatprep.mubr.msk.bf16.mxu1 %vm773_vm0, %v3156_v44  ;;  %v3235_v43 = vld [vmem:[%s4917_s0 + $0x22c] ss:$12 sps:$4 sm:$0xff]   ;;  %v3237_v44 = vld [vmem:[%s4917_s0 + $0x228] ss:$12 sps:$4 sm:$0xff]  }
  0x71   :  { %951 = vmatmul.mubr.bf16.gmra.mrb[24].mxu0 %v3157_v45  ;;  %2888 = vmatmul.mubr.msk.bf16.gmra.mrb[24].mxu1 %vm773_vm0, %v3158_v46  ;;  %v3238_v45 = vld [vmem:[%s4917_s0 + $0x244] ss:$12 sps:$4 sm:$0xff]   ;;  %v3240_v46 = vld [vmem:[%s4917_s0 + $0x240] ss:$12 sps:$4 sm:$0xff]  }
  0x72   :  { %958 = vmatprep.mubr.bf16.mxu0 %v3159_v47  ;;  %2891 = vmatprep.mubr.msk.bf16.mxu1 %vm773_vm0, %v3161_v48  ;;  %v3241_v47 = vld [vmem:[%s4917_s0 + $0x25c] ss:$12 sps:$4 sm:$0xff]   ;;  %v3243_v48 = vld [vmem:[%s4917_s0 + $0x258] ss:$12 sps:$4 sm:$0xff]  }
  0x79   :  { %959 = vmatmul.mubr.bf16.gmra.mrb[28].mxu0 %v3162_v49  ;;  %2892 = vmatmul.mubr.msk.bf16.gmra.mrb[28].mxu1 %vm773_vm0, %v3163_v50  ;;  %v3244_v49 = vld [vmem:[%s4917_s0 + $0x274] ss:$12 sps:$4 sm:$0xff]   ;;  %v4927_v50 = vmov 0.0|0.0  }
  0x7a   :  { %966 = vmatprep.mubr.bf16.mxu0 %v3164_v51  ;;  %2895 = vmatprep.mubr.msk.bf16.mxu1 %vm773_vm0, %v3166_v52  ;;  %v1650_v51 = vld [vmem:[%s4918_s2] sm:$0xff]  ;;  %v1651_v52 = vld [vmem:[%s4918_s2 + $0x8] sm:$0xff] }
  0x7b   :  { %3017 = vmatprep.subr.bf16.mxu1 %v4927_v50 }
  0x81   :  { %967 = vmatmul.mubr.bf16.gmra.mrb[32].mxu0 %v3167_v53  ;;  %2896 = vmatmul.mubr.msk.bf16.gmra.mrb[32].mxu1 %vm773_vm0, %v3168_v54  ;;  %v3246_v53 = vld [vmem:[%s4917_s0 + $0x270] ss:$12 sps:$4 sm:$0xff]   ;;  %v3696_v54 = vpack.c.bf16 %v1651_v52, %v1650_v51 }
  0x82   :  { %974 = vmatprep.mubr.bf16.mxu0 %v3169_v55  ;;  %2899 = vmatprep.mubr.msk.bf16.mxu1 %vm773_vm0, %v3171_v56 }
  0x83   :  { %3019 = vmatpush3.bf16.msra.mxu1 %v3696_v54 }
  0x84   :  { %3020 = vmatprep.subr.bf16.mxu1 %v4927_v50 }
  0x89   :  { %975 = vmatmul.mubr.bf16.gmra.mrb[36].mxu0 %v3172_v57  ;;  %2900 = vmatmul.mubr.msk.bf16.gmra.mrb[36].mxu1 %vm773_vm0, %v3173_v58 }
  0x8a   :  { %982 = vmatprep.mubr.bf16.mxu0 %v3174_v59  ;;  %2903 = vmatprep.mubr.msk.bf16.mxu1 %vm773_vm0, %v3176_v60 }
  0x91   :  { %983 = vmatmul.mubr.bf16.gmra.mrb[40].mxu0 %v3177_v61  ;;  %2904 = vmatmul.mubr.msk.bf16.gmra.mrb[40].mxu1 %vm773_vm0, %v3178_v62 }
  0x92   :  { %990 = vmatprep.mubr.bf16.mxu0 %v3179_v63  ;;  %2907 = vmatprep.mubr.msk.bf16.mxu1 %vm773_vm0, %v3181_v0  ;;  %v1652_v63 = vld [vmem:[%s4918_s2 + $0x10] sm:$0xff]  ;;  %v1653_v0 = vld [vmem:[%s4918_s2 + $0x18] sm:$0xff] }
  0x99   :  { %991 = vmatmul.mubr.bf16.gmra.mrb[44].mxu0 %v3182_v1  ;;  %2908 = vmatmul.mubr.msk.bf16.gmra.mrb[44].mxu1 %vm773_vm0, %v3183_v2 }
  0x9a   :  { %998 = vmatprep.mubr.bf16.mxu0 %v3184_v3  ;;  %2911 = vmatprep.mubr.msk.bf16.mxu1 %vm773_vm0, %v3186_v4  ;;  %v3712_v3 = vpack.c.bf16 %v1653_v0, %v1652_v63 }
  0x9c   :  { %3022 = vmatpush3.bf16.msra.mxu1 %v3712_v3 }
  0x9d   :  { %3023 = vmatprep.subr.bf16.mxu1 %v4927_v50 }
  0xa1   :  { %999 = vmatmul.mubr.bf16.gmra.mrb[48].mxu0 %v3187_v5  ;;  %2912 = vmatmul.mubr.msk.bf16.gmra.mrb[48].mxu1 %vm773_vm0, %v3188_v6 }
  0xa2   :  { %1006 = vmatprep.mubr.bf16.mxu0 %v3189_v7  ;;  %2915 = vmatprep.mubr.msk.bf16.mxu1 %vm773_vm0, %v3191_v8 }
  0xa9   :  { %1007 = vmatmul.mubr.bf16.gmra.mrb[52].mxu0 %v3192_v9  ;;  %2916 = vmatmul.mubr.msk.bf16.gmra.mrb[52].mxu1 %vm773_vm0, %v3193_v10 }
  0xaa   :  { %1014 = vmatprep.mubr.bf16.mxu0 %v3194_v11  ;;  %2919 = vmatprep.mubr.msk.bf16.mxu1 %vm773_vm0, %v3196_v12 }
  0xb1   :  { %1015 = vmatmul.mubr.bf16.gmra.mrb[56].mxu0 %v3197_v13  ;;  %2920 = vmatmul.mubr.msk.bf16.gmra.mrb[56].mxu1 %vm773_vm0, %v3198_v14 }
  0xb2   :  { %1022 = vmatprep.mubr.bf16.mxu0 %v3199_v15  ;;  %2923 = vmatprep.mubr.msk.bf16.mxu1 %vm773_vm0, %v3201_v16 }
  0xb9   :  { %1023 = vmatmul.mubr.bf16.gmra.mrb[60].mxu0 %v3202_v17  ;;  %2924 = vmatmul.mubr.msk.bf16.gmra.mrb[60].mxu1 %vm773_vm0, %v3203_v18  ;;  %v1654_v18 = vld [vmem:[%s4918_s2 + $0x20] sm:$0xff] }
  0xba   :  { %1030 = vmatprep.mubr.bf16.mxu0 %v3204_v19  ;;  %2927 = vmatprep.mubr.msk.bf16.mxu1 %vm773_vm0, %v3206_v20  ;;  %v1655_v19 = vld [vmem:[%s4918_s2 + $0x28] sm:$0xff] }
  0xc1   :  { %1031 = vmatmul.mubr.bf16.gmra.mrb[64].mxu0 %v3207_v21  ;;  %2928 = vmatmul.mubr.msk.bf16.gmra.mrb[64].mxu1 %vm773_vm0, %v3208_v22  ;;  %v3732_v22 = vpack.c.bf16 %v1655_v19, %v1654_v18 }
  0xc2   :  { %1038 = vmatprep.mubr.bf16.mxu0 %v3209_v23  ;;  %2931 = vmatprep.mubr.msk.bf16.mxu1 %vm773_vm0, %v3211_v24 }
  0xc3   :  { %3025 = vmatpush3.bf16.msra.mxu1 %v3732_v22 }
  0xc4   :  { %3026 = vmatprep.subr.bf16.mxu1 %v4927_v50 }
  0xc9   :  { %1039 = vmatmul.mubr.bf16.gmra.mrb[68].mxu0 %v3212_v25  ;;  %2932 = vmatmul.mubr.msk.bf16.gmra.mrb[68].mxu1 %vm773_vm0, %v3213_v26 }
  0xca   :  { %1046 = vmatprep.mubr.bf16.mxu0 %v3214_v27  ;;  %2935 = vmatprep.mubr.msk.bf16.mxu1 %vm773_vm0, %v3216_v28 }
  0xd1   :  { %1047 = vmatmul.mubr.bf16.gmra.mrb[72].mxu0 %v3217_v29  ;;  %2936 = vmatmul.mubr.msk.bf16.gmra.mrb[72].mxu1 %vm773_vm0, %v3218_v30 }
  0xd2   :  { %1054 = vmatprep.mubr.bf16.mxu0 %v3219_v31  ;;  %2939 = vmatprep.mubr.msk.bf16.mxu1 %vm773_vm0, %v3221_v32 }
  0xd9   :  { %1055 = vmatmul.mubr.bf16.gmra.mrb[76].mxu0 %v3222_v33  ;;  %2940 = vmatmul.mubr.msk.bf16.gmra.mrb[76].mxu1 %vm773_vm0, %v3223_v34 }
  0xda   :  { %1062 = vmatprep.mubr.bf16.mxu0 %v3224_v35  ;;  %2943 = vmatprep.mubr.msk.bf16.mxu1 %vm773_vm0, %v3226_v36 }
  0xe1   :  { %1063 = vmatmul.mubr.bf16.gmra.mrb[80].mxu0 %v3227_v37  ;;  %2944 = vmatmul.mubr.msk.bf16.gmra.mrb[80].mxu1 %vm773_vm0, %v3228_v38  ;;  %v1656_v37 = vld [vmem:[%s4918_s2 + $0x30] sm:$0xff]  ;;  %v1657_v38 = vld [vmem:[%s4918_s2 + $0x38] sm:$0xff] }
  0xe2   :  { %1070 = vmatprep.mubr.bf16.mxu0 %v3229_v39 }
  0xe9   :  { %1071 = vmatmul.mubr.bf16.gmra.mrb[84].mxu0 %v3231_v40 }
  0xea   :  { %1078 = vmatprep.mubr.bf16.mxu0 %v3232_v41  ;;  %v3750_v41 = vpack.c.bf16 %v1657_v38, %v1656_v37 }
  0xec   :  { %3028 = vmatpush3.bf16.msra.mxu1 %v3750_v41 }
  0xed   :  { %3029 = vmatprep.subr.bf16.mxu1 %v4927_v50 }
  0xf1   :  { %1079 = vmatmul.mubr.bf16.gmra.mrb[88].mxu0 %v3234_v42 }
  0xf2   :  { %1086 = vmatprep.mubr.bf16.mxu0 %v3235_v43 }
  0xf9   :  { %1087 = vmatmul.mubr.bf16.gmra.mrb[92].mxu0 %v3237_v44 }
  0xfa   :  { %1094 = vmatprep.mubr.bf16.mxu0 %v3238_v45 }
 0x101   :  { %1095 = vmatmul.mubr.bf16.gmra.mrb[96].mxu0 %v3240_v46 }
 0x102   :  { %1102 = vmatprep.mubr.bf16.mxu0 %v3241_v47 }
 0x109   :  { %1103 = vmatmul.mubr.bf16.gmra.mrb[100].mxu0 %v3243_v48 }
 0x10a   :  { %1110 = vmatprep.mubr.bf16.mxu0 %v3244_v49 }
 0x111   :  { %1111 = vmatmul.mubr.bf16.gmra.mrb[104].mxu0 %v3246_v53 }
 0x114   :  { %v904_v55 = vpop.f32.mrb[0].mxu0  ;;  %v3700_v56 = vpop.f32.mrb[0].mxu1 }
 0x115   :  { %v906_v57 = vpop.f32.mrb[1].mxu0  ;;  %v1122_v58 = vpop.f32.mrb[1].mxu1 }
 0x116   :  { %v907_v59 = vpop.f32.mrb[2].mxu0  ;;  %v3702_v60 = vpop.f32.mrb[2].mxu1 }
 0x117   :  { %v909_v61 = vpop.f32.mrb[3].mxu0  ;;  %v1125_v62 = vpop.f32.mrb[3].mxu1 }
 0x11c   :  { %v912_v1 = vpop.f32.mrb[4].mxu0  ;;  %v3710_v2 = vpop.f32.mrb[4].mxu1 }
 0x11d   :  { %v914_v4 = vpop.f32.mrb[5].mxu0  ;;  %v1130_v5 = vpop.f32.mrb[5].mxu1 }
 0x11e   :  { %v915_v6 = vpop.f32.mrb[6].mxu0  ;;  %v3714_v7 = vpop.f32.mrb[6].mxu1 }
 0x11f   :  { %v917_v8 = vpop.f32.mrb[7].mxu0  ;;  %v1133_v9 = vpop.f32.mrb[7].mxu1 }
 0x124   :  { %v920_v10 = vpop.f32.mrb[8].mxu0  ;;  %v3718_v11 = vpop.f32.mrb[8].mxu1 }
 0x125   :  { %v922_v12 = vpop.f32.mrb[9].mxu0  ;;  %v1138_v13 = vpop.f32.mrb[9].mxu1 }
 0x126   :  { %v3720_v14 = vpop.f32.mrb[10].mxu0  ;;  %v3722_v15 = vpop.f32.mrb[10].mxu1 }
 0x127   :  { %v925_v16 = vpop.f32.mrb[11].mxu0  ;;  %v1141_v17 = vpop.f32.mrb[11].mxu1 }
 0x12c   :  { %v928_v20 = vpop.f32.mrb[12].mxu0  ;;  %v3730_v21 = vpop.f32.mrb[12].mxu1 }
 0x12d   :  { %v930_v23 = vpop.f32.mrb[13].mxu0  ;;  %v1146_v24 = vpop.f32.mrb[13].mxu1 }
 0x12e   :  { %v931_v25 = vpop.f32.mrb[14].mxu0  ;;  %v3734_v26 = vpop.f32.mrb[14].mxu1 }
 0x12f   :  { %v933_v27 = vpop.f32.mrb[15].mxu0  ;;  %v1149_v28 = vpop.f32.mrb[15].mxu1 }
 0x134   :  { %v936_v29 = vpop.f32.mrb[16].mxu0  ;;  %v3738_v30 = vpop.f32.mrb[16].mxu1 }
 0x135   :  { %v938_v31 = vpop.f32.mrb[17].mxu0  ;;  %v1154_v32 = vpop.f32.mrb[17].mxu1 }
 0x136   :  { %v3740_v33 = vpop.f32.mrb[18].mxu0  ;;  %v3742_v34 = vpop.f32.mrb[18].mxu1  ;;  %v1659_v31 = vld [vmem:[%s4918_s2 + $0x48] sm:$0xff] }
 0x137   :  { %v941_v35 = vpop.f32.mrb[19].mxu0  ;;  %v1157_v36 = vpop.f32.mrb[19].mxu1 }
 0x13c   :  { %v944_v39 = vpop.f32.mrb[20].mxu0  ;;  %v2885_v40 = vpop.f32.mrb[20].mxu1 }
 0x13d   :  { %v3752_v42 = vadd.f32 %v2885_v40, %v912_v1  ;;  %v946_v43 = vpop.f32.mrb[21].mxu0  ;;  %v1193_v44 = vpop.f32.mrb[21].mxu1 }
 0x13e   :  { %v3754_v45 = vadd.f32 %v1193_v44, %v904_v55  ;;  %v947_v46 = vpop.f32.mrb[22].mxu0  ;;  %v2886_v47 = vpop.f32.mrb[22].mxu1 }
 0x13f   :  { %v3757_v48 = vadd.f32 %v2886_v47, %v915_v6  ;;  %v949_v49 = vpop.f32.mrb[23].mxu0  ;;  %v1196_v51 = vpop.f32.mrb[23].mxu1  ;;  %v1519_v58 = vmul.f32 %v3752_v42, %v3752_v42 }
 0x140   :  { %v3760_v52 = vadd.f32 %v1196_v51, %v907_v59  ;;  %v1517_v53 = vmul.f32 %v3754_v45, %v3754_v45 }
 0x141   :  { %v1520_v5 = vmul.f32 %v3757_v48, %v3757_v48 }
 0x142   :  { %v1448_v57 = vadd.f32 %v3760_v52, %v3754_v45  ;;  %v1518_v55 = vmul.f32 %v3760_v52, %v3760_v52 }
 0x144   :  { %v1449_v61 = vadd.f32 %v1448_v57, %v3752_v42  ;;  %v1581_v62 = vadd.f32 %v1518_v55, %v1517_v53  ;;  %v952_v63 = vpop.f32.mrb[24].mxu0  ;;  %v2889_v0 = vpop.f32.mrb[24].mxu1 }
 0x145   :  { %v3771_v1 = vadd.f32 %v2889_v0, %v928_v20  ;;  %v954_v59 = vpop.f32.mrb[25].mxu0  ;;  %v1209_v4 = vpop.f32.mrb[25].mxu1 }
 0x146   :  { %v1450_v6 = vadd.f32 %v1449_v61, %v3757_v48  ;;  %v1582_v8 = vadd.f32 %v1581_v62, %v1519_v58  ;;  %v3776_v9 = vadd.f32 %v1209_v4, %v920_v10  ;;  %v955_v12 = vpop.f32.mrb[26].mxu0  ;;  %v2890_v13 = vpop.f32.mrb[26].mxu1 }
 0x147   :  { %v3778_v16 = vadd.f32 %v2890_v13, %v931_v25  ;;  %v957_v17 = vpop.f32.mrb[27].mxu0  ;;  %v1212_v18 = vpop.f32.mrb[27].mxu1  ;;  %v1658_v25 = vld [vmem:[%s4918_s2 + $0x40] sm:$0xff]  ;;  %v1523_v49 = vmul.f32 %v3771_v1, %v3771_v1 }
 0x148   :  { %v1583_v19 = vadd.f32 %v1582_v8, %v1520_v5  ;;  %v1451_v20 = vadd.f32 %v1450_v6, %v3776_v9  ;;  %v1521_v23 = vmul.f32 %v3776_v9, %v3776_v9  ;;  %v3784_v24 = vadd.f32 %v1212_v18, %v3720_v14 }
 0x149   :  { %4957 = vst [vmem:[#allocation2_spill] sm:$0xff] %v3778_v16  ;;  %v3795_v36 = vpack.c.bf16 %v1659_v31, %v1658_v25  ;;  %v1524_v58 = vmul.f32 %v3778_v16, %v3778_v16  ;;  %v1661_v25 = vld [vmem:[%s4918_s2 + $0x58] sm:$0xff] }
 0x14a   :  { %v1584_v27 = vadd.f32 %v1583_v19, %v1521_v23  ;;  %v1522_v10 = vmul.f32 %v3784_v24, %v3784_v24  ;;  %v1452_v28 = vadd.f32 %v1451_v20, %v3784_v24 }
 0x14b   :  { %3031 = vmatpush3.bf16.msra.mxu1 %v3795_v36 }
 0x14c   :  { %v960_v32 = vpop.f32.mrb[28].mxu0  ;;  %v2893_v35 = vpop.f32.mrb[28].mxu1  ;;  %v1585_v14 = vadd.f32 %v1584_v27, %v1522_v10  ;;  %v1453_v51 = vadd.f32 %v1452_v28, %v3771_v1  ;;  %3032 = vmatprep.subr.bf16.mxu1 %v4927_v50 }
 0x14d   :  { %v3797_v37 = vadd.f32 %v2893_v35, %v944_v39  ;;  %v962_v38 = vpop.f32.mrb[29].mxu0  ;;  %v1225_v40 = vpop.f32.mrb[29].mxu1 }
 0x14e   :  { %v3799_v43 = vadd.f32 %v1225_v40, %v936_v29  ;;  %v963_v44 = vpop.f32.mrb[30].mxu0  ;;  %v2894_v47 = vpop.f32.mrb[30].mxu1  ;;  %v1586_v29 = vadd.f32 %v1585_v14, %v1523_v49  ;;  %v1454_v61 = vadd.f32 %v1453_v51, %v3778_v16 }
 0x14f   :  { %4958 = vst [vmem:[#allocation3_spill] sm:$0xff] %v3797_v37  ;;  %v3805_v53 = vadd.f32 %v2894_v47, %v947_v46  ;;  %v965_v57 = vpop.f32.mrb[31].mxu0  ;;  %v1228_v55 = vpop.f32.mrb[31].mxu1  ;;  %v1527_v51 = vmul.f32 %v3797_v37, %v3797_v37 }
 0x150   :  { %4959 = vst [vmem:[#allocation4_spill] sm:$0xff] %v3799_v43  ;;  %v3809_v39 = vadd.f32 %v1228_v55, %v3740_v33  ;;  %v1587_v59 = vadd.f32 %v1586_v29, %v1524_v58  ;;  %v1525_v46 = vmul.f32 %v3799_v43, %v3799_v43  ;;  %v1455_v17 = vadd.f32 %v1454_v61, %v3799_v43 }
 0x151   :  { %4960 = vst [vmem:[#allocation5_spill] sm:$0xff] %v3805_v53 }
 0x152   :  { %4961 = vst [vmem:[#allocation6_spill] sm:$0xff] %v3809_v39  ;;  %v1588_v27 = vadd.f32 %v1587_v59, %v1525_v46  ;;  %v1526_v10 = vmul.f32 %v3809_v39, %v3809_v39  ;;  %v1456_v28 = vadd.f32 %v1455_v17, %v3809_v39 }
 0x154   :  { %v968_v62 = vpop.f32.mrb[32].mxu0  ;;  %v2897_v0 = vpop.f32.mrb[32].mxu1  ;;  %v1457_v57 = vadd.f32 %v1456_v28, %v3797_v37 }
 0x155   :  { %v3816_v4 = vadd.f32 %v2897_v0, %v960_v32  ;;  %v970_v5 = vpop.f32.mrb[33].mxu0  ;;  %v1241_v6 = vpop.f32.mrb[33].mxu1 }
 0x156   :  { %v3818_v8 = vadd.f32 %v1241_v6, %v952_v63  ;;  %v971_v33 = vpop.f32.mrb[34].mxu0  ;;  %v2898_v13 = vpop.f32.mrb[34].mxu1  ;;  %v1660_v63 = vld [vmem:[%s4918_s2 + $0x50] sm:$0xff]  ;;  %v1458_v59 = vadd.f32 %v1457_v57, %v3805_v53 }
 0x157   :  { %4962 = vst [vmem:[#allocation7_spill] sm:$0xff] %v3816_v4  ;;  %v3821_v18 = vadd.f32 %v2898_v13, %v963_v44  ;;  %v973_v19 = vpop.f32.mrb[35].mxu0  ;;  %v1244_v20 = vpop.f32.mrb[35].mxu1  ;;  %v3834_v35 = vpack.c.bf16 %v1661_v25, %v1660_v63 }
 0x158   :  { %4963 = vst [vmem:[#allocation8_spill] sm:$0xff] %v3818_v8  ;;  %v3823_v23 = vadd.f32 %v1244_v20, %v955_v12  ;;  %v1589_v12 = vadd.f32 %v1588_v27, %v1526_v10  ;;  %v1529_v13 = vmul.f32 %v3818_v8, %v3818_v8 }
 0x159   :  { %4964 = vst [vmem:[#allocation9_spill] sm:$0xff] %v3821_v18  ;;  %3034 = vmatpush3.bf16.msra.mxu1 %v3834_v35 }
 0x15a   :  { %4965 = vst [vmem:[#allocation10_spill] sm:$0xff] %v3823_v23  ;;  %3035 = vmatprep.subr.bf16.mxu1 %v4927_v50  ;;  %v1590_v0 = vadd.f32 %v1589_v12, %v1527_v51 }
 0x15c   :  { %v976_v31 = vpop.f32.mrb[36].mxu0  ;;  %v2901_v32 = vpop.f32.mrb[36].mxu1 }
 0x15d   :  { %v3836_v14 = vadd.f32 %v2901_v32, %v976_v31  ;;  %v978_v38 = vpop.f32.mrb[37].mxu0  ;;  %v1257_v40 = vpop.f32.mrb[37].mxu1  ;;  %v1530_v32 = vmul.f32 %v3823_v23, %v3823_v23 }
 0x15e   :  { %v3838_v44 = vadd.f32 %v1257_v40, %v968_v62  ;;  %v979_v47 = vpop.f32.mrb[38].mxu0  ;;  %v2902_v49 = vpop.f32.mrb[38].mxu1  ;;  %v1528_v62 = vmul.f32 %v3805_v53, %v3805_v53 }
 0x15f   :  { %4966 = vst [vmem:[#allocation11_spill] sm:$0xff] %v3836_v14  ;;  %v3844_v55 = vadd.f32 %v2902_v49, %v979_v47  ;;  %v981_v29 = vpop.f32.mrb[39].mxu0  ;;  %v1260_v58 = vpop.f32.mrb[39].mxu1 }
 0x160   :  { %4967 = vst [vmem:[#allocation12_spill] sm:$0xff] %v3838_v44  ;;  %v3847_v61 = vadd.f32 %v1260_v58, %v971_v33  ;;  %v1591_v6 = vadd.f32 %v1590_v0, %v1528_v62  ;;  %v1459_v33 = vadd.f32 %v1458_v59, %v3818_v8  ;;  %v1531_v0 = vmul.f32 %v3816_v4, %v3816_v4 }
 0x161   :  { %4968 = vst [vmem:[#allocation13_spill] sm:$0xff] %v3844_v55 }
 0x162   :  { %4969 = vst [vmem:[#allocation14_spill] sm:$0xff] %v3847_v61  ;;  %v1592_v31 = vadd.f32 %v1591_v6, %v1529_v13  ;;  %v1460_v12 = vadd.f32 %v1459_v33, %v3823_v23 }
 0x164   :  { %v984_v46 = vpop.f32.mrb[40].mxu0  ;;  %v2905_v5 = vpop.f32.mrb[40].mxu1  ;;  %v1593_v47 = vadd.f32 %v1592_v31, %v1530_v32  ;;  %v1461_v62 = vadd.f32 %v1460_v12, %v3816_v4 }
 0x165   :  { %v986_v17 = vpop.f32.mrb[41].mxu0  ;;  %v1273_v19 = vpop.f32.mrb[41].mxu1 }
 0x166   :  { %v3854_v20 = vadd.f32 %v1273_v19, %v984_v46  ;;  %v987_v27 = vpop.f32.mrb[42].mxu0  ;;  %v2906_v10 = vpop.f32.mrb[42].mxu1  ;;  %v1594_v13 = vadd.f32 %v1593_v47, %v1531_v0  ;;  %v1532_v17 = vmul.f32 %v3821_v18, %v3821_v18 }
 0x167   :  { %v989_v28 = vpop.f32.mrb[43].mxu0  ;;  %v1276_v63 = vpop.f32.mrb[43].mxu1 }
 0x168   :  { %4970 = vst [vmem:[#allocation15_spill] sm:$0xff] %v3854_v20  ;;  %v3857_v25 = vadd.f32 %v1276_v63, %v987_v27  ;;  %v1595_v33 = vadd.f32 %v1594_v13, %v1532_v17  ;;  %v1533_v28 = vmul.f32 %v3838_v44, %v3838_v44  ;;  %v1664_v13 = vld [vmem:[%s4918_s2 + $0x70] sm:$0xff]  ;;  %v1665_v17 = vld [vmem:[%s4918_s2 + $0x78] sm:$0xff] }
 0x16a   :  { %4971 = vst [vmem:[#allocation16_spill] sm:$0xff] %v3857_v25  ;;  %v1596_v0 = vadd.f32 %v1595_v33, %v1533_v28 }
 0x16c   :  { %v992_v38 = vpop.f32.mrb[44].mxu0  ;;  %v2909_v40 = vpop.f32.mrb[44].mxu1 }
 0x16d   :  { %v3862_v49 = vadd.f32 %v2905_v5, %v992_v38  ;;  %v994_v51 = vpop.f32.mrb[45].mxu0  ;;  %v1289_v57 = vpop.f32.mrb[45].mxu1  ;;  %v1462_v5 = vadd.f32 %v1461_v62, %v3821_v18  ;;  %v1534_v62 = vmul.f32 %v3847_v61, %v3847_v61 }
 0x16e   :  { %v995_v29 = vpop.f32.mrb[46].mxu0  ;;  %v2910_v58 = vpop.f32.mrb[46].mxu1 }
 0x16f   :  { %4972 = vst [vmem:[#allocation17_spill] sm:$0xff] %v3862_v49  ;;  %v3867_v59 = vadd.f32 %v2906_v10, %v995_v29  ;;  %v997_v46 = vpop.f32.mrb[47].mxu0  ;;  %v1292_v6 = vpop.f32.mrb[47].mxu1  ;;  %v1463_v38 = vadd.f32 %v1462_v5, %v3838_v44 }
 0x170   :  { %v1663_v46 = vld [vmem:[%s4918_s2 + $0x68] sm:$0xff] }
 0x171   :  { %4973 = vst [vmem:[#allocation18_spill] sm:$0xff] %v3867_v59  ;;  %v1464_v5 = vadd.f32 %v1463_v38, %v3847_v61 }
 0x173   :  { %v1465_v44 = vadd.f32 %v1464_v5, %v3836_v14 }
 0x174   :  { %v1000_v19 = vpop.f32.mrb[48].mxu0  ;;  %v3872_v27 = vpop.f32.mrb[48].mxu1 }
 0x175   :  { %v3876_v63 = vadd.f32 %v1289_v57, %v1000_v19  ;;  %v1002_v31 = vpop.f32.mrb[49].mxu0  ;;  %v1305_v10 = vpop.f32.mrb[49].mxu1  ;;  %v1662_v57 = vld [vmem:[%s4918_s2 + $0x60] sm:$0xff]  ;;  %v4923_v19 = vmov 0.0  }
 0x176   :  { %v1003_v32 = vpop.f32.mrb[50].mxu0  ;;  %v3878_v12 = vpop.f32.mrb[50].mxu1  ;;  %2979 = vmatprep.mubr.msk.f32.mxu1 %vm3251_vm1, %v4923_v19  ;;  %v3905_v31 = vpack.c.bf16 %v1665_v17, %v1664_v13  ;;  %v1535_v19 = vmul.f32 %v3836_v14, %v3836_v14 }
 0x177   :  { %4974 = vst [vmem:[#allocation19_spill] sm:$0xff] %v3876_v63  ;;  %v3881_v47 = vadd.f32 %v1292_v6, %v1003_v32  ;;  %v1005_v51 = vpop.f32.mrb[51].mxu0  ;;  %v1308_v29 = vpop.f32.mrb[51].mxu1  ;;  %v3894_v6 = vpack.c.bf16 %v1663_v46, %v1662_v57  ;;  %v1597_v32 = vadd.f32 %v1596_v0, %v1534_v62  ;;  %v1536_v0 = vmul.f32 %v3844_v55, %v3844_v55 }
 0x178   :  { %v1466_v62 = vadd.f32 %v1465_v44, %v3844_v55 }
 0x179   :  { %4975 = vst [vmem:[#allocation20_spill] sm:$0xff] %v3881_v47  ;;  %3037 = vmatpush3.bf16.msra.mxu1 %v3894_v6 }
 0x17a   :  { %3038 = vmatprep.subr.bf16.mxu1 %v4927_v50 }
 0x17c   :  { %v1008_v33 = vpop.f32.mrb[52].mxu0  ;;  %v3902_v28 = vpop.f32.mrb[52].mxu1 }
 0x17d   :  { %v3907_v51 = vadd.f32 %v2909_v40, %v1008_v33  ;;  %v1010_v57 = vpop.f32.mrb[53].mxu0  ;;  %v1321_v46 = vpop.f32.mrb[53].mxu1  ;;  %3040 = vmatpush3.bf16.msra.mxu1 %v3905_v31  ;;  %v1598_v40 = vadd.f32 %v1597_v32, %v1535_v19 }
 0x17e   :  { %v1011_v38 = vpop.f32.mrb[54].mxu0  ;;  %v3910_v61 = vpop.f32.mrb[54].mxu1  ;;  %3041 = vmatprep.subr.bf16.mxu1 %v4927_v50  ;;  %v1467_v50 = vadd.f32 %v1466_v62, %v3854_v20 }
 0x17f   :  { %4976 = vst [vmem:[#allocation21_spill] sm:$0xff] %v3907_v51  ;;  %v3915_v18 = vadd.f32 %v2910_v58, %v1011_v38  ;;  %v1013_v4 = vpop.f32.mrb[55].mxu0  ;;  %v1324_v13 = vpop.f32.mrb[55].mxu1  ;;  %v1599_v57 = vadd.f32 %v1598_v40, %v1536_v0  ;;  %v1537_v58 = vmul.f32 %v3854_v20, %v3854_v20  ;;  %v1538_v40 = vmul.f32 %v3857_v25, %v3857_v25 }
 0x180   :  { %v1539_v0 = vmul.f32 %v3862_v49, %v3862_v49 }
 0x181   :  { %4977 = vst [vmem:[#allocation22_spill] sm:$0xff] %v3915_v18  ;;  %v1600_v23 = vadd.f32 %v1599_v57, %v1537_v58 }
 0x183   :  { %v1601_v8 = vadd.f32 %v1600_v23, %v1538_v40 }
 0x184   :  { %v1016_v17 = vpop.f32.mrb[56].mxu0  ;;  %v3922_v33 = vpop.f32.mrb[56].mxu1 }
 0x185   :  { %v3926_v5 = vadd.f32 %v1305_v10, %v1016_v17  ;;  %v1018_v4 = vpop.f32.mrb[57].mxu0  ;;  %v3928_v38 = vpop.f32.mrb[57].mxu1  ;;  %v1468_v10 = vadd.f32 %v1467_v50, %v3857_v25  ;;  %v1602_v20 = vadd.f32 %v1601_v8, %v1539_v0  ;;  %v1540_v50 = vmul.f32 %v3867_v59, %v3867_v59 }
 0x186   :  { %v1019_v19 = vpop.f32.mrb[58].mxu0  ;;  %v3930_v32 = vpop.f32.mrb[58].mxu1  ;;  %v1542_v0 = vmul.f32 %v3881_v47, %v3881_v47 }
 0x187   :  { %4978 = vst [vmem:[#allocation23_spill] sm:$0xff] %v3926_v5  ;;  %v3933_v14 = vadd.f32 %v1308_v29, %v1019_v19  ;;  %v1021_v44 = vpop.f32.mrb[59].mxu0  ;;  %v3935_v55 = vpop.f32.mrb[59].mxu1  ;;  %v1469_v62 = vadd.f32 %v1468_v10, %v3862_v49  ;;  %v1603_v10 = vadd.f32 %v1602_v20, %v1540_v50  ;;  %v1543_v20 = vmul.f32 %v3907_v51, %v3907_v51 }
 0x189   :  { %4979 = vst [vmem:[#allocation24_spill] sm:$0xff] %v3933_v14  ;;  %v1470_v40 = vadd.f32 %v1469_v62, %v3867_v59 }
 0x18c   :  { %v1024_v17 = vpop.f32.mrb[60].mxu0  ;;  %v3942_v4 = vpop.f32.mrb[60].mxu1 }
 0x18d   :  { %v3946_v29 = vadd.f32 %v3872_v27, %v1024_v17  ;;  %v1026_v19 = vpop.f32.mrb[61].mxu0  ;;  %v3948_v44 = vpop.f32.mrb[61].mxu1  ;;  %v1541_v27 = vmul.f32 %v3876_v63, %v3876_v63  ;;  %v1471_v17 = vadd.f32 %v1470_v40, %v3876_v63 }
 0x18e   :  { %v1027_v57 = vpop.f32.mrb[62].mxu0  ;;  %v3950_v58 = vpop.f32.mrb[62].mxu1 }
 0x18f   :  { %v3955_v25 = vadd.f32 %v3878_v12, %v1027_v57  ;;  %v1029_v53 = vpop.f32.mrb[63].mxu0  ;;  %v3957_v23 = vpop.f32.mrb[63].mxu1  ;;  %v1604_v8 = vadd.f32 %v1603_v10, %v1541_v27  ;;  %v1472_v59 = vadd.f32 %v1471_v17, %v3881_v47  ;;  %v1545_v47 = vmul.f32 %v3926_v5, %v3926_v5 }
 0x191   :  { %v1605_v10 = vadd.f32 %v1604_v8, %v1542_v0 }
 0x194   :  { %v1032_v19 = vpop.f32.mrb[64].mxu0  ;;  %v3963_v49 = vpop.f32.mrb[64].mxu1 }
 0x195   :  { %v3967_v12 = vadd.f32 %v1321_v46, %v1032_v19  ;;  %v1034_v53 = vpop.f32.mrb[65].mxu0  ;;  %v3969_v57 = vpop.f32.mrb[65].mxu1  ;;  %v1473_v46 = vadd.f32 %v1472_v59, %v3907_v51  ;;  %v1606_v19 = vadd.f32 %v1605_v10, %v1543_v20 }
 0x196   :  { %v1035_v37 = vpop.f32.mrb[66].mxu0  ;;  %v3971_v62 = vpop.f32.mrb[66].mxu1  ;;  %v1544_v53 = vmul.f32 %v3915_v18, %v3915_v18 }
 0x197   :  { %4980 = vst [vmem:[#allocation25_spill] sm:$0xff] %v3967_v12  ;;  %v3976_v50 = vadd.f32 %v1324_v13, %v1035_v37  ;;  %v1037_v40 = vpop.f32.mrb[67].mxu0  ;;  %v3978_v27 = vpop.f32.mrb[67].mxu1  ;;  %v1474_v17 = vadd.f32 %v1473_v46, %v3915_v18 }
 0x198   :  { %v1607_v0 = vadd.f32 %v1606_v19, %v1544_v53 }
 0x199   :  { %4981 = vst [vmem:[#allocation26_spill] sm:$0xff] %v3976_v50  ;;  %v1475_v20 = vadd.f32 %v1474_v17, %v3926_v5 }
 0x19a   :  { %v1608_v18 = vadd.f32 %v1607_v0, %v1545_v47 }
 0x19c   :  { %v1040_v63 = vpop.f32.mrb[68].mxu0  ;;  %v3983_v39 = vpop.f32.mrb[68].mxu1 }
 0x19d   :  { %v3989_v37 = vadd.f32 %v3902_v28, %v1040_v63  ;;  %v1042_v13 = vpop.f32.mrb[69].mxu0  ;;  %v3991_v40 = vpop.f32.mrb[69].mxu1  ;;  %v1546_v63 = vmul.f32 %v3933_v14, %v3933_v14  ;;  %v1476_v28 = vadd.f32 %v1475_v20, %v3933_v14  ;;  %v1548_v14 = vmul.f32 %v3955_v25, %v3955_v25 }
 0x19e   :  { %v1043_v8 = vpop.f32.mrb[70].mxu0  ;;  %v3993_v59 = vpop.f32.mrb[70].mxu1  ;;  %v1547_v13 = vmul.f32 %v3946_v29, %v3946_v29 }
 0x19f   :  { %v3997_v10 = vadd.f32 %v3910_v61, %v1043_v8  ;;  %v1045_v51 = vpop.f32.mrb[71].mxu0  ;;  %v3999_v46 = vpop.f32.mrb[71].mxu1  ;;  %v1609_v19 = vadd.f32 %v1608_v18, %v1546_v63  ;;  %v1477_v53 = vadd.f32 %v1476_v28, %v3946_v29 }
 0x1a1   :  { %4982 = vst [vmem:[#allocation27_spill] sm:$0xff] %v3997_v10  ;;  %v1610_v20 = vadd.f32 %v1609_v19, %v1547_v13 }
 0x1a4   :  { %v1048_v43 = vpop.f32.mrb[72].mxu0  ;;  %v2937_v16 = vpop.f32.mrb[72].mxu1 }
 0x1a5   :  { %v4008_v61 = vadd.f32 %v3928_v38, %v1048_v43  ;;  %v4011_v51 = vadd.f32 %v2937_v16, %v3700_v56  ;;  %v1050_v47 = vpop.f32.mrb[73].mxu0  ;;  %v4013_v17 = vpop.f32.mrb[73].mxu1  ;;  %v1478_v56 = vadd.f32 %v1477_v53, %v3955_v25  ;;  %v1549_v16 = vmul.f32 %v3967_v12, %v3967_v12 }
 0x1a6   :  { %v1051_v8 = vpop.f32.mrb[74].mxu0  ;;  %v2938_v0 = vpop.f32.mrb[74].mxu1  ;;  %v1611_v38 = vadd.f32 %v1610_v20, %v1548_v14 }
 0x1a7   :  { %v4018_v5 = vadd.f32 %v3935_v55, %v1051_v8  ;;  %v1053_v18 = vpop.f32.mrb[75].mxu0  ;;  %v4020_v63 = vpop.f32.mrb[75].mxu1  ;;  %v4023_v43 = vadd.f32 %v2938_v0, %v3702_v60  ;;  %v1479_v28 = vadd.f32 %v1478_v56, %v3967_v12  ;;  %v1550_v55 = vmul.f32 %v3976_v50, %v3976_v50 }
 0x1a8   :  { %v1612_v47 = vadd.f32 %v1611_v38, %v1549_v16  ;;  %v1551_v16 = vmul.f32 %v3989_v37, %v3989_v37 }
 0x1a9   :  { %v1480_v56 = vadd.f32 %v1479_v28, %v3976_v50  ;;  %v1552_v28 = vmul.f32 %v3997_v10, %v3997_v10 }
 0x1ac   :  { %v1056_v13 = vpop.f32.mrb[76].mxu0  ;;  %v2941_v19 = vpop.f32.mrb[76].mxu1 }
 0x1ad   :  { %v4032_v8 = vadd.f32 %v3922_v33, %v1056_v13  ;;  %v4035_v60 = vadd.f32 %v2941_v19, %v3718_v11  ;;  %v1058_v0 = vpop.f32.mrb[77].mxu0  ;;  %v1417_v53 = vpop.f32.mrb[77].mxu1 }
 0x1ae   :  { %v4038_v18 = vadd.f32 %v1417_v53, %v3710_v2  ;;  %v1059_v14 = vpop.f32.mrb[78].mxu0  ;;  %v2942_v20 = vpop.f32.mrb[78].mxu1  ;;  %v1613_v2 = vadd.f32 %v1612_v47, %v1550_v55  ;;  %v1481_v0 = vadd.f32 %v1480_v56, %v3989_v37 }
 0x1af   :  { %v4044_v38 = vadd.f32 %v3930_v32, %v1059_v14  ;;  %v1061_v33 = vpop.f32.mrb[79].mxu0  ;;  %v1420_v13 = vpop.f32.mrb[79].mxu1  ;;  %v4047_v11 = vadd.f32 %v2942_v20, %v3722_v15  ;;  %v1553_v14 = vmul.f32 %v4008_v61, %v4008_v61 }
 0x1b0   :  { %v4050_v19 = vadd.f32 %v1420_v13, %v3714_v7  ;;  %v1614_v53 = vadd.f32 %v1613_v2, %v1551_v16  ;;  %v1482_v32 = vadd.f32 %v1481_v0, %v3997_v10 }
 0x1b2   :  { %v1615_v33 = vadd.f32 %v1614_v53, %v1552_v28  ;;  %v1483_v13 = vadd.f32 %v1482_v32, %v4008_v61  ;;  %v1555_v53 = vmul.f32 %v4032_v8, %v4032_v8 }
 0x1b4   :  { %v1064_v50 = vpop.f32.mrb[80].mxu0  ;;  %v2945_v12 = vpop.f32.mrb[80].mxu1 }
 0x1b5   :  { %v4059_v15 = vadd.f32 %v3948_v44, %v1064_v50  ;;  %v4062_v7 = vadd.f32 %v2945_v12, %v3738_v30  ;;  %v1066_v47 = vpop.f32.mrb[81].mxu0  ;;  %v1433_v55 = vpop.f32.mrb[81].mxu1  ;;  %v1616_v12 = vadd.f32 %v1615_v33, %v1553_v14  ;;  %v1484_v50 = vadd.f32 %v1483_v13, %v4018_v5 }
 0x1b6   :  { %v4065_v20 = vadd.f32 %v1433_v55, %v3730_v21  ;;  %v1067_v56 = vpop.f32.mrb[82].mxu0  ;;  %v2946_v16 = vpop.f32.mrb[82].mxu1  ;;  %v1554_v21 = vmul.f32 %v4018_v5, %v4018_v5 }
 0x1b7   :  { %v4069_v2 = vadd.f32 %v3957_v23, %v1067_v56  ;;  %v1069_v0 = vpop.f32.mrb[83].mxu0  ;;  %v1436_v10 = vpop.f32.mrb[83].mxu1  ;;  %v4072_v44 = vadd.f32 %v2946_v16, %v3742_v34  ;;  %v1485_v32 = vadd.f32 %v1484_v50, %v4032_v8  ;;  %v1557_v33 = vmul.f32 %v4059_v15, %v4059_v15 }
 0x1b8   :  { %v4075_v30 = vadd.f32 %v1436_v10, %v3734_v26  ;;  %v1617_v23 = vadd.f32 %v1616_v12, %v1554_v21  ;;  %v1556_v10 = vmul.f32 %v4044_v38, %v4044_v38 }
 0x1b9   :  { %v1486_v16 = vadd.f32 %v1485_v32, %v4044_v38  ;;  %v1558_v21 = vmul.f32 %v4069_v2, %v4069_v2 }
 0x1ba   :  { %v1618_v26 = vadd.f32 %v1617_v23, %v1555_v53 }
 0x1bb   :  { %v1487_v0 = vadd.f32 %v1486_v16, %v4059_v15 }
 0x1bc   :  { %v1072_v28 = vpop.f32.mrb[84].mxu0  ;;  %v1619_v13 = vadd.f32 %v1618_v26, %v1556_v10 }
 0x1bd   :  { %v4084_v47 = vadd.f32 %v3942_v4, %v1072_v28  ;;  %v1074_v34 = vpop.f32.mrb[85].mxu0  ;;  %v1488_v28 = vadd.f32 %v1487_v0, %v4069_v2 }
 0x1be   :  { %v1075_v55 = vpop.f32.mrb[86].mxu0  ;;  %v1620_v12 = vadd.f32 %v1619_v13, %v1557_v33 }
 0x1bf   :  { %v4089_v14 = vadd.f32 %v3950_v58, %v1075_v55  ;;  %v1077_v56 = vpop.f32.mrb[87].mxu0  ;;  %v1559_v23 = vmul.f32 %v4084_v47, %v4084_v47  ;;  %v1489_v26 = vadd.f32 %v1488_v28, %v4084_v47 }
 0x1c0   :  { %v1621_v55 = vadd.f32 %v1620_v12, %v1558_v21 }
 0x1c1   :  { %v1560_v56 = vmul.f32 %v4089_v14, %v4089_v14  ;;  %v1490_v16 = vadd.f32 %v1489_v26, %v4089_v14 }
 0x1c2   :  { %v1622_v10 = vadd.f32 %v1621_v55, %v1559_v23 }
 0x1c4   :  { %v1080_v4 = vpop.f32.mrb[88].mxu0 }
 0x1c5   :  { %v4098_v50 = vadd.f32 %v3969_v57, %v1080_v4  ;;  %v1082_v53 = vpop.f32.mrb[89].mxu0  ;;  %v1623_v4 = vadd.f32 %v1622_v10, %v1560_v56 }
 0x1c6   :  { %v1083_v58 = vpop.f32.mrb[90].mxu0 }
 0x1c7   :  { %v4104_v32 = vadd.f32 %v3978_v27, %v1083_v58  ;;  %v1085_v34 = vpop.f32.mrb[91].mxu0  ;;  %v1561_v33 = vmul.f32 %v4098_v50, %v4098_v50  ;;  %v1491_v12 = vadd.f32 %v1490_v16, %v4098_v50 }
 0x1c9   :  { %v1624_v58 = vadd.f32 %v1623_v4, %v1561_v33  ;;  %v1562_v28 = vmul.f32 %v4104_v32, %v4104_v32  ;;  %v1492_v23 = vadd.f32 %v1491_v12, %v4104_v32 }
 0x1cb   :  { %v1625_v55 = vadd.f32 %v1624_v58, %v1562_v28 }
 0x1cc   :  { %v1088_v57 = vpop.f32.mrb[92].mxu0 }
 0x1cd   :  { %v4113_v13 = vadd.f32 %v3963_v49, %v1088_v57  ;;  %v1090_v0 = vpop.f32.mrb[93].mxu0 }
 0x1ce   :  { %v1091_v27 = vpop.f32.mrb[94].mxu0 }
 0x1cf   :  { %v4117_v21 = vadd.f32 %v3971_v62, %v1091_v27  ;;  %v1093_v53 = vpop.f32.mrb[95].mxu0  ;;  %v1563_v34 = vmul.f32 %v4113_v13, %v4113_v13  ;;  %v1493_v26 = vadd.f32 %v1492_v23, %v4113_v13 }
 0x1d1   :  { %v1626_v57 = vadd.f32 %v1625_v55, %v1563_v34  ;;  %v1564_v16 = vmul.f32 %v4117_v21, %v4117_v21  ;;  %v1494_v27 = vadd.f32 %v1493_v26, %v4117_v21 }
 0x1d3   :  { %v1627_v12 = vadd.f32 %v1626_v57, %v1564_v16 }
 0x1d4   :  { %v1096_v49 = vpop.f32.mrb[96].mxu0 }
 0x1d5   :  { %v4126_v10 = vadd.f32 %v3991_v40, %v1096_v49  ;;  %v1098_v56 = vpop.f32.mrb[97].mxu0 }
 0x1d6   :  { %v1099_v62 = vpop.f32.mrb[98].mxu0 }
 0x1d7   :  { %v4131_v33 = vadd.f32 %v3999_v46, %v1099_v62  ;;  %v1101_v0 = vpop.f32.mrb[99].mxu0  ;;  %v1565_v4 = vmul.f32 %v4126_v10, %v4126_v10  ;;  %v1495_v53 = vadd.f32 %v1494_v27, %v4126_v10 }
 0x1d9   :  { %v1628_v58 = vadd.f32 %v1627_v12, %v1565_v4  ;;  %v1566_v28 = vmul.f32 %v4131_v33, %v4131_v33  ;;  %v1496_v49 = vadd.f32 %v1495_v53, %v4131_v33 }
 0x1db   :  { %v1629_v62 = vadd.f32 %v1628_v58, %v1566_v28 }
 0x1dc   :  { %v1104_v40 = vpop.f32.mrb[100].mxu0 }
 0x1dd   :  { %v4140_v23 = vadd.f32 %v3983_v39, %v1104_v40  ;;  %v1106_v34 = vpop.f32.mrb[101].mxu0 }
 0x1de   :  { %v1107_v46 = vpop.f32.mrb[102].mxu0 }
 0x1df   :  { %v1567_v55 = vmul.f32 %v4140_v23, %v4140_v23  ;;  %v4146_v26 = vadd.f32 %v3993_v59, %v1107_v46  ;;  %v1109_v56 = vpop.f32.mrb[103].mxu0  ;;  %v1497_v57 = vadd.f32 %v1496_v49, %v4140_v23 }
 0x1e1   :  { %v1630_v16 = vadd.f32 %v1629_v62, %v1567_v55  ;;  %v1568_v0 = vmul.f32 %v4146_v26, %v4146_v26  ;;  %v1498_v27 = vadd.f32 %v1497_v57, %v4146_v26 }
 0x1e3   :  { %v1631_v40 = vadd.f32 %v1630_v16, %v1568_v0 }
 0x1e4   :  { %v1112_v39 = vpop.f32.mrb[104].mxu0 }
 0x1e5   :  { %v4153_v4 = vadd.f32 %v4013_v17, %v1112_v39  ;;  %v1114_v12 = vpop.f32.mrb[105].mxu0  ;;  %v1571_v17 = vmul.f32 %v4011_v51, %v4011_v51 }
 0x1e6   :  { %v1115_v53 = vpop.f32.mrb[106].mxu0  ;;  %v1573_v12 = vmul.f32 %v4038_v18, %v4038_v18 }
 0x1e7   :  { %v1499_v59 = vadd.f32 %v1498_v27, %v4153_v4  ;;  %v1569_v58 = vmul.f32 %v4153_v4, %v4153_v4  ;;  %v4159_v28 = vadd.f32 %v4020_v63, %v1115_v53  ;;  %v1117_v34 = vpop.f32.mrb[107].mxu0  ;;  %v1572_v63 = vmul.f32 %v4023_v43, %v4023_v43 }
 0x1e9   :  { %v1632_v46 = vadd.f32 %v1631_v40, %v1569_v58  ;;  %v1500_v49 = vadd.f32 %v1499_v59, %v4159_v28  ;;  %v1570_v55 = vmul.f32 %v4159_v28, %v4159_v28  ;;  %v1574_v58 = vmul.f32 %v4050_v19, %v4050_v19 }
 0x1eb   :  { %v1501_v56 = vadd.f32 %v1500_v49, %v4011_v51  ;;  %v1633_v62 = vadd.f32 %v1632_v46, %v1570_v55  ;;  %v1575_v55 = vmul.f32 %v4035_v60, %v4035_v60 }
 0x1ed   :  { %v1502_v57 = vadd.f32 %v1501_v56, %v4023_v43  ;;  %v1634_v16 = vadd.f32 %v1633_v62, %v1571_v17 }
 0x1ef   :  { %v1503_v0 = vadd.f32 %v1502_v57, %v4038_v18  ;;  %v1635_v27 = vadd.f32 %v1634_v16, %v1572_v63  ;;  %v1576_v57 = vmul.f32 %v4047_v11, %v4047_v11 }
 0x1f1   :  { %v1504_v39 = vadd.f32 %v1503_v0, %v4050_v19  ;;  %v1636_v59 = vadd.f32 %v1635_v27, %v1573_v12 }
 0x1f3   :  { %v1505_v53 = vadd.f32 %v1504_v39, %v4035_v60  ;;  %v1637_v49 = vadd.f32 %v1636_v59, %v1574_v58  ;;  %v1577_v39 = vmul.f32 %v4065_v20, %v4065_v20 }
 0x1f5   :  { %v1506_v40 = vadd.f32 %v1505_v53, %v4047_v11  ;;  %v1638_v56 = vadd.f32 %v1637_v49, %v1575_v55  ;;  %v4983_v49 = vmov 0.0   ;;  %v4984_v55 = vmov 0.0|0.0  }
 0x1f7   :  { %v1507_v34 = vadd.f32 %v1506_v40, %v4065_v20  ;;  %v1639_v63 = vadd.f32 %v1638_v56, %v1576_v57  ;;  %v1578_v40 = vmul.f32 %v4075_v30, %v4075_v30  ;;  %v1580_v56 = vmul.f32 %v4072_v44, %v4072_v44 }
 0x1f9   :  { %v1508_v46 = vadd.f32 %v1507_v34, %v4075_v30  ;;  %v1640_v53 = vadd.f32 %v1639_v63, %v1577_v39 }
 0x1fb   :  { %v1509_v17 = vadd.f32 %v1508_v46, %v4062_v7  ;;  %v1641_v34 = vadd.f32 %v1640_v53, %v1578_v40  ;;  %v1579_v46 = vmul.f32 %v4062_v7, %v4062_v7 }
 0x1fd   :  { %v1510_v62 = vadd.f32 %v1509_v17, %v4072_v44  ;;  %v1642_v17 = vadd.f32 %v1641_v34, %v1579_v46 }
 0x1ff   :  { %v1511_v16 = vrot.slane %v1510_v62, 4 }
 0x201   :  { %v1512_v0 = vadd.f32 %v1511_v16, %v1510_v62  ;;  %v1643_v62 = vadd.f32 %v1642_v17, %v1580_v56 }
 0x203   :  { %v1513_v27 = vrot.slane %v1512_v0, 2  ;;  %v1644_v57 = vrot.slane %v1643_v62, 4 }
 0x205   :  { %v1514_v12 = vadd.f32 %v1513_v27, %v1512_v0 }
 0x207   :  { %v1515_v59 = vrot.slane %v1514_v12, 1 }
 0x209   :  { %v1516_v58 = vadd.f32 %v1515_v59, %v1514_v12 }
 0x20b   :  { %2980 = vmatmul.mubr.f32.vlgmr.msra.gmra.mrb[84].mxu1 %v1516_v58  ;;  %v1819_v58 = vlaneseq }
 0x20c   :  { %3043 = vmatpush3.bf16.msra.mxu1 %v3696_v54  ;;  %3014 = vmatprep.mubr.msk.f32.mxu1 %vm3251_vm1, %v4983_v49  ;;  %v1645_v54 = vadd.f32 %v1644_v57, %v1643_v62 }
 0x20d   :  { %3044 = vmatprep.subr.bf16.mxu1 %v4984_v55 }
 0x20e   :  { %v1646_v16 = vrot.slane %v1645_v54, 2 }
 0x210   :  { %3046 = vmatpush3.bf16.msra.mxu1 %v3712_v3  ;;  %v1647_v3 = vadd.f32 %v1646_v16, %v1645_v54 }
 0x211   :  { %3047 = vmatprep.subr.bf16.mxu1 %v4984_v55 }
 0x214   :  { %3049 = vmatpush3.bf16.msra.mxu1 %v3732_v22  ;;  %v1648_v22 = vrot.slane %v1647_v3, 1 }
 0x215   :  { %3050 = vmatprep.subr.bf16.mxu1 %v4984_v55 }
 0x218   :  { %3052 = vmatpush3.bf16.msra.mxu1 %v3750_v41  ;;  %v1649_v41 = vadd.f32 %v1648_v22, %v1647_v3 }
 0x219   :  { %3053 = vmatprep.subr.bf16.mxu1 %v4984_v55 }
 0x21c   :  { %3055 = vmatpush3.bf16.msra.mxu1 %v3795_v36 }
 0x21d   :  { %3056 = vmatprep.subr.bf16.mxu1 %v4984_v55 }
 0x220   :  { %3058 = vmatpush3.bf16.msra.mxu1 %v3834_v35 }
 0x221   :  { %3059 = vmatprep.subr.bf16.mxu1 %v4984_v55 }
 0x224   :  { %3061 = vmatpush3.bf16.msra.mxu1 %v3894_v6  ;;  %v4211_v6 = vshrl.u32 %v1819_v58, 7  ;;  %v4993_v58 = vld [vmem:[#allocation9_spill] sm:$0xff] }
 0x225   :  { %3062 = vmatprep.subr.bf16.mxu1 %v4984_v55  ;;  %v4220_v55 = vld [vmem:[%s4920_s4] sm:$0x1] }
 0x226   :  { %v4951_v34 = vsub.s32 0, %v4211_v6 }
 0x228   :  { %3064 = vmatpush3.bf16.msra.mxu1 %v3905_v31  ;;  %v1811_v31 = vld [vmem:[%s4919_s3] sm:$0x1] }
 0x22b   :  { %3015 = vmatmul.mubr.f32.vlgmr.msra.gmra.mrb[86].mxu1 %v1649_v41  ;;  %v4985_v41 = vld [vmem:[#allocation2_spill] sm:$0xff] }
 0x2de   :  { %v1732_v63 = vpop.f32.mrb[84].mxu1 }
 0x2df   :  { %v2981_v0 = vpop.f32.mrb[85].mxu1  ;;  %v1736_v36 = vmul.f32 0.00048828125, %v1732_v63  ;;  %v4986_v63 = vld [vmem:[#allocation4_spill] sm:$0xff] }
 0x2e0   :  { %v4987_v0 = vld [vmem:[#allocation6_spill] sm:$0xff] }
 0x2e1   :  { %v1808_v27 = vmul.f32 %v1736_v36, %v1736_v36 }
 0x2fe   :  { %v1803_v39 = vpop.f32.mrb[86].mxu1 }
 0x2ff   :  { %v1807_v12 = vmul.f32 0.00048828125, %v1803_v39  ;;  %v3016_v53 = vpop.f32.mrb[87].mxu1  ;;  %v4989_v39 = vld [vmem:[#allocation5_spill] sm:$0xff] }
 0x300   :  { %v4991_v53 = vld [vmem:[#allocation10_spill] sm:$0xff] }
 0x301   :  { %v1809_v35 = vsub.f32 %v1807_v12, %v1808_v27  ;;  %v4990_v27 = vld [vmem:[#allocation8_spill] sm:$0xff] }
 0x303   :  { %v1810_v40 = vmax.f32 %v1809_v35, 0.0 }
 0x305   :  { %v1812_v59 = vadd.f32 1e-05, %v1810_v40  ;;  %v4992_v40 = vld [vmem:[#allocation7_spill] sm:$0xff] }
 0x307   :  { %3247 = vrsqrt.f32 %v1812_v59 }
 0x311   :  { %v3248_v46 = vpop.eup %3247 }
 0x312   :  { %v1814_v49 = vmul.f32 %v3248_v46, %v1811_v31  ;;  %v4994_v46 = vld [vmem:[#allocation12_spill] sm:$0xff] }
 0x314   :  { %v4222_v17 = vmul.f32 %v1814_v49, %v1736_v36  ;;  %v4226_v56 = vrot.slane %v1814_v49, %v4951_v34  ;;  %v4988_v36 = vld [vmem:[#allocation3_spill] sm:$0xff] }
 0x315   :  { %v5007_v34 = vld [vmem:[#allocation19_spill] sm:$0xff] }
 0x316   :  { %v1817_v62 = vsub.f32 %v4220_v55, %v4222_v17  ;;  %v4232_v57 = vmul.f32 %v4226_v56, %v3754_v45  ;;  %v4236_v54 = vmul.f32 %v4226_v56, %v3760_v52  ;;  %v4240_v16 = vmul.f32 %v4226_v56, %v3752_v42  ;;  %v4995_v55 = vld [vmem:[#allocation14_spill] sm:$0xff] }
 0x317   :  { %v4244_v3 = vmul.f32 %v4226_v56, %v3757_v48  ;;  %v4248_v22 = vmul.f32 %v4226_v56, %v3776_v9  ;;  %v4252_v45 = vmul.f32 %v4226_v56, %v3784_v24  ;;  %v4256_v52 = vmul.f32 %v4226_v56, %v3771_v1 }
 0x318   :  { %v4260_v42 = vmul.f32 %v4226_v56, %v4985_v41  ;;  %v4264_v48 = vmul.f32 %v4226_v56, %v4986_v63  ;;  %v4268_v9 = vmul.f32 %v4226_v56, %v4987_v0  ;;  %v4272_v24 = vmul.f32 %v4226_v56, %v4988_v36  ;;  %v4996_v41 = vld [vmem:[#allocation11_spill] sm:$0xff]  ;;  %v4997_v0 = vld [vmem:[#allocation13_spill] sm:$0xff] }
 0x319   :  { %v4276_v1 = vmul.f32 %v4226_v56, %v4989_v39  ;;  %v4280_v12 = vmul.f32 %v4226_v56, %v4990_v27  ;;  %v4284_v35 = vmul.f32 %v4226_v56, %v4991_v53  ;;  %v4288_v59 = vmul.f32 %v4226_v56, %v4992_v40  ;;  %v4999_v39 = vld [vmem:[#allocation15_spill] sm:$0xff]  ;;  %v5001_v53 = vld [vmem:[#allocation16_spill] sm:$0xff] }
 0x31a   :  { %v4292_v31 = vmul.f32 %v4226_v56, %v4993_v58  ;;  %v4296_v49 = vmul.f32 %v4226_v56, %v4994_v46  ;;  %v4300_v17 = vmul.f32 %v4226_v56, %v4995_v55  ;;  %v4304_v63 = vmul.f32 %v4226_v56, %v4996_v41  ;;  %v5003_v58 = vld [vmem:[#allocation17_spill] sm:$0xff]  ;;  %v5005_v55 = vld [vmem:[#allocation18_spill] sm:$0xff] }
 0x31b   :  { %v4308_v36 = vmul.f32 %v4226_v56, %v4997_v0  ;;  %v4312_v27 = vmul.f32 %v4226_v56, %v4999_v39  ;;  %v4316_v40 = vmul.f32 %v4226_v56, %v5001_v53  ;;  %v4320_v46 = vmul.f32 %v4226_v56, %v5003_v58 }
 0x31c   :  { %v4324_v41 = vmul.f32 %v4226_v56, %v5005_v55  ;;  %v4328_v0 = vmul.f32 %v4226_v56, %v5007_v34 }
 0x31d   :  { %4998 = vst [vmem:[#allocation2_spill] sm:$0xff] %v4308_v36  ;;  %5000 = vst [vmem:[#allocation4_spill] sm:$0xff] %v4312_v27  ;;  %v5008_v36 = vld [vmem:[#allocation20_spill] sm:$0xff]  ;;  %v5009_v27 = vld [vmem:[#allocation21_spill] sm:$0xff] }
 0x31e   :  { %5002 = vst [vmem:[#allocation6_spill] sm:$0xff] %v4316_v40  ;;  %5004 = vst [vmem:[#allocation3_spill] sm:$0xff] %v4320_v46  ;;  %v4332_v39 = vmul.f32 %v4226_v56, %v5008_v36  ;;  %v4336_v53 = vmul.f32 %v4226_v56, %v5009_v27  ;;  %v5011_v40 = vld [vmem:[#allocation22_spill] sm:$0xff]  ;;  %v5013_v46 = vld [vmem:[#allocation23_spill] sm:$0xff]  ;;  %v4352_v36 = vmul.f32 %v4226_v56, %v3946_v29 }
 0x31f   :  { %5006 = vst [vmem:[#allocation5_spill] sm:$0xff] %v4324_v41  ;;  %v4340_v58 = vmul.f32 %v4226_v56, %v5011_v40  ;;  %v4344_v55 = vmul.f32 %v4226_v56, %v5013_v46  ;;  %v5014_v41 = vld [vmem:[#allocation24_spill] sm:$0xff]  ;;  %v4356_v27 = vmul.f32 %v4226_v56, %v3955_v25  ;;  %v4376_v25 = vmul.f32 %v4226_v56, %v4008_v61 }
 0x320   :  { %5010 = vst [vmem:[#allocation8_spill] sm:$0xff] %v4336_v53  ;;  %v4348_v34 = vmul.f32 %v4226_v56, %v5014_v41  ;;  %v5016_v53 = vld [vmem:[#allocation25_spill] sm:$0xff]  ;;  %v4368_v41 = vmul.f32 %v4226_v56, %v3989_v37  ;;  %v4388_v37 = vmul.f32 %v4226_v56, %v4044_v38  ;;  %v4396_v61 = vmul.f32 %v4226_v56, %v4069_v2 }
 0x321   :  { %5012 = vst [vmem:[#allocation10_spill] sm:$0xff] %v4340_v58  ;;  %v4360_v40 = vmul.f32 %v4226_v56, %v5016_v53  ;;  %v5017_v58 = vld [vmem:[#allocation26_spill] sm:$0xff]  ;;  %v4380_v53 = vmul.f32 %v4226_v56, %v4018_v5  ;;  %v4400_v5 = vmul.f32 %v4226_v56, %v4084_v47  ;;  %v4408_v38 = vmul.f32 %v4226_v56, %v4098_v50 }
 0x322   :  { %5015 = vst [vmem:[#allocation7_spill] sm:$0xff] %v4348_v34  ;;  %v4364_v46 = vmul.f32 %v4226_v56, %v5017_v58  ;;  %v5018_v34 = vld [vmem:[#allocation27_spill] sm:$0xff]  ;;  %v4384_v58 = vmul.f32 %v4226_v56, %v4032_v8  ;;  %v4404_v8 = vmul.f32 %v4226_v56, %v4089_v14  ;;  %v4416_v2 = vmul.f32 %v4226_v56, %v4113_v13 }
 0x323   :  { %v4372_v29 = vmul.f32 %v4226_v56, %v5018_v34  ;;  %v4392_v34 = vmul.f32 %v4226_v56, %v4059_v15  ;;  %v4412_v15 = vmul.f32 %v4226_v56, %v4104_v32  ;;  %v4420_v47 = vmul.f32 %v4226_v56, %v4117_v21 }
 0x324   :  { %v4424_v14 = vmul.f32 %v4226_v56, %v4126_v10  ;;  %v4428_v50 = vmul.f32 %v4226_v56, %v4131_v33  ;;  %v4432_v32 = vmul.f32 %v4226_v56, %v4140_v23  ;;  %v4436_v13 = vmul.f32 %v4226_v56, %v4146_v26 }
 0x325   :  { %v4440_v21 = vmul.f32 %v4226_v56, %v4153_v4  ;;  %v4444_v10 = vmul.f32 %v4226_v56, %v4159_v28  ;;  %v4448_v33 = vmul.f32 %v4226_v56, %v4011_v51  ;;  %v4452_v23 = vmul.f32 %v4226_v56, %v4023_v43 }
 0x326   :  { %v4456_v26 = vmul.f32 %v4226_v56, %v4038_v18  ;;  %v4460_v4 = vmul.f32 %v4226_v56, %v4050_v19  ;;  %v4464_v28 = vmul.f32 %v4226_v56, %v4035_v60  ;;  %v4468_v51 = vmul.f32 %v4226_v56, %v4047_v11 }
 0x327   :  { %5019 = vst [vmem:[#allocation9_spill] sm:$0xff] %v4448_v33  ;;  %v5020_v33 = vsub.s32 0, %v4211_v6  ;;  %v4476_v18 = vmul.f32 %v4226_v56, %v4065_v20  ;;  %v4480_v19 = vmul.f32 %v4226_v56, %v4075_v30  ;;  %v4484_v60 = vmul.f32 %v4226_v56, %v4062_v7 }
 0x328   :  { %v4488_v11 = vmul.f32 %v4226_v56, %v4072_v44 }
 0x329   :  { %v4472_v43 = vrot.slane %v1817_v62, %v5020_v33  ;;  %v5031_v33 = vld [vmem:[#allocation6_spill] sm:$0xff] }
 0x32b   :  { %v4492_v6 = vadd.f32 %v4472_v43, %v4232_v57  ;;  %v4496_v20 = vadd.f32 %v4472_v43, %v4236_v54  ;;  %v4500_v30 = vadd.f32 %v4472_v43, %v4240_v16  ;;  %v4504_v7 = vadd.f32 %v4472_v43, %v4244_v3 }
 0x32c   :  { %v4508_v44 = vadd.f32 %v4472_v43, %v4248_v22  ;;  %v4512_v56 = vadd.f32 %v4472_v43, %v4252_v45  ;;  %v4516_v62 = vadd.f32 %v4472_v43, %v4256_v52  ;;  %v4520_v57 = vadd.f32 %v4472_v43, %v4260_v42 }
 0x32d   :  { %5021 = vst [vmem:[#allocation12_spill] sm:$0xff] %v4492_v6  ;;  %5022 = vst [vmem:[#allocation14_spill] sm:$0xff] %v4496_v20  ;;  %v4524_v54 = vadd.f32 %v4472_v43, %v4264_v48  ;;  %v4528_v16 = vadd.f32 %v4472_v43, %v4268_v9  ;;  %v4532_v3 = vadd.f32 %v4472_v43, %v4272_v24 }
 0x32e   :  { %5023 = vst [vmem:[#allocation11_spill] sm:$0xff] %v4500_v30  ;;  %5024 = vst [vmem:[#allocation13_spill] sm:$0xff] %v4504_v7  ;;  %v4536_v22 = vadd.f32 %v4472_v43, %v4276_v1  ;;  %v4540_v45 = vadd.f32 %v4472_v43, %v4280_v12  ;;  %v4544_v52 = vadd.f32 %v4472_v43, %v4284_v35  ;;  %v5028_v12 = vld [vmem:[#allocation2_spill] sm:$0xff] }
 0x32f   :  { %5025 = vst [vmem:[#allocation15_spill] sm:$0xff] %v4508_v44  ;;  %v4548_v42 = vadd.f32 %v4472_v43, %v4288_v59  ;;  %v4552_v48 = vadd.f32 %v4472_v43, %v4292_v31  ;;  %v4556_v9 = vadd.f32 %v4472_v43, %v4296_v49  ;;  %v4560_v24 = vadd.f32 %v4472_v43, %v4300_v17  ;;  %v5029_v59 = vld [vmem:[#allocation4_spill] sm:$0xff] }
 0x330   :  { %v4564_v1 = vadd.f32 %v4472_v43, %v4304_v63  ;;  %v4568_v35 = vadd.f32 %v4472_v43, %v5028_v12  ;;  %v4572_v31 = vadd.f32 %v4472_v43, %v5029_v59  ;;  %v4576_v49 = vadd.f32 %v4472_v43, %v5031_v33 }
 0x331   :  { %5026 = vst [vmem:[#allocation16_spill] sm:$0xff] %v4556_v9  ;;  %5027 = vst [vmem:[#allocation17_spill] sm:$0xff] %v4560_v24  ;;  %v5033_v9 = vld [vmem:[#allocation3_spill] sm:$0xff]  ;;  %v5034_v24 = vld [vmem:[#allocation5_spill] sm:$0xff]  ;;  %v4588_v12 = vadd.f32 %v4472_v43, %v4328_v0  ;;  %v4592_v59 = vadd.f32 %v4472_v43, %v4332_v39  ;;  %v4612_v39 = vadd.f32 %v4472_v43, %v4352_v36 }
 0x332   :  { %5030 = vst [vmem:[#allocation18_spill] sm:$0xff] %v4572_v31  ;;  %5032 = vst [vmem:[#allocation19_spill] sm:$0xff] %v4576_v49  ;;  %v4580_v17 = vadd.f32 %v4472_v43, %v5033_v9  ;;  %v4584_v63 = vadd.f32 %v4472_v43, %v5034_v24  ;;  %v5036_v31 = vld [vmem:[#allocation8_spill] sm:$0xff]  ;;  %v5037_v49 = vld [vmem:[#allocation10_spill] sm:$0xff]  ;;  %v4604_v24 = vadd.f32 %v4472_v43, %v4344_v55 }
 0x333   :  { %v4596_v33 = vadd.f32 %v4472_v43, %v5036_v31  ;;  %v4600_v9 = vadd.f32 %v4472_v43, %v5037_v49  ;;  %v4616_v31 = vadd.f32 %v4472_v43, %v4356_v27  ;;  %v4620_v49 = vadd.f32 %v4472_v43, %v4360_v40 }
 0x334   :  { %5035 = vst [vmem:[#allocation20_spill] sm:$0xff] %v4584_v63  ;;  %v5038_v63 = vld [vmem:[#allocation7_spill] sm:$0xff]  ;;  %v4624_v55 = vadd.f32 %v4472_v43, %v4364_v46  ;;  %v4632_v36 = vadd.f32 %v4472_v43, %v4372_v29  ;;  %v4636_v27 = vadd.f32 %v4472_v43, %v4376_v25  ;;  %v4640_v40 = vadd.f32 %v4472_v43, %v4380_v53 }
 0x335   :  { %v4608_v0 = vadd.f32 %v4472_v43, %v5038_v63  ;;  %v4628_v63 = vadd.f32 %v4472_v43, %v4368_v41  ;;  %v4644_v46 = vadd.f32 %v4472_v43, %v4384_v58  ;;  %v4648_v41 = vadd.f32 %v4472_v43, %v4388_v37 }
 0x336   :  { %v4652_v29 = vadd.f32 %v4472_v43, %v4392_v34  ;;  %v4656_v25 = vadd.f32 %v4472_v43, %v4396_v61  ;;  %v4660_v53 = vadd.f32 %v4472_v43, %v4400_v5  ;;  %v4664_v58 = vadd.f32 %v4472_v43, %v4404_v8 }
 0x337   :  { %v4668_v37 = vadd.f32 %v4472_v43, %v4408_v38  ;;  %v4672_v34 = vadd.f32 %v4472_v43, %v4412_v15  ;;  %v4676_v61 = vadd.f32 %v4472_v43, %v4416_v2  ;;  %v4680_v5 = vadd.f32 %v4472_v43, %v4420_v47 }
 0x338   :  { %v4684_v8 = vadd.f32 %v4472_v43, %v4424_v14  ;;  %v4688_v38 = vadd.f32 %v4472_v43, %v4428_v50  ;;  %v4692_v15 = vadd.f32 %v4472_v43, %v4432_v32  ;;  %v4696_v2 = vadd.f32 %v4472_v43, %v4436_v13  ;;  %v5048_v44 = vld [vmem:[#allocation17_spill] sm:$0xff] }
 0x339   :  { %v4700_v47 = vadd.f32 %v4472_v43, %v4440_v21  ;;  %v4704_v14 = vadd.f32 %v4472_v43, %v4444_v10  ;;  %v4712_v32 = vadd.f32 %v4472_v43, %v4452_v23  ;;  %v4716_v13 = vadd.f32 %v4472_v43, %v4456_v26  ;;  %v5049_v7 = vld [vmem:[#allocation18_spill] sm:$0xff]  ;;  %v5050_v30 = vld [vmem:[#allocation19_spill] sm:$0xff] }
 0x33a   :  { %5039 = vst [vmem:[#allocation21_spill] sm:$0xff] %v4684_v8  ;;  %v5040_v8 = vld [vmem:[#allocation9_spill] sm:$0xff]  ;;  %v4720_v21 = vadd.f32 %v4472_v43, %v4460_v4  ;;  %v4724_v10 = vadd.f32 %v4472_v43, %v4464_v28  ;;  %v4732_v23 = vadd.f32 %v4472_v43, %v4476_v18  ;;  %v4736_v26 = vadd.f32 %v4472_v43, %v4480_v19 }
 0x33b   :  { %v4708_v50 = vadd.f32 %v4472_v43, %v5040_v8  ;;  %v4728_v8 = vadd.f32 %v4472_v43, %v4468_v51  ;;  %v4740_v4 = vadd.f32 %v4472_v43, %v4484_v60  ;;  %v4744_v28 = vadd.f32 %v4472_v43, %v4488_v11  ;;  %v5051_v20 = vld [vmem:[#allocation20_spill] sm:$0xff] }
 0x33c   :  { %5041 = vst [vmem:[#allocation22_spill] sm:$0xff] %v4724_v10  ;;  %5043 = vst [vmem:[#allocation24_spill] sm:$0xff] %v4732_v23  ;;  %v1963_v19 = vmax.f32 %v4512_v56, 0.0  ;;  %v1965_v60 = vmax.f32 %v4520_v57, 0.0  ;;  %v1967_v43 = vmax.f32 %v4528_v16, 0.0  ;;  %v1968_v11 = vmax.f32 %v4532_v3, 0.0 }
 0x33d   :  { %5042 = vst [vmem:[#allocation23_spill] sm:$0xff] %v4728_v8  ;;  %5044 = vst [vmem:[#allocation25_spill] sm:$0xff] %v4736_v26  ;;  %v1964_v26 = vmax.f32 %v4516_v62, 0.0  ;;  %v1969_v51 = vmax.f32 %v4536_v22, 0.0  ;;  %v1970_v8 = vmax.f32 %v4540_v45, 0.0  ;;  %v1971_v18 = vmax.f32 %v4544_v52, 0.0 }
 0x33e   :  { %5045 = vst [vmem:[#allocation26_spill] sm:$0xff] %v4740_v4  ;;  %5046 = vst [vmem:[#allocation27_spill] sm:$0xff] %v4744_v28  ;;  %v1966_v4 = vmax.f32 %v4524_v54, 0.0  ;;  %v1972_v23 = vmax.f32 %v4548_v42, 0.0  ;;  %v1973_v56 = vmax.f32 %v4552_v48, 0.0  ;;  %v5047_v10 = vld [vmem:[#allocation16_spill] sm:$0xff] }
 0x33f   :  { %v1974_v62 = vmax.f32 %v5047_v10, 0.0  ;;  %v1975_v57 = vmax.f32 %v5048_v44, 0.0  ;;  %v1976_v54 = vmax.f32 %v4564_v1, 0.0  ;;  %v1977_v16 = vmax.f32 %v4568_v35, 0.0 }
 0x340   :  { %v1978_v3 = vmax.f32 %v5049_v7, 0.0  ;;  %v1979_v22 = vmax.f32 %v5050_v30, 0.0  ;;  %v1980_v45 = vmax.f32 %v4580_v17, 0.0  ;;  %v1981_v52 = vmax.f32 %v5051_v20, 0.0 }
 0x341   :  { %v1982_v42 = vmax.f32 %v4588_v12, 0.0  ;;  %v1983_v48 = vmax.f32 %v4592_v59, 0.0  ;;  %v1984_v10 = vmax.f32 %v4596_v33, 0.0  ;;  %v1985_v44 = vmax.f32 %v4600_v9, 0.0  ;;  %v5052_v6 = vld [vmem:[#allocation21_spill] sm:$0xff] }
 0x342   :  { %v1986_v1 = vmax.f32 %v4604_v24, 0.0  ;;  %v1987_v35 = vmax.f32 %v4608_v0, 0.0  ;;  %v1988_v7 = vmax.f32 %v4612_v39, 0.0  ;;  %v1989_v30 = vmax.f32 %v4616_v31, 0.0 }
 0x343   :  { %v1990_v17 = vmax.f32 %v4620_v49, 0.0  ;;  %v1991_v20 = vmax.f32 %v4624_v55, 0.0  ;;  %v1992_v12 = vmax.f32 %v4628_v63, 0.0  ;;  %v1993_v59 = vmax.f32 %v4632_v36, 0.0  ;;  %v5053_v28 = vld [vmem:[#allocation22_spill] sm:$0xff] }
 0x344   :  { %v1994_v33 = vmax.f32 %v4636_v27, 0.0  ;;  %v1995_v9 = vmax.f32 %v4640_v40, 0.0  ;;  %v1996_v24 = vmax.f32 %v4644_v46, 0.0  ;;  %v1997_v0 = vmax.f32 %v4648_v41, 0.0 }
 0x345   :  { %v1998_v39 = vmax.f32 %v4652_v29, 0.0  ;;  %v1999_v31 = vmax.f32 %v4656_v25, 0.0  ;;  %v2000_v49 = vmax.f32 %v4660_v53, 0.0  ;;  %v2001_v55 = vmax.f32 %v4664_v58, 0.0 }
 0x346   :  { %v2002_v63 = vmax.f32 %v4668_v37, 0.0  ;;  %v2003_v36 = vmax.f32 %v4672_v34, 0.0  ;;  %v2004_v27 = vmax.f32 %v4676_v61, 0.0  ;;  %v2005_v40 = vmax.f32 %v4680_v5, 0.0 }
 0x347   :  { %v2006_v46 = vmax.f32 %v5052_v6, 0.0  ;;  %v2007_v41 = vmax.f32 %v4688_v38, 0.0  ;;  %v2008_v29 = vmax.f32 %v4692_v15, 0.0  ;;  %v2009_v25 = vmax.f32 %v4696_v2, 0.0  ;;  %v5054_v38 = vld [vmem:[#allocation23_spill] sm:$0xff]  ;;  %v5055_v2 = vld [vmem:[#allocation24_spill] sm:$0xff] }
 0x348   :  { %v2010_v53 = vmax.f32 %v4700_v47, 0.0  ;;  %v2011_v58 = vmax.f32 %v4704_v14, 0.0  ;;  %v2012_v37 = vmax.f32 %v4708_v50, 0.0  ;;  %v2013_v34 = vmax.f32 %v4712_v32, 0.0  ;;  %v5056_v14 = vld [vmem:[#allocation25_spill] sm:$0xff]  ;;  %v5057_v32 = vld [vmem:[#allocation26_spill] sm:$0xff] }
 0x349   :  { %v2014_v61 = vmax.f32 %v4716_v13, 0.0  ;;  %v2015_v5 = vmax.f32 %v4720_v21, 0.0  ;;  %v2016_v6 = vmax.f32 %v5053_v28, 0.0  ;;  %v2017_v15 = vmax.f32 %v5054_v38, 0.0  ;;  %v5058_v21 = vld [vmem:[#allocation27_spill] sm:$0xff]  ;;  %v5059_v38 = vld [vmem:[#allocation12_spill] sm:$0xff] }
 0x34a   :  { %v2018_v47 = vmax.f32 %v5055_v2, 0.0  ;;  %v2019_v50 = vmax.f32 %v5056_v14, 0.0  ;;  %v2020_v13 = vmax.f32 %v5057_v32, 0.0  ;;  %v2021_v28 = vmax.f32 %v5058_v21, 0.0  ;;  %v5061_v14 = vld [vmem:[#allocation14_spill] sm:$0xff] }
 0x34b   :  { %v5060_v2 = vmax.f32 %v5059_v38, 0.0  ;;  %v5062_v32 = vmax.f32 %v5061_v14, 0.0  ;;  %v5063_v38 = vld [vmem:[#allocation11_spill] sm:$0xff] }
 0x34c   :  { %v5064_v14 = vmax.f32 %v5063_v38, 0.0 }
 0x34d   :  { %v2623_v21 = vpack.c.bf16 %v5062_v32, %v5060_v2  ;;  %v5065_v2 = vld [vmem:[#allocation13_spill] sm:$0xff] }
 0x34e   :  { %v5066_v32 = vmax.f32 %v5065_v2, 0.0  ;;  %v5067_v2 = vld [vmem:[#allocation15_spill] sm:$0xff] }
 0x34f   :  { %2624 = vst [vmem:[%s4921_s5] sm:$0xff] %v2623_v21  }
 0x350   :  { %v2628_v38 = vpack.c.bf16 %v5066_v32, %v5064_v14  ;;  %v5068_v14 = vmax.f32 %v5067_v2, 0.0  ;;  %v2638_v2 = vpack.c.bf16 %v1965_v60, %v1964_v26  ;;  %v2653_v26 = vpack.c.bf16 %v1971_v18, %v1970_v8 }
 0x351   :  { %v2658_v60 = vpack.c.bf16 %v1973_v56, %v1972_v23  ;;  %v2673_v8 = vpack.c.bf16 %v1979_v22, %v1978_v3  ;;  %v2678_v23 = vpack.c.bf16 %v1981_v52, %v1980_v45  ;;  %v2683_v18 = vpack.c.bf16 %v1983_v48, %v1982_v42 }
 0x352   :  { %v2633_v32 = vpack.c.bf16 %v1963_v19, %v5068_v14  ;;  %v2643_v14 = vpack.c.bf16 %v1967_v43, %v1966_v4  ;;  %v2648_v19 = vpack.c.bf16 %v1969_v51, %v1968_v11  ;;  %2780 = vst [vmem:[%s4921_s5 + $0x8] sm:$0xff] %v2628_v38   ;;  %2782 = vst [vmem:[%s4921_s5 + $0x18] sm:$0xff] %v2638_v2  }
 0x353   :  { %v2663_v4 = vpack.c.bf16 %v1975_v57, %v1974_v62  ;;  %v2668_v51 = vpack.c.bf16 %v1977_v16, %v1976_v54  ;;  %2785 = vst [vmem:[%s4921_s5 + $0x30] sm:$0xff] %v2653_v26   ;;  %2786 = vst [vmem:[%s4921_s5 + $0x38] sm:$0xff] %v2658_v60   ;;  %v2688_v43 = vpack.c.bf16 %v1985_v44, %v1984_v10 }
 0x354   :  { %2781 = vst [vmem:[%s4921_s5 + $0x10] sm:$0xff] %v2633_v32   ;;  %2783 = vst [vmem:[%s4921_s5 + $0x20] sm:$0xff] %v2643_v14   ;;  %v2693_v11 = vpack.c.bf16 %v1987_v35, %v1986_v1  ;;  %v2698_v56 = vpack.c.bf16 %v1989_v30, %v1988_v7  ;;  %v2703_v62 = vpack.c.bf16 %v1991_v20, %v1990_v17 }
 0x355   :  { %2784 = vst [vmem:[%s4921_s5 + $0x28] sm:$0xff] %v2648_v19   ;;  %2787 = vst [vmem:[%s4921_s5 + $0x40] sm:$0xff] %v2663_v4   ;;  %v2708_v57 = vpack.c.bf16 %v1993_v59, %v1992_v12  ;;  %v2713_v54 = vpack.c.bf16 %v1995_v9, %v1994_v33  ;;  %v2718_v16 = vpack.c.bf16 %v1997_v0, %v1996_v24 }
 0x356   :  { %2788 = vst [vmem:[%s4921_s5 + $0x48] sm:$0xff] %v2668_v51   ;;  %2789 = vst [vmem:[%s4921_s5 + $0x50] sm:$0xff] %v2673_v8   ;;  %v2723_v3 = vpack.c.bf16 %v1999_v31, %v1998_v39  ;;  %v2728_v22 = vpack.c.bf16 %v2001_v55, %v2000_v49  ;;  %v2733_v45 = vpack.c.bf16 %v2003_v36, %v2002_v63 }
 0x357   :  { %2790 = vst [vmem:[%s4921_s5 + $0x58] sm:$0xff] %v2678_v23   ;;  %2791 = vst [vmem:[%s4921_s5 + $0x60] sm:$0xff] %v2683_v18   ;;  %v2738_v52 = vpack.c.bf16 %v2005_v40, %v2004_v27  ;;  %v2743_v42 = vpack.c.bf16 %v2007_v41, %v2006_v46  ;;  %v2748_v48 = vpack.c.bf16 %v2009_v25, %v2008_v29 }
 0x358   :  { %2792 = vst [vmem:[%s4921_s5 + $0x68] sm:$0xff] %v2688_v43   ;;  %2793 = vst [vmem:[%s4921_s5 + $0x70] sm:$0xff] %v2693_v11   ;;  %v2753_v10 = vpack.c.bf16 %v2011_v58, %v2010_v53  ;;  %v2758_v44 = vpack.c.bf16 %v2013_v34, %v2012_v37  ;;  %v2763_v1 = vpack.c.bf16 %v2015_v5, %v2014_v61 }
 0x359   :  { %2794 = vst [vmem:[%s4921_s5 + $0x78] sm:$0xff] %v2698_v56   ;;  %2795 = vst [vmem:[%s4921_s5 + $0x80] sm:$0xff] %v2703_v62   ;;  %v2768_v35 = vpack.c.bf16 %v2017_v15, %v2016_v6  ;;  %v2773_v7 = vpack.c.bf16 %v2019_v50, %v2018_v47  ;;  %v2778_v30 = vpack.c.bf16 %v2021_v28, %v2020_v13 }
 0x35a   :  { %2796 = vst [vmem:[%s4921_s5 + $0x88] sm:$0xff] %v2708_v57   ;;  %2797 = vst [vmem:[%s4921_s5 + $0x90] sm:$0xff] %v2713_v54  }
 0x35b   :  { %2798 = vst [vmem:[%s4921_s5 + $0x98] sm:$0xff] %v2718_v16   ;;  %2799 = vst [vmem:[%s4921_s5 + $0xa0] sm:$0xff] %v2723_v3  }
 0x35c   :  { %2800 = vst [vmem:[%s4921_s5 + $0xa8] sm:$0xff] %v2728_v22   ;;  %2801 = vst [vmem:[%s4921_s5 + $0xb0] sm:$0xff] %v2733_v45  }
 0x35d   :  { %2802 = vst [vmem:[%s4921_s5 + $0xb8] sm:$0xff] %v2738_v52   ;;  %2803 = vst [vmem:[%s4921_s5 + $0xc0] sm:$0xff] %v2743_v42  }
 0x35e   :  { %2804 = vst [vmem:[%s4921_s5 + $0xc8] sm:$0xff] %v2748_v48   ;;  %2805 = vst [vmem:[%s4921_s5 + $0xd0] sm:$0xff] %v2753_v10  }
 0x35f   :  { %2806 = vst [vmem:[%s4921_s5 + $0xd8] sm:$0xff] %v2758_v44   ;;  %2807 = vst [vmem:[%s4921_s5 + $0xe0] sm:$0xff] %v2763_v1  }
 0x360   :  { %2808 = vst [vmem:[%s4921_s5 + $0xe8] sm:$0xff] %v2768_v35   ;;  %2809 = vst [vmem:[%s4921_s5 + $0xf0] sm:$0xff] %v2773_v7  }
 0x361   :  { %2810 = vst [vmem:[%s4921_s5 + $0xf8] sm:$0xff] %v2778_v30  }

// kernel: generator_forward.9
= control target key start
LH: loop header
LB: loop body
LE: loop exit
PB: predicated region body
PF: predicated region fallthrough
CT: control target
= control target key end

     0   :  { %s1587_s12 = smov 0   ;;  %s1871_s0 = inlined_call_operand.vmem [shape: bf16[2048,144], index: 0, kind: input, shape index: {}]   ;;  %s1872_s1 = inlined_call_operand.vmem [shape: bf16[144,128], index: 1, kind: input, shape index: {}]   ;;  %s1873_s2 = inlined_call_operand.vmem [shape: f32[1,128], index: 2, kind: input, shape index: {}]   ;;  %s1874_s3 = inlined_call_operand.vmem [shape: f32[2048,128], index: 3, kind: output, shape index: {}]  }
   0x1 LB: > { %s1179_s13 = sadd.s32 4294967295, %s1564_s12   ;;  %p1183_p0 = scmp.ge.s32.totalorder %s1564_s12, 1  ;;  %s1564_s12 = sphi %s1587_s12, %s13_s12  }
   0x2   : > { %p139_p1 = scmp.lt.s32.totalorder %s1564_s12, 5 }
   0x4   : > { %p140_p2 = pnand %p1183_p0, %p139_p1 }
   0x5   : > { %v1325_v0 = vld [vmem:[%s1872_s1] sm:$0xff] (!%p140_p2)   ;;  %v1566_v1 = vmov (!%p140_p2), 0   ;;  %s1184_s16 = sshll.u32 (!%p140_p2), %s1179_s13, 6  ;;  %v1326_v2 = vld [vmem:[%s1872_s1 + $0x8] sm:$0xff] (!%p140_p2)   ;;  %v1327_v3 = vld [vmem:[%s1872_s1 + $0x10] sm:$0xff] (!%p140_p2)   ;;  %vm609_vm0 = vcmask (!%p140_p2), 130048  }
   0x6   : > { %143 = sbr.rel (%p140_p2) target bundleno = 391 (0x187), region = 32  ;;  %706 = vmatprep.subr.bf16.mxu0 (!%p140_p2), %v1566_v1  ;;  %1298 = vmatprep.subr.bf16.mxu1 (!%p140_p2), %v1566_v1  ;;  %p165_p3 = scmp.lt.s32.totalorder (!%p140_p2), %s1184_s16, 255  ;;  %v1328_v4 = vld [vmem:[%s1872_s1 + $0x18] sm:$0xff] (!%p140_p2)   ;;  %v1329_v7 = vld [vmem:[%s1872_s1 + $0x20] sm:$0xff] (!%p140_p2)   ;;  %v1330_v8 = vld [vmem:[%s1872_s1 + $0x28] sm:$0xff] (!%p140_p2)  }
   0x7   : > { %707 = vmatpush1.bf16.msra.mxu0 (!%p140_p2), %v1325_v0  ;;  %1307 = vmatpush1.bf16.msra.mxu1 (!%p140_p2), %v1325_v0  ;;  %v1331_v9 = vld [vmem:[%s1872_s1 + $0x30] sm:$0xff] (!%p140_p2)   ;;  %v1332_v10 = vld [vmem:[%s1872_s1 + $0x38] sm:$0xff] (!%p140_p2)   ;;  %v1333_v11 = vld [vmem:[%s1872_s1 + $0x40] sm:$0xff] (!%p140_p2)  }
   0x8   : > { %708 = vmatprep.subr.bf16.mxu0 (!%p140_p2), %v1566_v1  ;;  %1299 = vmatprep.subr.bf16.mxu1 (!%p140_p2), %v1566_v1 }
   0xb   : > { %709 = vmatpush1.bf16.msra.mxu0 (!%p140_p2), %v1326_v2  ;;  %1308 = vmatpush1.bf16.msra.mxu1 (!%p140_p2), %v1326_v2 }
   0xc   : > { %710 = vmatprep.subr.bf16.mxu0 (!%p140_p2), %v1566_v1  ;;  %1300 = vmatprep.subr.bf16.mxu1 (!%p140_p2), %v1566_v1 }
   0xd   : > { %s1876_s16 = smov (!%p165_p3, %s1184_s16), 255 }
   0xe   : > { %s1297_s21 = sshll.u32 %s1876_s16, 3 }
   0xf   : > { %s1612_s24 = scalar_lea.vmem %s1871_s0, %s1297_s21  ;;  %711 = vmatpush1.bf16.msra.mxu0 %v1327_v3  ;;  %1309 = vmatpush1.bf16.msra.mxu1 %v1327_v3  ;;  %s1744_s15 = scalar_lea.vmem %s1874_s3, %s1297_s21 }
  0x10   : > { %v1336_v5 = vld [vmem:[%s1612_s24 + $0x4] ss:$8 sps:$4 sm:$0xff]   ;;  %712 = vmatprep.subr.bf16.mxu0 %v1566_v1  ;;  %1301 = vmatprep.subr.bf16.mxu1 %v1566_v1  ;;  %v1334_v12 = vld [vmem:[%s1612_s24] ss:$8 sps:$4 sm:$0xff]   ;;  %v1340_v14 = vld [vmem:[%s1612_s24 + $0x14] ss:$8 sps:$4 sm:$0xff]  }
  0x11   : > { %v1339_v6 = vld [vmem:[%s1612_s24 + $0x104] ss:$8 sps:$4 sm:$0xff]   ;;  %1263 = vmatprep.mubr.msk.bf16.mxu0 %vm609_vm0, %v1336_v5  ;;  %v1337_v13 = vld [vmem:[%s1612_s24 + $0x100] ss:$8 sps:$4 sm:$0xff]   ;;  %v1342_v15 = vld [vmem:[%s1612_s24 + $0x114] ss:$8 sps:$4 sm:$0xff]  }
  0x12   : > { %1279 = vmatprep.mubr.msk.bf16.mxu1 %vm609_vm0, %v1339_v6  ;;  %v1344_v16 = vld [vmem:[%s1612_s24 + $0x10] ss:$8 sps:$4 sm:$0xff]   ;;  %v1346_v18 = vld [vmem:[%s1612_s24 + $0x24] ss:$8 sps:$4 sm:$0xff]   ;;  %v1350_v20 = vld [vmem:[%s1612_s24 + $0x20] ss:$8 sps:$4 sm:$0xff]  }
  0x13   : > { %713 = vmatpush1.bf16.msra.mxu0 %v1328_v4  ;;  %1310 = vmatpush1.bf16.msra.mxu1 %v1328_v4  ;;  %v1345_v17 = vld [vmem:[%s1612_s24 + $0x110] ss:$8 sps:$4 sm:$0xff]   ;;  %v1348_v19 = vld [vmem:[%s1612_s24 + $0x124] ss:$8 sps:$4 sm:$0xff]   ;;  %v1351_v21 = vld [vmem:[%s1612_s24 + $0x120] ss:$8 sps:$4 sm:$0xff]  }
  0x14   : > { %714 = vmatprep.subr.bf16.mxu0 %v1566_v1  ;;  %1302 = vmatprep.subr.bf16.mxu1 %v1566_v1  ;;  %v1352_v22 = vld [vmem:[%s1612_s24 + $0x34] ss:$8 sps:$4 sm:$0xff]   ;;  %v1356_v24 = vld [vmem:[%s1612_s24 + $0x30] ss:$8 sps:$4 sm:$0xff]   ;;  %v1358_v26 = vld [vmem:[%s1612_s24 + $0x44] ss:$8 sps:$4 sm:$0xff]  }
  0x15   : > { %v1354_v23 = vld [vmem:[%s1612_s24 + $0x134] ss:$8 sps:$4 sm:$0xff]   ;;  %v1357_v25 = vld [vmem:[%s1612_s24 + $0x130] ss:$8 sps:$4 sm:$0xff]   ;;  %v1360_v27 = vld [vmem:[%s1612_s24 + $0x144] ss:$8 sps:$4 sm:$0xff]  }
  0x16   : > { %v1362_v28 = vld [vmem:[%s1612_s24 + $0x40] ss:$8 sps:$4 sm:$0xff]   ;;  %v1364_v30 = vld [vmem:[%s1612_s24 + $0x54] ss:$8 sps:$4 sm:$0xff]   ;;  %v1368_v32 = vld [vmem:[%s1612_s24 + $0x50] ss:$8 sps:$4 sm:$0xff]  }
  0x17   : > { %715 = vmatpush1.bf16.msra.mxu0 %v1329_v7  ;;  %1311 = vmatpush1.bf16.msra.mxu1 %v1329_v7  ;;  %v1363_v29 = vld [vmem:[%s1612_s24 + $0x140] ss:$8 sps:$4 sm:$0xff]   ;;  %v1366_v31 = vld [vmem:[%s1612_s24 + $0x154] ss:$8 sps:$4 sm:$0xff]   ;;  %v1369_v33 = vld [vmem:[%s1612_s24 + $0x150] ss:$8 sps:$4 sm:$0xff]  }
  0x18   : > { %716 = vmatprep.subr.bf16.mxu0 %v1566_v1  ;;  %1303 = vmatprep.subr.bf16.mxu1 %v1566_v1  ;;  %v1370_v34 = vld [vmem:[%s1612_s24 + $0x64] ss:$8 sps:$4 sm:$0xff]   ;;  %v1374_v36 = vld [vmem:[%s1612_s24 + $0x60] ss:$8 sps:$4 sm:$0xff]   ;;  %v1376_v38 = vld [vmem:[%s1612_s24 + $0x74] ss:$8 sps:$4 sm:$0xff]  }
  0x19   : > { %v1372_v35 = vld [vmem:[%s1612_s24 + $0x164] ss:$8 sps:$4 sm:$0xff]   ;;  %v1375_v37 = vld [vmem:[%s1612_s24 + $0x160] ss:$8 sps:$4 sm:$0xff]   ;;  %v1378_v39 = vld [vmem:[%s1612_s24 + $0x174] ss:$8 sps:$4 sm:$0xff]  }
  0x1a   : > { %v1380_v40 = vld [vmem:[%s1612_s24 + $0x70] ss:$8 sps:$4 sm:$0xff]   ;;  %v1382_v42 = vld [vmem:[%s1612_s24 + $0x84] ss:$8 sps:$4 sm:$0xff]   ;;  %v1386_v44 = vld [vmem:[%s1612_s24 + $0x80] ss:$8 sps:$4 sm:$0xff]  }
  0x1b   : > { %717 = vmatpush1.bf16.msra.mxu0 %v1330_v8  ;;  %1312 = vmatpush1.bf16.msra.mxu1 %v1330_v8  ;;  %v1381_v41 = vld [vmem:[%s1612_s24 + $0x170] ss:$8 sps:$4 sm:$0xff]   ;;  %v1384_v43 = vld [vmem:[%s1612_s24 + $0x184] ss:$8 sps:$4 sm:$0xff]   ;;  %v1387_v45 = vld [vmem:[%s1612_s24 + $0x180] ss:$8 sps:$4 sm:$0xff]  }
  0x1c   : > { %718 = vmatprep.subr.bf16.mxu0 %v1566_v1  ;;  %1304 = vmatprep.subr.bf16.mxu1 %v1566_v1  ;;  %v1388_v46 = vld [vmem:[%s1612_s24 + $0x94] ss:$8 sps:$4 sm:$0xff]   ;;  %v1392_v48 = vld [vmem:[%s1612_s24 + $0x90] ss:$8 sps:$4 sm:$0xff]   ;;  %v1394_v50 = vld [vmem:[%s1612_s24 + $0xa4] ss:$8 sps:$4 sm:$0xff]  }
  0x1d   : > { %v1390_v47 = vld [vmem:[%s1612_s24 + $0x194] ss:$8 sps:$4 sm:$0xff]   ;;  %v1393_v49 = vld [vmem:[%s1612_s24 + $0x190] ss:$8 sps:$4 sm:$0xff]   ;;  %v1396_v51 = vld [vmem:[%s1612_s24 + $0x1a4] ss:$8 sps:$4 sm:$0xff]  }
  0x1e   : > { %v1398_v52 = vld [vmem:[%s1612_s24 + $0xa0] ss:$8 sps:$4 sm:$0xff]   ;;  %v1400_v54 = vld [vmem:[%s1612_s24 + $0xb4] ss:$8 sps:$4 sm:$0xff]   ;;  %v1404_v56 = vld [vmem:[%s1612_s24 + $0xb0] ss:$8 sps:$4 sm:$0xff]  }
  0x1f   : > { %719 = vmatpush1.bf16.msra.mxu0 %v1331_v9  ;;  %1313 = vmatpush1.bf16.msra.mxu1 %v1331_v9  ;;  %v1399_v53 = vld [vmem:[%s1612_s24 + $0x1a0] ss:$8 sps:$4 sm:$0xff]   ;;  %v1402_v55 = vld [vmem:[%s1612_s24 + $0x1b4] ss:$8 sps:$4 sm:$0xff]   ;;  %v1405_v57 = vld [vmem:[%s1612_s24 + $0x1b0] ss:$8 sps:$4 sm:$0xff]  }
  0x20   : > { %720 = vmatprep.subr.bf16.mxu0 %v1566_v1  ;;  %1305 = vmatprep.subr.bf16.mxu1 %v1566_v1  ;;  %v1406_v58 = vld [vmem:[%s1612_s24 + $0xc4] ss:$8 sps:$4 sm:$0xff]   ;;  %v1410_v60 = vld [vmem:[%s1612_s24 + $0xc0] ss:$8 sps:$4 sm:$0xff]   ;;  %v1412_v62 = vld [vmem:[%s1612_s24 + $0xd4] ss:$8 sps:$4 sm:$0xff]  }
  0x21   : > { %v1408_v59 = vld [vmem:[%s1612_s24 + $0x1c4] ss:$8 sps:$4 sm:$0xff]   ;;  %v1411_v61 = vld [vmem:[%s1612_s24 + $0x1c0] ss:$8 sps:$4 sm:$0xff]   ;;  %v1414_v63 = vld [vmem:[%s1612_s24 + $0x1d4] ss:$8 sps:$4 sm:$0xff]  }
  0x22   : > { %v1416_v0 = vld [vmem:[%s1612_s24 + $0xd0] ss:$8 sps:$4 sm:$0xff]   ;;  %v1418_v2 = vld [vmem:[%s1612_s24 + $0xe4] ss:$8 sps:$4 sm:$0xff]   ;;  %v1422_v4 = vld [vmem:[%s1612_s24 + $0xe0] ss:$8 sps:$4 sm:$0xff]  }
  0x23   : > { %721 = vmatpush1.bf16.msra.mxu0 %v1332_v10  ;;  %1314 = vmatpush1.bf16.msra.mxu1 %v1332_v10  ;;  %v1420_v3 = vld [vmem:[%s1612_s24 + $0x1e4] ss:$8 sps:$4 sm:$0xff]   ;;  %v1423_v5 = vld [vmem:[%s1612_s24 + $0x1e0] ss:$8 sps:$4 sm:$0xff]   ;;  %v1424_v6 = vld [vmem:[%s1612_s24 + $0xf4] ss:$8 sps:$4 sm:$0xff]  }
  0x24   : > { %722 = vmatprep.subr.bf16.mxu0 %v1566_v1  ;;  %1306 = vmatprep.subr.bf16.mxu1 %v1566_v1  ;;  %v1417_v1 = vld [vmem:[%s1612_s24 + $0x1d0] ss:$8 sps:$4 sm:$0xff]   ;;  %v1426_v7 = vld [vmem:[%s1612_s24 + $0x1f4] ss:$8 sps:$4 sm:$0xff]   ;;  %v1731_v10 = vld [vmem:[%s1873_s2] ss:$0 sm:$0xff] }
  0x25   : > { %v1428_v8 = vld [vmem:[%s1612_s24 + $0xf0] ss:$8 sps:$4 sm:$0xff]  }
  0x26   : > { %v1429_v9 = vld [vmem:[%s1612_s24 + $0x1f0] ss:$8 sps:$4 sm:$0xff]  }
  0x27   : > { %723 = vmatpush1.bf16.msra.mxu0 %v1333_v11  ;;  %1315 = vmatpush1.bf16.msra.mxu1 %v1333_v11 }
  0x2a   : > { %739 = vmatmul.mubr.bf16.vlgmr.msra.gmra.mrb[0].mxu0 %v1334_v12  ;;  %867 = vmatmul.mubr.bf16.vlgmr.msra.gmra.mrb[0].mxu1 %v1337_v13 }
  0x2b   : > { %1264 = vmatprep.mubr.msk.bf16.mxu0 %vm609_vm0, %v1340_v14  ;;  %1280 = vmatprep.mubr.msk.bf16.mxu1 %vm609_vm0, %v1342_v15 }
  0x32   : > { %747 = vmatmul.mubr.bf16.gmra.mrb[4].mxu0 %v1344_v16  ;;  %875 = vmatmul.mubr.bf16.gmra.mrb[4].mxu1 %v1345_v17 }
  0x33   : > { %1265 = vmatprep.mubr.msk.bf16.mxu0 %vm609_vm0, %v1346_v18  ;;  %1281 = vmatprep.mubr.msk.bf16.mxu1 %vm609_vm0, %v1348_v19 }
  0x3a   : > { %755 = vmatmul.mubr.bf16.gmra.mrb[8].mxu0 %v1350_v20  ;;  %883 = vmatmul.mubr.bf16.gmra.mrb[8].mxu1 %v1351_v21 }
  0x3b   : > { %1266 = vmatprep.mubr.msk.bf16.mxu0 %vm609_vm0, %v1352_v22  ;;  %1282 = vmatprep.mubr.msk.bf16.mxu1 %vm609_vm0, %v1354_v23 }
  0x42   : > { %763 = vmatmul.mubr.bf16.gmra.mrb[12].mxu0 %v1356_v24  ;;  %891 = vmatmul.mubr.bf16.gmra.mrb[12].mxu1 %v1357_v25 }
  0x43   : > { %1267 = vmatprep.mubr.msk.bf16.mxu0 %vm609_vm0, %v1358_v26  ;;  %1283 = vmatprep.mubr.msk.bf16.mxu1 %vm609_vm0, %v1360_v27 }
  0x4a   : > { %771 = vmatmul.mubr.bf16.gmra.mrb[16].mxu0 %v1362_v28  ;;  %899 = vmatmul.mubr.bf16.gmra.mrb[16].mxu1 %v1363_v29 }
  0x4b   : > { %1268 = vmatprep.mubr.msk.bf16.mxu0 %vm609_vm0, %v1364_v30  ;;  %1284 = vmatprep.mubr.msk.bf16.mxu1 %vm609_vm0, %v1366_v31 }
  0x52   : > { %779 = vmatmul.mubr.bf16.gmra.mrb[20].mxu0 %v1368_v32  ;;  %907 = vmatmul.mubr.bf16.gmra.mrb[20].mxu1 %v1369_v33 }
  0x53   : > { %1269 = vmatprep.mubr.msk.bf16.mxu0 %vm609_vm0, %v1370_v34  ;;  %1285 = vmatprep.mubr.msk.bf16.mxu1 %vm609_vm0, %v1372_v35 }
  0x5a   : > { %787 = vmatmul.mubr.bf16.gmra.mrb[24].mxu0 %v1374_v36  ;;  %915 = vmatmul.mubr.bf16.gmra.mrb[24].mxu1 %v1375_v37 }
  0x5b   : > { %1270 = vmatprep.mubr.msk.bf16.mxu0 %vm609_vm0, %v1376_v38  ;;  %1286 = vmatprep.mubr.msk.bf16.mxu1 %vm609_vm0, %v1378_v39 }
  0x62   : > { %795 = vmatmul.mubr.bf16.gmra.mrb[28].mxu0 %v1380_v40  ;;  %923 = vmatmul.mubr.bf16.gmra.mrb[28].mxu1 %v1381_v41 }
  0x63   : > { %1271 = vmatprep.mubr.msk.bf16.mxu0 %vm609_vm0, %v1382_v42  ;;  %1287 = vmatprep.mubr.msk.bf16.mxu1 %vm609_vm0, %v1384_v43 }
  0x6a   : > { %803 = vmatmul.mubr.bf16.gmra.mrb[32].mxu0 %v1386_v44  ;;  %931 = vmatmul.mubr.bf16.gmra.mrb[32].mxu1 %v1387_v45 }
  0x6b   : > { %1272 = vmatprep.mubr.msk.bf16.mxu0 %vm609_vm0, %v1388_v46  ;;  %1288 = vmatprep.mubr.msk.bf16.mxu1 %vm609_vm0, %v1390_v47 }
  0x72   : > { %811 = vmatmul.mubr.bf16.gmra.mrb[36].mxu0 %v1392_v48  ;;  %939 = vmatmul.mubr.bf16.gmra.mrb[36].mxu1 %v1393_v49 }
  0x73   : > { %1273 = vmatprep.mubr.msk.bf16.mxu0 %vm609_vm0, %v1394_v50  ;;  %1289 = vmatprep.mubr.msk.bf16.mxu1 %vm609_vm0, %v1396_v51 }
  0x7a   : > { %819 = vmatmul.mubr.bf16.gmra.mrb[40].mxu0 %v1398_v52  ;;  %947 = vmatmul.mubr.bf16.gmra.mrb[40].mxu1 %v1399_v53 }
  0x7b   : > { %1274 = vmatprep.mubr.msk.bf16.mxu0 %vm609_vm0, %v1400_v54  ;;  %1290 = vmatprep.mubr.msk.bf16.mxu1 %vm609_vm0, %v1402_v55 }
  0x82   : > { %827 = vmatmul.mubr.bf16.gmra.mrb[44].mxu0 %v1404_v56  ;;  %955 = vmatmul.mubr.bf16.gmra.mrb[44].mxu1 %v1405_v57 }
  0x83   : > { %1275 = vmatprep.mubr.msk.bf16.mxu0 %vm609_vm0, %v1406_v58  ;;  %1291 = vmatprep.mubr.msk.bf16.mxu1 %vm609_vm0, %v1408_v59 }
  0x8a   : > { %835 = vmatmul.mubr.bf16.gmra.mrb[48].mxu0 %v1410_v60  ;;  %963 = vmatmul.mubr.bf16.gmra.mrb[48].mxu1 %v1411_v61 }
  0x8b   : > { %1276 = vmatprep.mubr.msk.bf16.mxu0 %vm609_vm0, %v1412_v62  ;;  %1292 = vmatprep.mubr.msk.bf16.mxu1 %vm609_vm0, %v1414_v63 }
  0x92   : > { %843 = vmatmul.mubr.bf16.gmra.mrb[52].mxu0 %v1416_v0  ;;  %971 = vmatmul.mubr.bf16.gmra.mrb[52].mxu1 %v1417_v1 }
  0x93   : > { %1277 = vmatprep.mubr.msk.bf16.mxu0 %vm609_vm0, %v1418_v2  ;;  %1293 = vmatprep.mubr.msk.bf16.mxu1 %vm609_vm0, %v1420_v3 }
  0x9a   : > { %851 = vmatmul.mubr.bf16.gmra.mrb[56].mxu0 %v1422_v4  ;;  %979 = vmatmul.mubr.bf16.gmra.mrb[56].mxu1 %v1423_v5 }
  0x9b   : > { %1278 = vmatprep.mubr.msk.bf16.mxu0 %vm609_vm0, %v1424_v6  ;;  %1294 = vmatprep.mubr.msk.bf16.mxu1 %vm609_vm0, %v1426_v7 }
  0xa2   : > { %859 = vmatmul.mubr.bf16.gmra.mrb[60].mxu0 %v1428_v8  ;;  %987 = vmatmul.mubr.bf16.gmra.mrb[60].mxu1 %v1429_v9 }
  0xfd   : > { %v740_v11 = vpop.f32.mrb[0].mxu0  ;;  %v868_v12 = vpop.f32.mrb[0].mxu1 }
  0xfe   : > { %v741_v13 = vadd.f32 %v1731_v10, %v740_v11  ;;  %v869_v14 = vadd.f32 %v1731_v10, %v868_v12  ;;  %v742_v15 = vpop.f32.mrb[1].mxu0  ;;  %v870_v16 = vpop.f32.mrb[1].mxu1 }
  0xff   : > { %v743_v17 = vpop.f32.mrb[2].mxu0  ;;  %v871_v18 = vpop.f32.mrb[2].mxu1 }
 0x100   : > { %1430 = vtanh.f32 %v741_v13  ;;  %v744_v19 = vadd.f32 %v1731_v10, %v743_v17  ;;  %v872_v20 = vadd.f32 %v1731_v10, %v871_v18  ;;  %v745_v21 = vpop.f32.mrb[3].mxu0  ;;  %v873_v22 = vpop.f32.mrb[3].mxu1 }
 0x101   : > { %1432 = vtanh.f32 %v869_v14 }
 0x102   : > { %1434 = vtanh.f32 %v744_v19 }
 0x103   : > { %1436 = vtanh.f32 %v872_v20 }
 0x105   : > { %v748_v23 = vpop.f32.mrb[4].mxu0  ;;  %v876_v24 = vpop.f32.mrb[4].mxu1 }
 0x106   : > { %v749_v25 = vadd.f32 %v1731_v10, %v748_v23  ;;  %v877_v26 = vadd.f32 %v1731_v10, %v876_v24  ;;  %v750_v27 = vpop.f32.mrb[5].mxu0  ;;  %v878_v28 = vpop.f32.mrb[5].mxu1 }
 0x107   : > { %v751_v29 = vpop.f32.mrb[6].mxu0  ;;  %v879_v30 = vpop.f32.mrb[6].mxu1 }
 0x108   : > { %1438 = vtanh.f32 %v749_v25  ;;  %v752_v31 = vadd.f32 %v1731_v10, %v751_v29  ;;  %v880_v32 = vadd.f32 %v1731_v10, %v879_v30  ;;  %v753_v33 = vpop.f32.mrb[7].mxu0  ;;  %v881_v34 = vpop.f32.mrb[7].mxu1 }
 0x109   : > { %1440 = vtanh.f32 %v877_v26 }
 0x10a   : > { %v1431_v35 = vpop.eup %1430  ;;  %1442 = vtanh.f32 %v752_v31 }
 0x10b   : > { %v1433_v36 = vpop.eup %1432  ;;  %1059 = vst [vmem:[%s1744_s15] sm:$0xff] %v1431_v35  ;;  %1444 = vtanh.f32 %v880_v32 }
 0x10c   : > { %v1435_v37 = vpop.eup %1434  ;;  %1091 = vst [vmem:[%s1744_s15 + $0x100] sm:$0xff] %v1433_v36 }
 0x10d   : > { %v1437_v38 = vpop.eup %1436  ;;  %1060 = vst [vmem:[%s1744_s15 + $0x8] sm:$0xff] %v1435_v37  ;;  %v756_v39 = vpop.f32.mrb[8].mxu0 }
 0x10e   : > { %v884_v40 = vpop.f32.mrb[8].mxu1  ;;  %1092 = vst [vmem:[%s1744_s15 + $0x108] sm:$0xff] %v1437_v38  ;;  %v757_v41 = vadd.f32 %v1731_v10, %v756_v39  ;;  %v758_v43 = vpop.f32.mrb[9].mxu0 }
 0x10f   : > { %v885_v42 = vadd.f32 %v1731_v10, %v884_v40  ;;  %v886_v44 = vpop.f32.mrb[9].mxu1  ;;  %v759_v45 = vpop.f32.mrb[10].mxu0 }
 0x110   : > { %v887_v46 = vpop.f32.mrb[10].mxu1  ;;  %1446 = vtanh.f32 %v757_v41  ;;  %v760_v47 = vadd.f32 %v1731_v10, %v759_v45  ;;  %v761_v49 = vpop.f32.mrb[11].mxu0 }
 0x111   : > { %v888_v48 = vadd.f32 %v1731_v10, %v887_v46  ;;  %v889_v50 = vpop.f32.mrb[11].mxu1  ;;  %1448 = vtanh.f32 %v885_v42 }
 0x112   : > { %v1439_v51 = vpop.eup %1438  ;;  %1450 = vtanh.f32 %v760_v47 }
 0x113   : > { %v1441_v52 = vpop.eup %1440  ;;  %1061 = vst [vmem:[%s1744_s15 + $0x10] sm:$0xff] %v1439_v51  ;;  %1452 = vtanh.f32 %v888_v48 }
 0x114   : > { %v1443_v53 = vpop.eup %1442  ;;  %1093 = vst [vmem:[%s1744_s15 + $0x110] sm:$0xff] %v1441_v52 }
 0x115   : > { %v1445_v54 = vpop.eup %1444  ;;  %1062 = vst [vmem:[%s1744_s15 + $0x18] sm:$0xff] %v1443_v53  ;;  %v764_v55 = vpop.f32.mrb[12].mxu0 }
 0x116   : > { %v892_v56 = vpop.f32.mrb[12].mxu1  ;;  %1094 = vst [vmem:[%s1744_s15 + $0x118] sm:$0xff] %v1445_v54  ;;  %v765_v57 = vadd.f32 %v1731_v10, %v764_v55  ;;  %v766_v59 = vpop.f32.mrb[13].mxu0 }
 0x117   : > { %v893_v58 = vadd.f32 %v1731_v10, %v892_v56  ;;  %v894_v60 = vpop.f32.mrb[13].mxu1  ;;  %v767_v61 = vpop.f32.mrb[14].mxu0 }
 0x118   : > { %v895_v62 = vpop.f32.mrb[14].mxu1  ;;  %1454 = vtanh.f32 %v765_v57  ;;  %v768_v63 = vadd.f32 %v1731_v10, %v767_v61  ;;  %v769_v1 = vpop.f32.mrb[15].mxu0 }
 0x119   : > { %v896_v0 = vadd.f32 %v1731_v10, %v895_v62  ;;  %v897_v2 = vpop.f32.mrb[15].mxu1  ;;  %1456 = vtanh.f32 %v893_v58 }
 0x11a   : > { %v1447_v3 = vpop.eup %1446  ;;  %1458 = vtanh.f32 %v768_v63 }
 0x11b   : > { %v1449_v4 = vpop.eup %1448  ;;  %1063 = vst [vmem:[%s1744_s15 + $0x20] sm:$0xff] %v1447_v3  ;;  %1460 = vtanh.f32 %v896_v0 }
 0x11c   : > { %v1451_v5 = vpop.eup %1450  ;;  %1095 = vst [vmem:[%s1744_s15 + $0x120] sm:$0xff] %v1449_v4 }
 0x11d   : > { %v1453_v6 = vpop.eup %1452  ;;  %1064 = vst [vmem:[%s1744_s15 + $0x28] sm:$0xff] %v1451_v5  ;;  %v772_v7 = vpop.f32.mrb[16].mxu0 }
 0x11e   : > { %v900_v8 = vpop.f32.mrb[16].mxu1  ;;  %1096 = vst [vmem:[%s1744_s15 + $0x128] sm:$0xff] %v1453_v6  ;;  %v773_v9 = vadd.f32 %v1731_v10, %v772_v7  ;;  %v774_v12 = vpop.f32.mrb[17].mxu0 }
 0x11f   : > { %v901_v11 = vadd.f32 %v1731_v10, %v900_v8  ;;  %v902_v13 = vpop.f32.mrb[17].mxu1  ;;  %v775_v14 = vpop.f32.mrb[18].mxu0 }
 0x120   : > { %v903_v15 = vpop.f32.mrb[18].mxu1  ;;  %1462 = vtanh.f32 %v773_v9  ;;  %v776_v16 = vadd.f32 %v1731_v10, %v775_v14  ;;  %v777_v18 = vpop.f32.mrb[19].mxu0 }
 0x121   : > { %v904_v17 = vadd.f32 %v1731_v10, %v903_v15  ;;  %v905_v19 = vpop.f32.mrb[19].mxu1  ;;  %1464 = vtanh.f32 %v901_v11 }
 0x122   : > { %v1455_v20 = vpop.eup %1454  ;;  %1466 = vtanh.f32 %v776_v16 }
 0x123   : > { %v1457_v21 = vpop.eup %1456  ;;  %1065 = vst [vmem:[%s1744_s15 + $0x30] sm:$0xff] %v1455_v20  ;;  %1468 = vtanh.f32 %v904_v17 }
 0x124   : > { %v1459_v22 = vpop.eup %1458  ;;  %1097 = vst [vmem:[%s1744_s15 + $0x130] sm:$0xff] %v1457_v21 }
 0x125   : > { %v1461_v23 = vpop.eup %1460  ;;  %1066 = vst [vmem:[%s1744_s15 + $0x38] sm:$0xff] %v1459_v22  ;;  %v780_v24 = vpop.f32.mrb[20].mxu0 }
 0x126   : > { %v908_v25 = vpop.f32.mrb[20].mxu1  ;;  %1098 = vst [vmem:[%s1744_s15 + $0x138] sm:$0xff] %v1461_v23  ;;  %v781_v26 = vadd.f32 %v1731_v10, %v780_v24  ;;  %v782_v28 = vpop.f32.mrb[21].mxu0 }
 0x127   : > { %v909_v27 = vadd.f32 %v1731_v10, %v908_v25  ;;  %v910_v29 = vpop.f32.mrb[21].mxu1  ;;  %v783_v30 = vpop.f32.mrb[22].mxu0 }
 0x128   : > { %v911_v31 = vpop.f32.mrb[22].mxu1  ;;  %1470 = vtanh.f32 %v781_v26  ;;  %v784_v32 = vadd.f32 %v1731_v10, %v783_v30  ;;  %v785_v34 = vpop.f32.mrb[23].mxu0 }
 0x129   : > { %v912_v33 = vadd.f32 %v1731_v10, %v911_v31  ;;  %v913_v35 = vpop.f32.mrb[23].mxu1  ;;  %1472 = vtanh.f32 %v909_v27 }
 0x12a   : > { %v1463_v36 = vpop.eup %1462  ;;  %1474 = vtanh.f32 %v784_v32 }
 0x12b   : > { %v1465_v37 = vpop.eup %1464  ;;  %1067 = vst [vmem:[%s1744_s15 + $0x40] sm:$0xff] %v1463_v36  ;;  %1476 = vtanh.f32 %v912_v33 }
 0x12c   : > { %v1467_v38 = vpop.eup %1466  ;;  %1099 = vst [vmem:[%s1744_s15 + $0x140] sm:$0xff] %v1465_v37 }
 0x12d   : > { %v1469_v39 = vpop.eup %1468  ;;  %1068 = vst [vmem:[%s1744_s15 + $0x48] sm:$0xff] %v1467_v38  ;;  %v788_v40 = vpop.f32.mrb[24].mxu0 }
 0x12e   : > { %v916_v41 = vpop.f32.mrb[24].mxu1  ;;  %1100 = vst [vmem:[%s1744_s15 + $0x148] sm:$0xff] %v1469_v39  ;;  %v789_v42 = vadd.f32 %v1731_v10, %v788_v40  ;;  %v790_v44 = vpop.f32.mrb[25].mxu0 }
 0x12f   : > { %v917_v43 = vadd.f32 %v1731_v10, %v916_v41  ;;  %v918_v45 = vpop.f32.mrb[25].mxu1  ;;  %v791_v46 = vpop.f32.mrb[26].mxu0 }
 0x130   : > { %v919_v47 = vpop.f32.mrb[26].mxu1  ;;  %1478 = vtanh.f32 %v789_v42  ;;  %v792_v48 = vadd.f32 %v1731_v10, %v791_v46  ;;  %v793_v50 = vpop.f32.mrb[27].mxu0 }
 0x131   : > { %v920_v49 = vadd.f32 %v1731_v10, %v919_v47  ;;  %v921_v51 = vpop.f32.mrb[27].mxu1  ;;  %1480 = vtanh.f32 %v917_v43 }
 0x132   : > { %v1471_v52 = vpop.eup %1470  ;;  %1482 = vtanh.f32 %v792_v48 }
 0x133   : > { %v1473_v53 = vpop.eup %1472  ;;  %1069 = vst [vmem:[%s1744_s15 + $0x50] sm:$0xff] %v1471_v52  ;;  %1484 = vtanh.f32 %v920_v49 }
 0x134   : > { %v1475_v54 = vpop.eup %1474  ;;  %1101 = vst [vmem:[%s1744_s15 + $0x150] sm:$0xff] %v1473_v53 }
 0x135   : > { %v1477_v55 = vpop.eup %1476  ;;  %1070 = vst [vmem:[%s1744_s15 + $0x58] sm:$0xff] %v1475_v54  ;;  %v796_v56 = vpop.f32.mrb[28].mxu0 }
 0x136   : > { %v924_v57 = vpop.f32.mrb[28].mxu1  ;;  %1102 = vst [vmem:[%s1744_s15 + $0x158] sm:$0xff] %v1477_v55  ;;  %v797_v58 = vadd.f32 %v1731_v10, %v796_v56  ;;  %v798_v60 = vpop.f32.mrb[29].mxu0 }
 0x137   : > { %v925_v59 = vadd.f32 %v1731_v10, %v924_v57  ;;  %v926_v61 = vpop.f32.mrb[29].mxu1  ;;  %v799_v62 = vpop.f32.mrb[30].mxu0 }
 0x138   : > { %v927_v63 = vpop.f32.mrb[30].mxu1  ;;  %1486 = vtanh.f32 %v797_v58  ;;  %v800_v0 = vadd.f32 %v1731_v10, %v799_v62  ;;  %v801_v2 = vpop.f32.mrb[31].mxu0 }
 0x139   : > { %v928_v1 = vadd.f32 %v1731_v10, %v927_v63  ;;  %v929_v3 = vpop.f32.mrb[31].mxu1  ;;  %1488 = vtanh.f32 %v925_v59 }
 0x13a   : > { %v1479_v4 = vpop.eup %1478  ;;  %1490 = vtanh.f32 %v800_v0 }
 0x13b   : > { %v1481_v5 = vpop.eup %1480  ;;  %1071 = vst [vmem:[%s1744_s15 + $0x60] sm:$0xff] %v1479_v4  ;;  %1492 = vtanh.f32 %v928_v1 }
 0x13c   : > { %v1483_v6 = vpop.eup %1482  ;;  %1103 = vst [vmem:[%s1744_s15 + $0x160] sm:$0xff] %v1481_v5 }
 0x13d   : > { %v1485_v7 = vpop.eup %1484  ;;  %1072 = vst [vmem:[%s1744_s15 + $0x68] sm:$0xff] %v1483_v6  ;;  %v804_v8 = vpop.f32.mrb[32].mxu0 }
 0x13e   : > { %v932_v9 = vpop.f32.mrb[32].mxu1  ;;  %1104 = vst [vmem:[%s1744_s15 + $0x168] sm:$0xff] %v1485_v7  ;;  %v805_v11 = vadd.f32 %v1731_v10, %v804_v8  ;;  %v806_v13 = vpop.f32.mrb[33].mxu0 }
 0x13f   : > { %v933_v12 = vadd.f32 %v1731_v10, %v932_v9  ;;  %v934_v14 = vpop.f32.mrb[33].mxu1  ;;  %v807_v15 = vpop.f32.mrb[34].mxu0 }
 0x140   : > { %v935_v16 = vpop.f32.mrb[34].mxu1  ;;  %1494 = vtanh.f32 %v805_v11  ;;  %v808_v17 = vadd.f32 %v1731_v10, %v807_v15  ;;  %v809_v19 = vpop.f32.mrb[35].mxu0 }
 0x141   : > { %v936_v18 = vadd.f32 %v1731_v10, %v935_v16  ;;  %v937_v20 = vpop.f32.mrb[35].mxu1  ;;  %1496 = vtanh.f32 %v933_v12 }
 0x142   : > { %v1487_v21 = vpop.eup %1486  ;;  %1498 = vtanh.f32 %v808_v17 }
 0x143   : > { %v1489_v22 = vpop.eup %1488  ;;  %1073 = vst [vmem:[%s1744_s15 + $0x70] sm:$0xff] %v1487_v21  ;;  %1500 = vtanh.f32 %v936_v18 }
 0x144   : > { %v1491_v23 = vpop.eup %1490  ;;  %1105 = vst [vmem:[%s1744_s15 + $0x170] sm:$0xff] %v1489_v22 }
 0x145   : > { %v1493_v24 = vpop.eup %1492  ;;  %1074 = vst [vmem:[%s1744_s15 + $0x78] sm:$0xff] %v1491_v23  ;;  %v812_v25 = vpop.f32.mrb[36].mxu0 }
 0x146   : > { %v940_v26 = vpop.f32.mrb[36].mxu1  ;;  %1106 = vst [vmem:[%s1744_s15 + $0x178] sm:$0xff] %v1493_v24  ;;  %v813_v27 = vadd.f32 %v1731_v10, %v812_v25  ;;  %v814_v29 = vpop.f32.mrb[37].mxu0 }
 0x147   : > { %v941_v28 = vadd.f32 %v1731_v10, %v940_v26  ;;  %v942_v30 = vpop.f32.mrb[37].mxu1  ;;  %v815_v31 = vpop.f32.mrb[38].mxu0 }
 0x148   : > { %v943_v32 = vpop.f32.mrb[38].mxu1  ;;  %1502 = vtanh.f32 %v813_v27  ;;  %v816_v33 = vadd.f32 %v1731_v10, %v815_v31  ;;  %v817_v35 = vpop.f32.mrb[39].mxu0 }
 0x149   : > { %v944_v34 = vadd.f32 %v1731_v10, %v943_v32  ;;  %v945_v36 = vpop.f32.mrb[39].mxu1  ;;  %1504 = vtanh.f32 %v941_v28 }
 0x14a   : > { %v1495_v37 = vpop.eup %1494  ;;  %1506 = vtanh.f32 %v816_v33 }
 0x14b   : > { %v1497_v38 = vpop.eup %1496  ;;  %1075 = vst [vmem:[%s1744_s15 + $0x80] sm:$0xff] %v1495_v37  ;;  %1508 = vtanh.f32 %v944_v34 }
 0x14c   : > { %v1499_v39 = vpop.eup %1498  ;;  %1107 = vst [vmem:[%s1744_s15 + $0x180] sm:$0xff] %v1497_v38 }
 0x14d   : > { %v1501_v40 = vpop.eup %1500  ;;  %1076 = vst [vmem:[%s1744_s15 + $0x88] sm:$0xff] %v1499_v39  ;;  %v820_v41 = vpop.f32.mrb[40].mxu0 }
 0x14e   : > { %v948_v42 = vpop.f32.mrb[40].mxu1  ;;  %1108 = vst [vmem:[%s1744_s15 + $0x188] sm:$0xff] %v1501_v40  ;;  %v821_v43 = vadd.f32 %v1731_v10, %v820_v41  ;;  %v822_v45 = vpop.f32.mrb[41].mxu0 }
 0x14f   : > { %v949_v44 = vadd.f32 %v1731_v10, %v948_v42  ;;  %v950_v46 = vpop.f32.mrb[41].mxu1  ;;  %v823_v47 = vpop.f32.mrb[42].mxu0 }
 0x150   : > { %v951_v48 = vpop.f32.mrb[42].mxu1  ;;  %1510 = vtanh.f32 %v821_v43  ;;  %v824_v49 = vadd.f32 %v1731_v10, %v823_v47  ;;  %v825_v51 = vpop.f32.mrb[43].mxu0 }
 0x151   : > { %v952_v50 = vadd.f32 %v1731_v10, %v951_v48  ;;  %v953_v52 = vpop.f32.mrb[43].mxu1  ;;  %1512 = vtanh.f32 %v949_v44 }
 0x152   : > { %v1503_v53 = vpop.eup %1502  ;;  %1514 = vtanh.f32 %v824_v49 }
 0x153   : > { %v1505_v54 = vpop.eup %1504  ;;  %1077 = vst [vmem:[%s1744_s15 + $0x90] sm:$0xff] %v1503_v53  ;;  %1516 = vtanh.f32 %v952_v50 }
 0x154   : > { %v1507_v55 = vpop.eup %1506  ;;  %1109 = vst [vmem:[%s1744_s15 + $0x190] sm:$0xff] %v1505_v54 }
 0x155   : > { %v1509_v56 = vpop.eup %1508  ;;  %1078 = vst [vmem:[%s1744_s15 + $0x98] sm:$0xff] %v1507_v55  ;;  %v828_v57 = vpop.f32.mrb[44].mxu0 }
 0x156   : > { %v956_v58 = vpop.f32.mrb[44].mxu1  ;;  %1110 = vst [vmem:[%s1744_s15 + $0x198] sm:$0xff] %v1509_v56  ;;  %v829_v59 = vadd.f32 %v1731_v10, %v828_v57  ;;  %v830_v61 = vpop.f32.mrb[45].mxu0 }
 0x157   : > { %v957_v60 = vadd.f32 %v1731_v10, %v956_v58  ;;  %v958_v62 = vpop.f32.mrb[45].mxu1  ;;  %v831_v63 = vpop.f32.mrb[46].mxu0 }
 0x158   : > { %v959_v0 = vpop.f32.mrb[46].mxu1  ;;  %1518 = vtanh.f32 %v829_v59  ;;  %v832_v1 = vadd.f32 %v1731_v10, %v831_v63  ;;  %v833_v3 = vpop.f32.mrb[47].mxu0 }
 0x159   : > { %v960_v2 = vadd.f32 %v1731_v10, %v959_v0  ;;  %v961_v4 = vpop.f32.mrb[47].mxu1  ;;  %1520 = vtanh.f32 %v957_v60 }
 0x15a   : > { %v1511_v5 = vpop.eup %1510  ;;  %1522 = vtanh.f32 %v832_v1 }
 0x15b   : > { %v1513_v6 = vpop.eup %1512  ;;  %1079 = vst [vmem:[%s1744_s15 + $0xa0] sm:$0xff] %v1511_v5  ;;  %1524 = vtanh.f32 %v960_v2 }
 0x15c   : > { %v1515_v7 = vpop.eup %1514  ;;  %1111 = vst [vmem:[%s1744_s15 + $0x1a0] sm:$0xff] %v1513_v6 }
 0x15d   : > { %v1517_v8 = vpop.eup %1516  ;;  %1080 = vst [vmem:[%s1744_s15 + $0xa8] sm:$0xff] %v1515_v7  ;;  %v836_v9 = vpop.f32.mrb[48].mxu0 }
 0x15e   : > { %v964_v11 = vpop.f32.mrb[48].mxu1  ;;  %1112 = vst [vmem:[%s1744_s15 + $0x1a8] sm:$0xff] %v1517_v8  ;;  %v837_v12 = vadd.f32 %v1731_v10, %v836_v9  ;;  %v838_v14 = vpop.f32.mrb[49].mxu0 }
 0x15f   : > { %v965_v13 = vadd.f32 %v1731_v10, %v964_v11  ;;  %v966_v15 = vpop.f32.mrb[49].mxu1  ;;  %v839_v16 = vpop.f32.mrb[50].mxu0 }
 0x160   : > { %v967_v17 = vpop.f32.mrb[50].mxu1  ;;  %1526 = vtanh.f32 %v837_v12  ;;  %v840_v18 = vadd.f32 %v1731_v10, %v839_v16  ;;  %v841_v20 = vpop.f32.mrb[51].mxu0 }
 0x161   : > { %v968_v19 = vadd.f32 %v1731_v10, %v967_v17  ;;  %v969_v21 = vpop.f32.mrb[51].mxu1  ;;  %1528 = vtanh.f32 %v965_v13 }
 0x162   : > { %v1519_v22 = vpop.eup %1518  ;;  %1530 = vtanh.f32 %v840_v18 }
 0x163   : > { %v1521_v23 = vpop.eup %1520  ;;  %1081 = vst [vmem:[%s1744_s15 + $0xb0] sm:$0xff] %v1519_v22  ;;  %1532 = vtanh.f32 %v968_v19 }
 0x164   : > { %v1523_v24 = vpop.eup %1522  ;;  %1113 = vst [vmem:[%s1744_s15 + $0x1b0] sm:$0xff] %v1521_v23 }
 0x165   : > { %v1525_v25 = vpop.eup %1524  ;;  %1082 = vst [vmem:[%s1744_s15 + $0xb8] sm:$0xff] %v1523_v24  ;;  %v844_v26 = vpop.f32.mrb[52].mxu0 }
 0x166   : > { %v972_v27 = vpop.f32.mrb[52].mxu1  ;;  %1114 = vst [vmem:[%s1744_s15 + $0x1b8] sm:$0xff] %v1525_v25  ;;  %v845_v28 = vadd.f32 %v1731_v10, %v844_v26  ;;  %v846_v30 = vpop.f32.mrb[53].mxu0 }
 0x167   : > { %v973_v29 = vadd.f32 %v1731_v10, %v972_v27  ;;  %v974_v31 = vpop.f32.mrb[53].mxu1  ;;  %v847_v32 = vpop.f32.mrb[54].mxu0 }
 0x168   : > { %v975_v33 = vpop.f32.mrb[54].mxu1  ;;  %1534 = vtanh.f32 %v845_v28  ;;  %v848_v34 = vadd.f32 %v1731_v10, %v847_v32  ;;  %v849_v36 = vpop.f32.mrb[55].mxu0 }
 0x169   : > { %v976_v35 = vadd.f32 %v1731_v10, %v975_v33  ;;  %v977_v37 = vpop.f32.mrb[55].mxu1  ;;  %1536 = vtanh.f32 %v973_v29 }
 0x16a   : > { %v1527_v38 = vpop.eup %1526  ;;  %1538 = vtanh.f32 %v848_v34 }
 0x16b   : > { %v1529_v39 = vpop.eup %1528  ;;  %1083 = vst [vmem:[%s1744_s15 + $0xc0] sm:$0xff] %v1527_v38  ;;  %1540 = vtanh.f32 %v976_v35 }
 0x16c   : > { %v1531_v40 = vpop.eup %1530  ;;  %1115 = vst [vmem:[%s1744_s15 + $0x1c0] sm:$0xff] %v1529_v39 }
 0x16d   : > { %v1533_v41 = vpop.eup %1532  ;;  %1084 = vst [vmem:[%s1744_s15 + $0xc8] sm:$0xff] %v1531_v40  ;;  %v852_v42 = vpop.f32.mrb[56].mxu0 }
 0x16e   : > { %v980_v43 = vpop.f32.mrb[56].mxu1  ;;  %1116 = vst [vmem:[%s1744_s15 + $0x1c8] sm:$0xff] %v1533_v41  ;;  %v853_v44 = vadd.f32 %v1731_v10, %v852_v42  ;;  %v854_v46 = vpop.f32.mrb[57].mxu0 }
 0x16f   : > { %v981_v45 = vadd.f32 %v1731_v10, %v980_v43  ;;  %v982_v47 = vpop.f32.mrb[57].mxu1  ;;  %v855_v48 = vpop.f32.mrb[58].mxu0 }
 0x170   : > { %v983_v49 = vpop.f32.mrb[58].mxu1  ;;  %1542 = vtanh.f32 %v853_v44  ;;  %v856_v50 = vadd.f32 %v1731_v10, %v855_v48  ;;  %v857_v52 = vpop.f32.mrb[59].mxu0 }
 0x171   : > { %v984_v51 = vadd.f32 %v1731_v10, %v983_v49  ;;  %v985_v53 = vpop.f32.mrb[59].mxu1  ;;  %1544 = vtanh.f32 %v981_v45 }
 0x172   : > { %v1535_v54 = vpop.eup %1534  ;;  %1546 = vtanh.f32 %v856_v50 }
 0x173   : > { %v1537_v55 = vpop.eup %1536  ;;  %1085 = vst [vmem:[%s1744_s15 + $0xd0] sm:$0xff] %v1535_v54  ;;  %1548 = vtanh.f32 %v984_v51 }
 0x174   : > { %v1539_v56 = vpop.eup %1538  ;;  %1117 = vst [vmem:[%s1744_s15 + $0x1d0] sm:$0xff] %v1537_v55 }
 0x175   : > { %v1541_v57 = vpop.eup %1540  ;;  %1086 = vst [vmem:[%s1744_s15 + $0xd8] sm:$0xff] %v1539_v56  ;;  %v860_v58 = vpop.f32.mrb[60].mxu0 }
 0x176   : > { %v988_v59 = vpop.f32.mrb[60].mxu1  ;;  %1118 = vst [vmem:[%s1744_s15 + $0x1d8] sm:$0xff] %v1541_v57  ;;  %v861_v60 = vadd.f32 %v1731_v10, %v860_v58  ;;  %v862_v62 = vpop.f32.mrb[61].mxu0 }
 0x177   : > { %v989_v61 = vadd.f32 %v1731_v10, %v988_v59  ;;  %v990_v63 = vpop.f32.mrb[61].mxu1  ;;  %v863_v0 = vpop.f32.mrb[62].mxu0 }
 0x178   : > { %v991_v1 = vpop.f32.mrb[62].mxu1  ;;  %1550 = vtanh.f32 %v861_v60  ;;  %v864_v2 = vadd.f32 %v1731_v10, %v863_v0  ;;  %v865_v4 = vpop.f32.mrb[63].mxu0 }
 0x179   : > { %v992_v3 = vadd.f32 %v1731_v10, %v991_v1  ;;  %v993_v5 = vpop.f32.mrb[63].mxu1  ;;  %1552 = vtanh.f32 %v989_v61 }
 0x17a   : > { %v1543_v6 = vpop.eup %1542  ;;  %1554 = vtanh.f32 %v864_v2 }
 0x17b   : > { %v1545_v7 = vpop.eup %1544  ;;  %1087 = vst [vmem:[%s1744_s15 + $0xe0] sm:$0xff] %v1543_v6  ;;  %1556 = vtanh.f32 %v992_v3 }
 0x17c   : > { %v1547_v8 = vpop.eup %1546  ;;  %1119 = vst [vmem:[%s1744_s15 + $0x1e0] sm:$0xff] %v1545_v7 }
 0x17d   : > { %v1549_v9 = vpop.eup %1548  ;;  %1088 = vst [vmem:[%s1744_s15 + $0xe8] sm:$0xff] %v1547_v8 }
 0x17e   : > { %1120 = vst [vmem:[%s1744_s15 + $0x1e8] sm:$0xff] %v1549_v9 }
 0x182   : > { %v1551_v11 = vpop.eup %1550 }
 0x183   : > { %v1553_v12 = vpop.eup %1552  ;;  %1089 = vst [vmem:[%s1744_s15 + $0xf0] sm:$0xff] %v1551_v11 }
 0x184   : > { %v1555_v10 = vpop.eup %1554  ;;  %1121 = vst [vmem:[%s1744_s15 + $0x1f0] sm:$0xff] %v1553_v12 }
 0x185   : > { %v1557_v13 = vpop.eup %1556  ;;  %1090 = vst [vmem:[%s1744_s15 + $0xf8] sm:$0xff] %v1555_v10 }
 0x186   : > { %1122 = vst [vmem:[%s1744_s15 + $0x1f8] sm:$0xff] %v1557_v13 }
 0x187 PF: > { %s13_s12 = sadd.s32 1, %s1564_s12  }
 0x188   : > { %p10_p4 = scmp.ge.s32.totalorder %s13_s12, 6  }
 0x18a   :  { %12 = sbr.rel (!%p10_p4) target bundleno = 1 (0x1), region = 62 }

</bundles_post_ra>
